<compile_context>
chip_gen: v6e
topology: v6e:2x2x1
jax: 0.10.0
libtpu: 0.0.40
codegen_flags: <defaults>
</compile_context>

<pallas_src>
import functools

import jax
import jax.numpy as jnp
from jax.experimental import pallas as pl
from jax.experimental.pallas import tpu as pltpu

EMB_DIM = 32
NUM_LAYER = 5
BINS_DISTANCE = 32
DISTANCE_CUTOFF = 5.0
NODE_CLASS = 10
LANE = 128            # node / edge / graph axes padded to the 128-lane width
OUT_SUB = 8           # output slab sublanes (row 0 carries the scalar head)


def _round_up(x, m):
    return ((x + m - 1) // m) * m


# ---------------------------------------------------------------------------
# Fused kernel: whole coGN forward on one grid step, everything VMEM-resident,
# feature-major [EMB, lane] layout, bf16 MXU / f32 epilogue.
# ---------------------------------------------------------------------------
def _cogn_fused_kernel(z_ref, pos_ref, rc_ref, row_e1_ref, bat_ref,
                       emb_ref, wa_ref, we_ref, w1_ref, w_ref, ball_ref,
                       wout_ref, bout_ref, out_ref):
    f32, bf16 = jnp.float32, jnp.bfloat16
    n_pad = z_ref.shape[1]
    e_pad = row_e1_ref.shape[0]
    g_pad = out_ref.shape[1]
    n_cls = emb_ref.shape[1]

    def silu(y):                                  # f32 epilogue; sigmoid -> EUP
        return y * jax.nn.sigmoid(y)

    def mm(a, b):                                 # MXU matmul, f32 accumulation
        return jnp.dot(a, b, preferred_element_type=f32)

    ball = ball_ref[...]                          # [EMB, 2 + 6*L] f32 bias pack

    def bias(col):                                # feature-major column bias
        return ball[:, col:col + 1]

    # ---- one-hot operators built in-kernel from int32 index vectors --------
    # (padded nodes/edges/graphs carry index -1 so they match nothing).
    # Fused row|col gather mask: G2[n, e'] = 1 iff source node of e' is n,
    # where e' < E uses row and e' >= E uses col.
    iota_n_2e = jax.lax.broadcasted_iota(jnp.int32, (n_pad, 2 * e_pad), 0)
    g2_f = (rc_ref[...] == iota_n_2e).astype(f32)                 # [N, 2E]
    g2_b = g2_f.astype(bf16)
    # edge -> node scatter-sum mask (to row = edge_index[0]).
    # TODO(synk): kgcnn GraphNetwork may aggregate to the receiving node
    # (col); kept identical to the previous implementation (row).
    iota_e_n = jax.lax.broadcasted_iota(jnp.int32, (e_pad, n_pad), 1)
    scat_b = (row_e1_ref[...] == iota_e_n).astype(bf16)           # [E, N]
    # graph mean-pool: 0/1 mask in bf16, normalization applied in f32 after.
    iota_n_g = jax.lax.broadcasted_iota(jnp.int32, (n_pad, g_pad), 1)
    pmask_f = (bat_ref[...] == iota_n_g).astype(f32)              # [N, G]
    inv_cnt = pl.reciprocal(
        jnp.maximum(jnp.sum(pmask_f, axis=0, keepdims=True), 1.0), approx=True)
    pmask_b = pmask_f.astype(bf16)
    # atom-class one-hot for the embedding lookup.
    iota_c_n = jax.lax.broadcasted_iota(jnp.int32, (n_cls, n_pad), 0)
    zoh_b = (z_ref[...] == iota_c_n).astype(bf16)                 # [C, N]

    # ---- stage 0: geometry (exact f32 gather), RBF, atom/edge Linear -------
    pos_rc = mm(pos_ref[...], g2_f)                               # [8, 2E]
    diff = pos_rc[:, :e_pad] - pos_rc[:, e_pad:]
    d = jnp.sqrt(jnp.sum(diff * diff, axis=0, keepdims=True))     # [1, E]
    # Gaussian basis: mu_k = (k+1)*cutoff/bins, sigma = cutoff/bins.
    # TODO(synk): EdgeEmbedding (kgcnn) binning is external; Gaussian RBF kept.
    mu = ((jax.lax.broadcasted_iota(jnp.int32, (BINS_DISTANCE, e_pad), 0)
           .astype(f32) + 1.0) * (DISTANCE_CUTOFF / BINS_DISTANCE))
    inv_two_sig2 = 1.0 / (2.0 * (DISTANCE_CUTOFF / BINS_DISTANCE) ** 2)
    rbf = jnp.exp(-((d - mu) ** 2) * inv_two_sig2)                # [BINS, E]

    h_emb = mm(emb_ref[...], zoh_b)                               # [EMB, N]
    hn = mm(wa_ref[...], h_emb.astype(bf16)) + bias(0)            # atom_mlp
    he = mm(we_ref[...], rbf.astype(bf16)) + bias(1)              # edge_mlp

    # ---- message-passing layers (statically unrolled, VMEM resident) -------
    # TODO(synk): coGNLayer internals are external; residual node update +
    # non-residual edge update assumed (same as previous version).
    for l in range(NUM_LAYER):
        gat = mm(hn.astype(bf16), g2_b).astype(bf16)              # [EMB, 2E]
        cat = jnp.concatenate(                                    # [3*EMB, E]
            [he.astype(bf16), gat[:, :e_pad], gat[:, e_pad:]], axis=0)
        m = silu(mm(w1_ref[l], cat) + bias(2 + 6 * l))            # K=96 fused
        for j in range(4):                                        # edge MLP 2..5
            m = silu(mm(w_ref[l, j], m.astype(bf16)) + bias(3 + 6 * l + j))
        agg = mm(m.astype(bf16), scat_b)                          # edge->node
        upd = silu(mm(w_ref[l, 4], agg.astype(bf16)) + bias(7 + 6 * l))
        hn = hn + upd                                             # residual node
        he = m                                                    # updated edges

    # ---- graph mean pooling + output head; one lane-dense [8, G] store -----
    hg = mm(hn.astype(bf16), pmask_b) * inv_cnt                   # [EMB, G]
    out = mm(wout_ref[...], hg.astype(bf16)) + bout_ref[...]      # [8, G]
    out_ref[...] = out.astype(out_ref.dtype)


# ---------------------------------------------------------------------------
# Parameter initialization (PyTorch-Linear-style uniform); weights stored
# transposed (feature-major) and cast to bf16 once, biases packed into one
# [EMB, 2 + 6*L] f32 slab.
# ---------------------------------------------------------------------------
def _linear_init(key, fan_in, fan_out):
    k1, k2 = jax.random.split(key)
    bound = 1.0 / float(fan_in) ** 0.5
    w = jax.random.uniform(k1, (fan_in, fan_out), jnp.float32, -bound, bound)
    b = jax.random.uniform(k2, (fan_out,), jnp.float32, -bound, bound)
    return w, b


def init_params(key):
    keys = jax.random.split(key, 4 + NUM_LAYER)
    bf16 = jnp.bfloat16
    params = {}
    # TODO(synk): ExtraAtomEmbedding (extra_atom_features=True) is an external
    # Geom3D module; a plain embedding table is used here instead.
    emb = jax.random.normal(keys[0], (NODE_CLASS, EMB_DIM), jnp.float32)
    params["emb_t"] = emb.T.astype(bf16)                        # [EMB, C]
    wa, ba = _linear_init(keys[1], EMB_DIM, EMB_DIM)
    we, be = _linear_init(keys[2], BINS_DISTANCE, EMB_DIM)
    params["atom_wt"] = wa.T.astype(bf16)                       # [EMB, EMB]
    params["edge_wt"] = we.T.astype(bf16)                       # [EMB, BINS]
    bias_cols = [ba, be]

    w1_stack, w_stack = [], []
    for l in range(NUM_LAYER):
        lk = jax.random.split(keys[3 + l], 6)
        # edge MLP: 5 silu layers; layer 1 takes concat([e, x_row, x_col]).
        w1, b1 = _linear_init(lk[0], 3 * EMB_DIM, EMB_DIM)
        w1_stack.append(w1.T.astype(bf16))                      # [EMB, 3*EMB]
        bias_cols.append(b1)
        mats = []
        for j in range(4):
            wj, bj = _linear_init(lk[1 + j], EMB_DIM, EMB_DIM)
            mats.append(wj.T.astype(bf16))
            bias_cols.append(bj)
        wn, bn = _linear_init(lk[5], EMB_DIM, EMB_DIM)          # node MLP
        mats.append(wn.T.astype(bf16))
        bias_cols.append(bn)
        w_stack.append(jnp.stack(mats))                         # [5, EMB, EMB]
    params["w1_stack"] = jnp.stack(w1_stack)                    # [L, EMB, 3EMB]
    params["w_stack"] = jnp.stack(w_stack)                      # [L, 5, EMB, EMB]
    params["b_all"] = jnp.stack(bias_cols, axis=1).astype(jnp.float32)  # [EMB, 32]

    # Output head Linear(EMB -> 1) in an [8, EMB] slab (row 0 real).
    wout, bout = _linear_init(keys[3 + NUM_LAYER], EMB_DIM, 1)
    params["out_wt"] = (jnp.zeros((OUT_SUB, EMB_DIM), jnp.float32)
                        .at[0, :].set(wout[:, 0]).astype(bf16))
    params["out_b"] = jnp.zeros((OUT_SUB, 1), jnp.float32).at[0, 0].set(bout[0])
    return params


def _full_spec(shape):
    zeros = (0,) * len(shape)

    def idx(i):
        return zeros

    return pl.BlockSpec(shape, idx)


def _cost_estimate(n_pad, e_pad, g_pad, bytes_accessed):
    def mm2(m, k, n):
        return 2 * m * k * n

    flops = (mm2(8, n_pad, 2 * e_pad)                # in-kernel pos gather
             + mm2(EMB_DIM, NODE_CLASS, n_pad)       # embedding one-hot
             + mm2(EMB_DIM, EMB_DIM, n_pad)          # atom mlp
             + mm2(EMB_DIM, BINS_DISTANCE, e_pad))   # edge mlp
    per_layer = (mm2(EMB_DIM, n_pad, 2 * e_pad)      # fused row/col gather
                 + mm2(EMB_DIM, 3 * EMB_DIM, e_pad)  # edge MLP layer 1 (K=96)
                 + 4 * mm2(EMB_DIM, EMB_DIM, e_pad)  # edge MLP layers 2..5
                 + mm2(EMB_DIM, e_pad, n_pad)        # edge->node scatter-sum
                 + mm2(EMB_DIM, EMB_DIM, n_pad))     # node MLP
    flops += NUM_LAYER * per_layer
    flops += mm2(EMB_DIM, n_pad, g_pad) + mm2(OUT_SUB, EMB_DIM, g_pad)
    trans = (BINS_DISTANCE * e_pad
             + NUM_LAYER * EMB_DIM * (5 * e_pad + n_pad) + g_pad)
    return pl.CostEstimate(flops=int(flops), transcendentals=int(trans),
                           bytes_accessed=int(bytes_accessed))


# ---------------------------------------------------------------------------
# coGN forward: thin pad/reshape glue + ONE pallas_call.
# ---------------------------------------------------------------------------
@functools.partial(jax.jit, static_argnums=(5,))
def cogn_forward(params, z, pos, batch, edge_index, num_graph):
    row, col = edge_index[0], edge_index[1]
    n_node = z.shape[0]
    n_edge = row.shape[0]
    n_pad = _round_up(n_node, LANE)
    e_pad = _round_up(n_edge, LANE)
    g_pad = _round_up(num_graph, LANE)

    # Index vectors; padding marked -1 so it matches no node / graph.
    z_p = jnp.pad(z.astype(jnp.int32), (0, n_pad - n_node),
                  constant_values=-1).reshape(1, n_pad)
    row_p = jnp.pad(row.astype(jnp.int32), (0, e_pad - n_edge),
                    constant_values=-1)
    col_p = jnp.pad(col.astype(jnp.int32), (0, e_pad - n_edge),
                    constant_values=-1)
    rc_p = jnp.concatenate([row_p, col_p]).reshape(1, 2 * e_pad)
    bat_p = jnp.pad(batch.astype(jnp.int32), (0, n_pad - n_node),
                    constant_values=-1).reshape(n_pad, 1)
    # Positions, feature-major [8, N_pad] (rows 0..2 = x,y,z; rest zero).
    pos_t = jnp.zeros((8, n_pad), jnp.float32).at[:3, :n_node].set(
        pos.T.astype(jnp.float32))

    inputs = (
        z_p, pos_t, rc_p, row_p.reshape(e_pad, 1), bat_p,
        params["emb_t"], params["atom_wt"], params["edge_wt"],
        params["w1_stack"], params["w_stack"], params["b_all"],
        params["out_wt"], params["out_b"],
    )

    bytes_accessed = sum(int(x.size) * jnp.dtype(x.dtype).itemsize
                         for x in inputs) + OUT_SUB * g_pad * 4

    out_p = pl.pallas_call(
        _cogn_fused_kernel,
        out_shape=jax.ShapeDtypeStruct((OUT_SUB, g_pad), jnp.float32),
        grid=(1,),
        in_specs=[_full_spec(x.shape) for x in inputs],
        out_specs=_full_spec((OUT_SUB, g_pad)),
        compiler_params=pltpu.CompilerParams(
            dimension_semantics=("arbitrary",),
            vmem_limit_bytes=48 * 1024 * 1024),
        cost_estimate=_cost_estimate(n_pad, e_pad, g_pad, bytes_accessed),
    )(*inputs)
    return out_p[0, :num_graph].reshape(num_graph, 1)


# ---------------------------------------------------------------------------
if __name__ == "__main__":
    key = jax.random.PRNGKey(0)
    pkey, zkey, poskey, ekey = jax.random.split(key, 4)
    params = init_params(pkey)

    nodes_per_graph, num_graph = 8, 2
    n_node = nodes_per_graph * num_graph
    z = jax.random.randint(zkey, (n_node,), 0, NODE_CLASS)
    pos = jax.random.normal(poskey, (n_node, 3), jnp.float32) * 2.0
    batch = jnp.repeat(jnp.arange(num_graph), nodes_per_graph)

    # random edges, kept within each graph
    edges_per_graph = 20
    e_src = jax.random.randint(
        ekey, (num_graph, edges_per_graph), 0, nodes_per_graph)
    e_dst = jax.random.randint(
        jax.random.fold_in(ekey, 1), (num_graph, edges_per_graph),
        0, nodes_per_graph)
    off = (jnp.arange(num_graph) * nodes_per_graph)[:, None]
    edge_index = jnp.stack(
        [(e_src + off).reshape(-1), (e_dst + off).reshape(-1)])  # [2, 40]

    out = cogn_forward(params, z, pos, batch, edge_index, num_graph)
    jax.block_until_ready(out)
    assert out.shape == (num_graph, 1)
    assert bool(jnp.all(jnp.isfinite(out)))
    print("KERNEL_OK")
</pallas_src>

<mosaic_0001>
module attributes {stable_mosaic.version = 11 : i64} {
  func.func @_cogn_fused_kernel(%arg0: i32, %arg1: memref<1x128xi32, #tpu.memory_space<vmem>>, %arg2: memref<8x128xf32, #tpu.memory_space<vmem>>, %arg3: memref<1x256xi32, #tpu.memory_space<vmem>>, %arg4: memref<128x1xi32, #tpu.memory_space<vmem>>, %arg5: memref<128x1xi32, #tpu.memory_space<vmem>>, %arg6: memref<32x10xbf16, #tpu.memory_space<vmem>>, %arg7: memref<32x32xbf16, #tpu.memory_space<vmem>>, %arg8: memref<32x32xbf16, #tpu.memory_space<vmem>>, %arg9: memref<5x32x96xbf16, #tpu.memory_space<vmem>>, %arg10: memref<5x5x32x32xbf16, #tpu.memory_space<vmem>>, %arg11: memref<32x32xf32, #tpu.memory_space<vmem>>, %arg12: memref<8x32xbf16, #tpu.memory_space<vmem>>, %arg13: memref<8x1xf32, #tpu.memory_space<vmem>>, %arg14: memref<8x128xf32, #tpu.memory_space<vmem>>) attributes {dimension_semantics = [#tpu.dimension_semantics<arbitrary>], iteration_bounds = array<i64: 1>, scalar_prefetch = 0 : i64, scratch_operands = 0 : i64, tpu.core_type = #tpu.core_type<tc>, window_params = [{pipeline_mode = #tpu.pipeline_mode<synchronous>, transform_indices = @transform_0, window_bounds = array<i64: 1, 128>}, {pipeline_mode = #tpu.pipeline_mode<synchronous>, transform_indices = @transform_1, window_bounds = array<i64: 8, 128>}, {pipeline_mode = #tpu.pipeline_mode<synchronous>, transform_indices = @transform_2, window_bounds = array<i64: 1, 256>}, {pipeline_mode = #tpu.pipeline_mode<synchronous>, transform_indices = @transform_3, window_bounds = array<i64: 128, 1>}, {pipeline_mode = #tpu.pipeline_mode<synchronous>, transform_indices = @transform_4, window_bounds = array<i64: 128, 1>}, {pipeline_mode = #tpu.pipeline_mode<synchronous>, transform_indices = @transform_5, window_bounds = array<i64: 32, 10>}, {pipeline_mode = #tpu.pipeline_mode<synchronous>, transform_indices = @transform_6, window_bounds = array<i64: 32, 32>}, {pipeline_mode = #tpu.pipeline_mode<synchronous>, transform_indices = @transform_7, window_bounds = array<i64: 32, 32>}, {pipeline_mode = #tpu.pipeline_mode<synchronous>, transform_indices = @transform_8, window_bounds = array<i64: 5, 32, 96>}, {pipeline_mode = #tpu.pipeline_mode<synchronous>, transform_indices = @transform_9, window_bounds = array<i64: 5, 5, 32, 32>}, {pipeline_mode = #tpu.pipeline_mode<synchronous>, transform_indices = @transform_10, window_bounds = array<i64: 32, 32>}, {pipeline_mode = #tpu.pipeline_mode<synchronous>, transform_indices = @transform_11, window_bounds = array<i64: 8, 32>}, {pipeline_mode = #tpu.pipeline_mode<synchronous>, transform_indices = @transform_12, window_bounds = array<i64: 8, 1>}, {pipeline_mode = #tpu.pipeline_mode<synchronous>, transform_indices = @transform_13, window_bounds = array<i64: 8, 128>}]} {
    %c0 = arith.constant 0 : index
    %c0_0 = arith.constant 0 : index
    %0 = vector.load %arg11[%c0, %c0_0] : memref<32x32xf32, #tpu.memory_space<vmem>>, vector<32x32xf32>
    %1 = tpu.iota {dimensions = array<i32: 0>} : vector<128x256xi32>
    %c0_1 = arith.constant 0 : index
    %c0_2 = arith.constant 0 : index
    %2 = vector.load %arg3[%c0_1, %c0_2] : memref<1x256xi32, #tpu.memory_space<vmem>>, vector<1x256xi32>
    %3 = vector.broadcast %2 : vector<1x256xi32> to vector<128x256xi32>
    %4 = arith.cmpi eq, %3, %1 : vector<128x256xi32>
    %5 = arith.extui %4 : vector<128x256xi1> to vector<128x256xi32>
    %6 = arith.sitofp %5 : vector<128x256xi32> to vector<128x256xf32>
    %7 = arith.truncf %6 : vector<128x256xf32> to vector<128x256xbf16>
    %8 = tpu.iota {dimensions = array<i32: 1>} : vector<128x128xi32>
    %c0_3 = arith.constant 0 : index
    %c0_4 = arith.constant 0 : index
    %9 = vector.load %arg4[%c0_3, %c0_4] : memref<128x1xi32, #tpu.memory_space<vmem>>, vector<128x1xi32>
    %10 = vector.broadcast %9 : vector<128x1xi32> to vector<128x128xi32>
    %11 = arith.cmpi eq, %10, %8 : vector<128x128xi32>
    %12 = arith.extui %11 : vector<128x128xi1> to vector<128x128xi32>
    %13 = arith.sitofp %12 : vector<128x128xi32> to vector<128x128xf32>
    %14 = arith.truncf %13 : vector<128x128xf32> to vector<128x128xbf16>
    %15 = tpu.iota {dimensions = array<i32: 1>} : vector<128x128xi32>
    %c0_5 = arith.constant 0 : index
    %c0_6 = arith.constant 0 : index
    %16 = vector.load %arg5[%c0_5, %c0_6] : memref<128x1xi32, #tpu.memory_space<vmem>>, vector<128x1xi32>
    %17 = vector.broadcast %16 : vector<128x1xi32> to vector<128x128xi32>
    %18 = arith.cmpi eq, %17, %15 : vector<128x128xi32>
    %19 = arith.extui %18 : vector<128x128xi1> to vector<128x128xi32>
    %20 = arith.sitofp %19 : vector<128x128xi32> to vector<128x128xf32>
    %cst = arith.constant dense<0.000000e+00> : vector<128xf32>
    %21 = vector.multi_reduction <add>, %20, %cst [0] : vector<128x128xf32> to vector<128xf32>
    %22 = vector.shape_cast %21 : vector<128xf32> to vector<1x128xf32>
    %cst_7 = arith.constant 1.000000e+00 : f32
    %23 = vector.broadcast %cst_7 : f32 to vector<1x128xf32>
    %24 = arith.maximumf %22, %23 : vector<1x128xf32>
    %25 = tpu.reciprocal %24 {approx = true} : vector<1x128xf32> -> vector<1x128xf32>
    %26 = arith.truncf %20 : vector<128x128xf32> to vector<128x128xbf16>
    %27 = tpu.iota {dimensions = array<i32: 0>} : vector<10x128xi32>
    %c0_8 = arith.constant 0 : index
    %c0_9 = arith.constant 0 : index
    %28 = vector.load %arg1[%c0_8, %c0_9] : memref<1x128xi32, #tpu.memory_space<vmem>>, vector<1x128xi32>
    %29 = vector.broadcast %28 : vector<1x128xi32> to vector<10x128xi32>
    %30 = arith.cmpi eq, %29, %27 : vector<10x128xi32>
    %31 = arith.extui %30 : vector<10x128xi1> to vector<10x128xi32>
    %32 = arith.sitofp %31 : vector<10x128xi32> to vector<10x128xf32>
    %33 = arith.truncf %32 : vector<10x128xf32> to vector<10x128xbf16>
    %c0_10 = arith.constant 0 : index
    %c0_11 = arith.constant 0 : index
    %34 = vector.load %arg2[%c0_10, %c0_11] : memref<8x128xf32, #tpu.memory_space<vmem>>, vector<8x128xf32>
    %cst_12 = arith.constant dense<0.000000e+00> : vector<8x256xf32>
    %35 = tpu.matmul %34, %6, %cst_12 {dimension_numbers = #tpu.dot_dimension_numbers<[1], [0], [0], [1], [0, 0, 1, 1], [], []>} : vector<8x128xf32>, vector<128x256xf32>, vector<8x256xf32> -> vector<8x256xf32>
    %36 = vector.extract_strided_slice %35 {offsets = [0, 0], sizes = [8, 128], strides = [1, 1]} : vector<8x256xf32> to vector<8x128xf32>
    %37 = vector.extract_strided_slice %35 {offsets = [0, 128], sizes = [8, 128], strides = [1, 1]} : vector<8x256xf32> to vector<8x128xf32>
    %38 = arith.subf %36, %37 : vector<8x128xf32>
    %39 = arith.mulf %38, %38 : vector<8x128xf32>
    %cst_13 = arith.constant dense<0.000000e+00> : vector<128xf32>
    %40 = vector.multi_reduction <add>, %39, %cst_13 [0] : vector<8x128xf32> to vector<128xf32>
    %41 = vector.shape_cast %40 : vector<128xf32> to vector<1x128xf32>
    %42 = math.sqrt %41 : vector<1x128xf32>
    %43 = tpu.iota {dimensions = array<i32: 0>} : vector<32x128xi32>
    %44 = arith.sitofp %43 : vector<32x128xi32> to vector<32x128xf32>
    %cst_14 = arith.constant 1.000000e+00 : f32
    %45 = vector.broadcast %cst_14 : f32 to vector<32x128xf32>
    %46 = arith.addf %44, %45 : vector<32x128xf32>
    %cst_15 = arith.constant 1.562500e-01 : f32
    %47 = vector.broadcast %cst_15 : f32 to vector<32x128xf32>
    %48 = arith.mulf %46, %47 : vector<32x128xf32>
    %49 = vector.broadcast %42 : vector<1x128xf32> to vector<32x128xf32>
    %50 = arith.subf %49, %48 : vector<32x128xf32>
    %51 = arith.mulf %50, %50 : vector<32x128xf32>
    %cst_16 = arith.constant 0.000000e+00 : f32
    %52 = vector.broadcast %cst_16 : f32 to vector<32x128xf32>
    %53 = arith.subf %52, %51 : vector<32x128xf32>
    %cst_17 = arith.constant 2.048000e+01 : f32
    %54 = vector.broadcast %cst_17 : f32 to vector<32x128xf32>
    %55 = arith.mulf %53, %54 : vector<32x128xf32>
    %56 = math.exp %55 : vector<32x128xf32>
    %c0_18 = arith.constant 0 : index
    %c0_19 = arith.constant 0 : index
    %57 = vector.load %arg6[%c0_18, %c0_19] : memref<32x10xbf16, #tpu.memory_space<vmem>>, vector<32x10xbf16>
    %cst_20 = arith.constant dense<0.000000e+00> : vector<32x128xf32>
    %58 = tpu.matmul %57, %33, %cst_20 {dimension_numbers = #tpu.dot_dimension_numbers<[1], [0], [0], [1], [0, 0, 1, 1], [], []>} : vector<32x10xbf16>, vector<10x128xbf16>, vector<32x128xf32> -> vector<32x128xf32>
    %c0_21 = arith.constant 0 : index
    %c0_22 = arith.constant 0 : index
    %59 = vector.load %arg7[%c0_21, %c0_22] : memref<32x32xbf16, #tpu.memory_space<vmem>>, vector<32x32xbf16>
    %60 = arith.truncf %58 : vector<32x128xf32> to vector<32x128xbf16>
    %cst_23 = arith.constant dense<0.000000e+00> : vector<32x128xf32>
    %61 = tpu.matmul %59, %60, %cst_23 {dimension_numbers = #tpu.dot_dimension_numbers<[1], [0], [0], [1], [0, 0, 1, 1], [], []>} : vector<32x32xbf16>, vector<32x128xbf16>, vector<32x128xf32> -> vector<32x128xf32>
    %62 = vector.extract_strided_slice %0 {offsets = [0, 0], sizes = [32, 1], strides = [1, 1]} : vector<32x32xf32> to vector<32x1xf32>
    %63 = vector.broadcast %62 : vector<32x1xf32> to vector<32x128xf32>
    %64 = arith.addf %61, %63 : vector<32x128xf32>
    %c0_24 = arith.constant 0 : index
    %c0_25 = arith.constant 0 : index
    %65 = vector.load %arg8[%c0_24, %c0_25] : memref<32x32xbf16, #tpu.memory_space<vmem>>, vector<32x32xbf16>
    %66 = arith.truncf %56 : vector<32x128xf32> to vector<32x128xbf16>
    %cst_26 = arith.constant dense<0.000000e+00> : vector<32x128xf32>
    %67 = tpu.matmul %65, %66, %cst_26 {dimension_numbers = #tpu.dot_dimension_numbers<[1], [0], [0], [1], [0, 0, 1, 1], [], []>} : vector<32x32xbf16>, vector<32x128xbf16>, vector<32x128xf32> -> vector<32x128xf32>
    %68 = vector.extract_strided_slice %0 {offsets = [0, 1], sizes = [32, 1], strides = [1, 1]} : vector<32x32xf32> to vector<32x1xf32>
    %69 = vector.broadcast %68 : vector<32x1xf32> to vector<32x128xf32>
    %70 = arith.addf %67, %69 : vector<32x128xf32>
    %71 = arith.truncf %64 : vector<32x128xf32> to vector<32x128xbf16>
    %cst_27 = arith.constant dense<0.000000e+00> : vector<32x256xf32>
    %72 = tpu.matmul %71, %7, %cst_27 {dimension_numbers = #tpu.dot_dimension_numbers<[1], [0], [0], [1], [0, 0, 1, 1], [], []>} : vector<32x128xbf16>, vector<128x256xbf16>, vector<32x256xf32> -> vector<32x256xf32>
    %73 = arith.truncf %72 : vector<32x256xf32> to vector<32x256xbf16>
    %74 = arith.truncf %70 : vector<32x128xf32> to vector<32x128xbf16>
    %75 = vector.extract_strided_slice %73 {offsets = [0, 0], sizes = [32, 128], strides = [1, 1]} : vector<32x256xbf16> to vector<32x128xbf16>
    %76 = vector.extract_strided_slice %73 {offsets = [0, 128], sizes = [32, 128], strides = [1, 1]} : vector<32x256xbf16> to vector<32x128xbf16>
    %77 = tpu.concatenate %74, %75, %76 in 0 : vector<32x128xbf16>, vector<32x128xbf16>, vector<32x128xbf16> -> vector<96x128xbf16>
    %c0_28 = arith.constant 0 : index
    %c0_29 = arith.constant 0 : index
    %c0_30 = arith.constant 0 : index
    %78 = vector.load %arg9[%c0_28, %c0_29, %c0_30] : memref<5x32x96xbf16, #tpu.memory_space<vmem>>, vector<1x32x96xbf16>
    %79 = vector.shape_cast %78 : vector<1x32x96xbf16> to vector<32x96xbf16>
    %cst_31 = arith.constant dense<0.000000e+00> : vector<32x128xf32>
    %80 = tpu.matmul %79, %77, %cst_31 {dimension_numbers = #tpu.dot_dimension_numbers<[1], [0], [0], [1], [0, 0, 1, 1], [], []>} : vector<32x96xbf16>, vector<96x128xbf16>, vector<32x128xf32> -> vector<32x128xf32>
    %81 = vector.extract_strided_slice %0 {offsets = [0, 2], sizes = [32, 1], strides = [1, 1]} : vector<32x32xf32> to vector<32x1xf32>
    %82 = vector.broadcast %81 : vector<32x1xf32> to vector<32x128xf32>
    %83 = arith.addf %80, %82 : vector<32x128xf32>
    %84 = arith.negf %83 : vector<32x128xf32>
    %85 = math.exp %84 : vector<32x128xf32>
    %cst_32 = arith.constant 1.000000e+00 : f32
    %86 = vector.broadcast %cst_32 : f32 to vector<32x128xf32>
    %87 = arith.addf %86, %85 : vector<32x128xf32>
    %88 = arith.divf %86, %87 : vector<32x128xf32>
    %89 = arith.mulf %83, %88 : vector<32x128xf32>
    %c0_33 = arith.constant 0 : index
    %c0_34 = arith.constant 0 : index
    %c0_35 = arith.constant 0 : index
    %c0_36 = arith.constant 0 : index
    %90 = vector.load %arg10[%c0_33, %c0_34, %c0_35, %c0_36] : memref<5x5x32x32xbf16, #tpu.memory_space<vmem>>, vector<1x1x32x32xbf16>
    %91 = vector.shape_cast %90 : vector<1x1x32x32xbf16> to vector<32x32xbf16>
    %92 = arith.truncf %89 : vector<32x128xf32> to vector<32x128xbf16>
    %cst_37 = arith.constant dense<0.000000e+00> : vector<32x128xf32>
    %93 = tpu.matmul %91, %92, %cst_37 {dimension_numbers = #tpu.dot_dimension_numbers<[1], [0], [0], [1], [0, 0, 1, 1], [], []>} : vector<32x32xbf16>, vector<32x128xbf16>, vector<32x128xf32> -> vector<32x128xf32>
    %94 = vector.extract_strided_slice %0 {offsets = [0, 3], sizes = [32, 1], strides = [1, 1]} : vector<32x32xf32> to vector<32x1xf32>
    %95 = vector.broadcast %94 : vector<32x1xf32> to vector<32x128xf32>
    %96 = arith.addf %93, %95 : vector<32x128xf32>
    %97 = arith.negf %96 : vector<32x128xf32>
    %98 = math.exp %97 : vector<32x128xf32>
    %cst_38 = arith.constant 1.000000e+00 : f32
    %99 = vector.broadcast %cst_38 : f32 to vector<32x128xf32>
    %100 = arith.addf %99, %98 : vector<32x128xf32>
    %101 = arith.divf %99, %100 : vector<32x128xf32>
    %102 = arith.mulf %96, %101 : vector<32x128xf32>
    %c0_39 = arith.constant 0 : index
    %c1 = arith.constant 1 : index
    %c0_40 = arith.constant 0 : index
    %c0_41 = arith.constant 0 : index
    %103 = vector.load %arg10[%c0_39, %c1, %c0_40, %c0_41] : memref<5x5x32x32xbf16, #tpu.memory_space<vmem>>, vector<1x1x32x32xbf16>
    %104 = vector.shape_cast %103 : vector<1x1x32x32xbf16> to vector<32x32xbf16>
    %105 = arith.truncf %102 : vector<32x128xf32> to vector<32x128xbf16>
    %cst_42 = arith.constant dense<0.000000e+00> : vector<32x128xf32>
    %106 = tpu.matmul %104, %105, %cst_42 {dimension_numbers = #tpu.dot_dimension_numbers<[1], [0], [0], [1], [0, 0, 1, 1], [], []>} : vector<32x32xbf16>, vector<32x128xbf16>, vector<32x128xf32> -> vector<32x128xf32>
    %107 = vector.extract_strided_slice %0 {offsets = [0, 4], sizes = [32, 1], strides = [1, 1]} : vector<32x32xf32> to vector<32x1xf32>
    %108 = vector.broadcast %107 : vector<32x1xf32> to vector<32x128xf32>
    %109 = arith.addf %106, %108 : vector<32x128xf32>
    %110 = arith.negf %109 : vector<32x128xf32>
    %111 = math.exp %110 : vector<32x128xf32>
    %cst_43 = arith.constant 1.000000e+00 : f32
    %112 = vector.broadcast %cst_43 : f32 to vector<32x128xf32>
    %113 = arith.addf %112, %111 : vector<32x128xf32>
    %114 = arith.divf %112, %113 : vector<32x128xf32>
    %115 = arith.mulf %109, %114 : vector<32x128xf32>
    %c0_44 = arith.constant 0 : index
    %c2 = arith.constant 2 : index
    %c0_45 = arith.constant 0 : index
    %c0_46 = arith.constant 0 : index
    %116 = vector.load %arg10[%c0_44, %c2, %c0_45, %c0_46] : memref<5x5x32x32xbf16, #tpu.memory_space<vmem>>, vector<1x1x32x32xbf16>
    %117 = vector.shape_cast %116 : vector<1x1x32x32xbf16> to vector<32x32xbf16>
    %118 = arith.truncf %115 : vector<32x128xf32> to vector<32x128xbf16>
    %cst_47 = arith.constant dense<0.000000e+00> : vector<32x128xf32>
    %119 = tpu.matmul %117, %118, %cst_47 {dimension_numbers = #tpu.dot_dimension_numbers<[1], [0], [0], [1], [0, 0, 1, 1], [], []>} : vector<32x32xbf16>, vector<32x128xbf16>, vector<32x128xf32> -> vector<32x128xf32>
    %120 = vector.extract_strided_slice %0 {offsets = [0, 5], sizes = [32, 1], strides = [1, 1]} : vector<32x32xf32> to vector<32x1xf32>
    %121 = vector.broadcast %120 : vector<32x1xf32> to vector<32x128xf32>
    %122 = arith.addf %119, %121 : vector<32x128xf32>
    %123 = arith.negf %122 : vector<32x128xf32>
    %124 = math.exp %123 : vector<32x128xf32>
    %cst_48 = arith.constant 1.000000e+00 : f32
    %125 = vector.broadcast %cst_48 : f32 to vector<32x128xf32>
    %126 = arith.addf %125, %124 : vector<32x128xf32>
    %127 = arith.divf %125, %126 : vector<32x128xf32>
    %128 = arith.mulf %122, %127 : vector<32x128xf32>
    %c0_49 = arith.constant 0 : index
    %c3 = arith.constant 3 : index
    %c0_50 = arith.constant 0 : index
    %c0_51 = arith.constant 0 : index
    %129 = vector.load %arg10[%c0_49, %c3, %c0_50, %c0_51] : memref<5x5x32x32xbf16, #tpu.memory_space<vmem>>, vector<1x1x32x32xbf16>
    %130 = vector.shape_cast %129 : vector<1x1x32x32xbf16> to vector<32x32xbf16>
    %131 = arith.truncf %128 : vector<32x128xf32> to vector<32x128xbf16>
    %cst_52 = arith.constant dense<0.000000e+00> : vector<32x128xf32>
    %132 = tpu.matmul %130, %131, %cst_52 {dimension_numbers = #tpu.dot_dimension_numbers<[1], [0], [0], [1], [0, 0, 1, 1], [], []>} : vector<32x32xbf16>, vector<32x128xbf16>, vector<32x128xf32> -> vector<32x128xf32>
    %133 = vector.extract_strided_slice %0 {offsets = [0, 6], sizes = [32, 1], strides = [1, 1]} : vector<32x32xf32> to vector<32x1xf32>
    %134 = vector.broadcast %133 : vector<32x1xf32> to vector<32x128xf32>
    %135 = arith.addf %132, %134 : vector<32x128xf32>
    %136 = arith.negf %135 : vector<32x128xf32>
    %137 = math.exp %136 : vector<32x128xf32>
    %cst_53 = arith.constant 1.000000e+00 : f32
    %138 = vector.broadcast %cst_53 : f32 to vector<32x128xf32>
    %139 = arith.addf %138, %137 : vector<32x128xf32>
    %140 = arith.divf %138, %139 : vector<32x128xf32>
    %141 = arith.mulf %135, %140 : vector<32x128xf32>
    %142 = arith.truncf %141 : vector<32x128xf32> to vector<32x128xbf16>
    %cst_54 = arith.constant dense<0.000000e+00> : vector<32x128xf32>
    %143 = tpu.matmul %142, %14, %cst_54 {dimension_numbers = #tpu.dot_dimension_numbers<[1], [0], [0], [1], [0, 0, 1, 1], [], []>} : vector<32x128xbf16>, vector<128x128xbf16>, vector<32x128xf32> -> vector<32x128xf32>
    %c0_55 = arith.constant 0 : index
    %c4 = arith.constant 4 : index
    %c0_56 = arith.constant 0 : index
    %c0_57 = arith.constant 0 : index
    %144 = vector.load %arg10[%c0_55, %c4, %c0_56, %c0_57] : memref<5x5x32x32xbf16, #tpu.memory_space<vmem>>, vector<1x1x32x32xbf16>
    %145 = vector.shape_cast %144 : vector<1x1x32x32xbf16> to vector<32x32xbf16>
    %146 = arith.truncf %143 : vector<32x128xf32> to vector<32x128xbf16>
    %cst_58 = arith.constant dense<0.000000e+00> : vector<32x128xf32>
    %147 = tpu.matmul %145, %146, %cst_58 {dimension_numbers = #tpu.dot_dimension_numbers<[1], [0], [0], [1], [0, 0, 1, 1], [], []>} : vector<32x32xbf16>, vector<32x128xbf16>, vector<32x128xf32> -> vector<32x128xf32>
    %148 = vector.extract_strided_slice %0 {offsets = [0, 7], sizes = [32, 1], strides = [1, 1]} : vector<32x32xf32> to vector<32x1xf32>
    %149 = vector.broadcast %148 : vector<32x1xf32> to vector<32x128xf32>
    %150 = arith.addf %147, %149 : vector<32x128xf32>
    %151 = arith.negf %150 : vector<32x128xf32>
    %152 = math.exp %151 : vector<32x128xf32>
    %cst_59 = arith.constant 1.000000e+00 : f32
    %153 = vector.broadcast %cst_59 : f32 to vector<32x128xf32>
    %154 = arith.addf %153, %152 : vector<32x128xf32>
    %155 = arith.divf %153, %154 : vector<32x128xf32>
    %156 = arith.mulf %150, %155 : vector<32x128xf32>
    %157 = arith.addf %64, %156 : vector<32x128xf32>
    %158 = arith.truncf %157 : vector<32x128xf32> to vector<32x128xbf16>
    %cst_60 = arith.constant dense<0.000000e+00> : vector<32x256xf32>
    %159 = tpu.matmul %158, %7, %cst_60 {dimension_numbers = #tpu.dot_dimension_numbers<[1], [0], [0], [1], [0, 0, 1, 1], [], []>} : vector<32x128xbf16>, vector<128x256xbf16>, vector<32x256xf32> -> vector<32x256xf32>
    %160 = arith.truncf %159 : vector<32x256xf32> to vector<32x256xbf16>
    %161 = arith.truncf %141 : vector<32x128xf32> to vector<32x128xbf16>
    %162 = vector.extract_strided_slice %160 {offsets = [0, 0], sizes = [32, 128], strides = [1, 1]} : vector<32x256xbf16> to vector<32x128xbf16>
    %163 = vector.extract_strided_slice %160 {offsets = [0, 128], sizes = [32, 128], strides = [1, 1]} : vector<32x256xbf16> to vector<32x128xbf16>
    %164 = tpu.concatenate %161, %162, %163 in 0 : vector<32x128xbf16>, vector<32x128xbf16>, vector<32x128xbf16> -> vector<96x128xbf16>
    %c1_61 = arith.constant 1 : index
    %c0_62 = arith.constant 0 : index
    %c0_63 = arith.constant 0 : index
    %165 = vector.load %arg9[%c1_61, %c0_62, %c0_63] : memref<5x32x96xbf16, #tpu.memory_space<vmem>>, vector<1x32x96xbf16>
    %166 = vector.shape_cast %165 : vector<1x32x96xbf16> to vector<32x96xbf16>
    %cst_64 = arith.constant dense<0.000000e+00> : vector<32x128xf32>
    %167 = tpu.matmul %166, %164, %cst_64 {dimension_numbers = #tpu.dot_dimension_numbers<[1], [0], [0], [1], [0, 0, 1, 1], [], []>} : vector<32x96xbf16>, vector<96x128xbf16>, vector<32x128xf32> -> vector<32x128xf32>
    %168 = vector.extract_strided_slice %0 {offsets = [0, 8], sizes = [32, 1], strides = [1, 1]} : vector<32x32xf32> to vector<32x1xf32>
    %169 = vector.broadcast %168 : vector<32x1xf32> to vector<32x128xf32>
    %170 = arith.addf %167, %169 : vector<32x128xf32>
    %171 = arith.negf %170 : vector<32x128xf32>
    %172 = math.exp %171 : vector<32x128xf32>
    %cst_65 = arith.constant 1.000000e+00 : f32
    %173 = vector.broadcast %cst_65 : f32 to vector<32x128xf32>
    %174 = arith.addf %173, %172 : vector<32x128xf32>
    %175 = arith.divf %173, %174 : vector<32x128xf32>
    %176 = arith.mulf %170, %175 : vector<32x128xf32>
    %c1_66 = arith.constant 1 : index
    %c0_67 = arith.constant 0 : index
    %c0_68 = arith.constant 0 : index
    %c0_69 = arith.constant 0 : index
    %177 = vector.load %arg10[%c1_66, %c0_67, %c0_68, %c0_69] : memref<5x5x32x32xbf16, #tpu.memory_space<vmem>>, vector<1x1x32x32xbf16>
    %178 = vector.shape_cast %177 : vector<1x1x32x32xbf16> to vector<32x32xbf16>
    %179 = arith.truncf %176 : vector<32x128xf32> to vector<32x128xbf16>
    %cst_70 = arith.constant dense<0.000000e+00> : vector<32x128xf32>
    %180 = tpu.matmul %178, %179, %cst_70 {dimension_numbers = #tpu.dot_dimension_numbers<[1], [0], [0], [1], [0, 0, 1, 1], [], []>} : vector<32x32xbf16>, vector<32x128xbf16>, vector<32x128xf32> -> vector<32x128xf32>
    %181 = vector.extract_strided_slice %0 {offsets = [0, 9], sizes = [32, 1], strides = [1, 1]} : vector<32x32xf32> to vector<32x1xf32>
    %182 = vector.broadcast %181 : vector<32x1xf32> to vector<32x128xf32>
    %183 = arith.addf %180, %182 : vector<32x128xf32>
    %184 = arith.negf %183 : vector<32x128xf32>
    %185 = math.exp %184 : vector<32x128xf32>
    %cst_71 = arith.constant 1.000000e+00 : f32
    %186 = vector.broadcast %cst_71 : f32 to vector<32x128xf32>
    %187 = arith.addf %186, %185 : vector<32x128xf32>
    %188 = arith.divf %186, %187 : vector<32x128xf32>
    %189 = arith.mulf %183, %188 : vector<32x128xf32>
    %c1_72 = arith.constant 1 : index
    %c1_73 = arith.constant 1 : index
    %c0_74 = arith.constant 0 : index
    %c0_75 = arith.constant 0 : index
    %190 = vector.load %arg10[%c1_72, %c1_73, %c0_74, %c0_75] : memref<5x5x32x32xbf16, #tpu.memory_space<vmem>>, vector<1x1x32x32xbf16>
    %191 = vector.shape_cast %190 : vector<1x1x32x32xbf16> to vector<32x32xbf16>
    %192 = arith.truncf %189 : vector<32x128xf32> to vector<32x128xbf16>
    %cst_76 = arith.constant dense<0.000000e+00> : vector<32x128xf32>
    %193 = tpu.matmul %191, %192, %cst_76 {dimension_numbers = #tpu.dot_dimension_numbers<[1], [0], [0], [1], [0, 0, 1, 1], [], []>} : vector<32x32xbf16>, vector<32x128xbf16>, vector<32x128xf32> -> vector<32x128xf32>
    %194 = vector.extract_strided_slice %0 {offsets = [0, 10], sizes = [32, 1], strides = [1, 1]} : vector<32x32xf32> to vector<32x1xf32>
    %195 = vector.broadcast %194 : vector<32x1xf32> to vector<32x128xf32>
    %196 = arith.addf %193, %195 : vector<32x128xf32>
    %197 = arith.negf %196 : vector<32x128xf32>
    %198 = math.exp %197 : vector<32x128xf32>
    %cst_77 = arith.constant 1.000000e+00 : f32
    %199 = vector.broadcast %cst_77 : f32 to vector<32x128xf32>
    %200 = arith.addf %199, %198 : vector<32x128xf32>
    %201 = arith.divf %199, %200 : vector<32x128xf32>
    %202 = arith.mulf %196, %201 : vector<32x128xf32>
    %c1_78 = arith.constant 1 : index
    %c2_79 = arith.constant 2 : index
    %c0_80 = arith.constant 0 : index
    %c0_81 = arith.constant 0 : index
    %203 = vector.load %arg10[%c1_78, %c2_79, %c0_80, %c0_81] : memref<5x5x32x32xbf16, #tpu.memory_space<vmem>>, vector<1x1x32x32xbf16>
    %204 = vector.shape_cast %203 : vector<1x1x32x32xbf16> to vector<32x32xbf16>
    %205 = arith.truncf %202 : vector<32x128xf32> to vector<32x128xbf16>
    %cst_82 = arith.constant dense<0.000000e+00> : vector<32x128xf32>
    %206 = tpu.matmul %204, %205, %cst_82 {dimension_numbers = #tpu.dot_dimension_numbers<[1], [0], [0], [1], [0, 0, 1, 1], [], []>} : vector<32x32xbf16>, vector<32x128xbf16>, vector<32x128xf32> -> vector<32x128xf32>
    %207 = vector.extract_strided_slice %0 {offsets = [0, 11], sizes = [32, 1], strides = [1, 1]} : vector<32x32xf32> to vector<32x1xf32>
    %208 = vector.broadcast %207 : vector<32x1xf32> to vector<32x128xf32>
    %209 = arith.addf %206, %208 : vector<32x128xf32>
    %210 = arith.negf %209 : vector<32x128xf32>
    %211 = math.exp %210 : vector<32x128xf32>
    %cst_83 = arith.constant 1.000000e+00 : f32
    %212 = vector.broadcast %cst_83 : f32 to vector<32x128xf32>
    %213 = arith.addf %212, %211 : vector<32x128xf32>
    %214 = arith.divf %212, %213 : vector<32x128xf32>
    %215 = arith.mulf %209, %214 : vector<32x128xf32>
    %c1_84 = arith.constant 1 : index
    %c3_85 = arith.constant 3 : index
    %c0_86 = arith.constant 0 : index
    %c0_87 = arith.constant 0 : index
    %216 = vector.load %arg10[%c1_84, %c3_85, %c0_86, %c0_87] : memref<5x5x32x32xbf16, #tpu.memory_space<vmem>>, vector<1x1x32x32xbf16>
    %217 = vector.shape_cast %216 : vector<1x1x32x32xbf16> to vector<32x32xbf16>
    %218 = arith.truncf %215 : vector<32x128xf32> to vector<32x128xbf16>
    %cst_88 = arith.constant dense<0.000000e+00> : vector<32x128xf32>
    %219 = tpu.matmul %217, %218, %cst_88 {dimension_numbers = #tpu.dot_dimension_numbers<[1], [0], [0], [1], [0, 0, 1, 1], [], []>} : vector<32x32xbf16>, vector<32x128xbf16>, vector<32x128xf32> -> vector<32x128xf32>
    %220 = vector.extract_strided_slice %0 {offsets = [0, 12], sizes = [32, 1], strides = [1, 1]} : vector<32x32xf32> to vector<32x1xf32>
    %221 = vector.broadcast %220 : vector<32x1xf32> to vector<32x128xf32>
    %222 = arith.addf %219, %221 : vector<32x128xf32>
    %223 = arith.negf %222 : vector<32x128xf32>
    %224 = math.exp %223 : vector<32x128xf32>
    %cst_89 = arith.constant 1.000000e+00 : f32
    %225 = vector.broadcast %cst_89 : f32 to vector<32x128xf32>
    %226 = arith.addf %225, %224 : vector<32x128xf32>
    %227 = arith.divf %225, %226 : vector<32x128xf32>
    %228 = arith.mulf %222, %227 : vector<32x128xf32>
    %229 = arith.truncf %228 : vector<32x128xf32> to vector<32x128xbf16>
    %cst_90 = arith.constant dense<0.000000e+00> : vector<32x128xf32>
    %230 = tpu.matmul %229, %14, %cst_90 {dimension_numbers = #tpu.dot_dimension_numbers<[1], [0], [0], [1], [0, 0, 1, 1], [], []>} : vector<32x128xbf16>, vector<128x128xbf16>, vector<32x128xf32> -> vector<32x128xf32>
    %c1_91 = arith.constant 1 : index
    %c4_92 = arith.constant 4 : index
    %c0_93 = arith.constant 0 : index
    %c0_94 = arith.constant 0 : index
    %231 = vector.load %arg10[%c1_91, %c4_92, %c0_93, %c0_94] : memref<5x5x32x32xbf16, #tpu.memory_space<vmem>>, vector<1x1x32x32xbf16>
    %232 = vector.shape_cast %231 : vector<1x1x32x32xbf16> to vector<32x32xbf16>
    %233 = arith.truncf %230 : vector<32x128xf32> to vector<32x128xbf16>
    %cst_95 = arith.constant dense<0.000000e+00> : vector<32x128xf32>
    %234 = tpu.matmul %232, %233, %cst_95 {dimension_numbers = #tpu.dot_dimension_numbers<[1], [0], [0], [1], [0, 0, 1, 1], [], []>} : vector<32x32xbf16>, vector<32x128xbf16>, vector<32x128xf32> -> vector<32x128xf32>
    %235 = vector.extract_strided_slice %0 {offsets = [0, 13], sizes = [32, 1], strides = [1, 1]} : vector<32x32xf32> to vector<32x1xf32>
    %236 = vector.broadcast %235 : vector<32x1xf32> to vector<32x128xf32>
    %237 = arith.addf %234, %236 : vector<32x128xf32>
    %238 = arith.negf %237 : vector<32x128xf32>
    %239 = math.exp %238 : vector<32x128xf32>
    %cst_96 = arith.constant 1.000000e+00 : f32
    %240 = vector.broadcast %cst_96 : f32 to vector<32x128xf32>
    %241 = arith.addf %240, %239 : vector<32x128xf32>
    %242 = arith.divf %240, %241 : vector<32x128xf32>
    %243 = arith.mulf %237, %242 : vector<32x128xf32>
    %244 = arith.addf %157, %243 : vector<32x128xf32>
    %245 = arith.truncf %244 : vector<32x128xf32> to vector<32x128xbf16>
    %cst_97 = arith.constant dense<0.000000e+00> : vector<32x256xf32>
    %246 = tpu.matmul %245, %7, %cst_97 {dimension_numbers = #tpu.dot_dimension_numbers<[1], [0], [0], [1], [0, 0, 1, 1], [], []>} : vector<32x128xbf16>, vector<128x256xbf16>, vector<32x256xf32> -> vector<32x256xf32>
    %247 = arith.truncf %246 : vector<32x256xf32> to vector<32x256xbf16>
    %248 = arith.truncf %228 : vector<32x128xf32> to vector<32x128xbf16>
    %249 = vector.extract_strided_slice %247 {offsets = [0, 0], sizes = [32, 128], strides = [1, 1]} : vector<32x256xbf16> to vector<32x128xbf16>
    %250 = vector.extract_strided_slice %247 {offsets = [0, 128], sizes = [32, 128], strides = [1, 1]} : vector<32x256xbf16> to vector<32x128xbf16>
    %251 = tpu.concatenate %248, %249, %250 in 0 : vector<32x128xbf16>, vector<32x128xbf16>, vector<32x128xbf16> -> vector<96x128xbf16>
    %c2_98 = arith.constant 2 : index
    %c0_99 = arith.constant 0 : index
    %c0_100 = arith.constant 0 : index
    %252 = vector.load %arg9[%c2_98, %c0_99, %c0_100] : memref<5x32x96xbf16, #tpu.memory_space<vmem>>, vector<1x32x96xbf16>
    %253 = vector.shape_cast %252 : vector<1x32x96xbf16> to vector<32x96xbf16>
    %cst_101 = arith.constant dense<0.000000e+00> : vector<32x128xf32>
    %254 = tpu.matmul %253, %251, %cst_101 {dimension_numbers = #tpu.dot_dimension_numbers<[1], [0], [0], [1], [0, 0, 1, 1], [], []>} : vector<32x96xbf16>, vector<96x128xbf16>, vector<32x128xf32> -> vector<32x128xf32>
    %255 = vector.extract_strided_slice %0 {offsets = [0, 14], sizes = [32, 1], strides = [1, 1]} : vector<32x32xf32> to vector<32x1xf32>
    %256 = vector.broadcast %255 : vector<32x1xf32> to vector<32x128xf32>
    %257 = arith.addf %254, %256 : vector<32x128xf32>
    %258 = arith.negf %257 : vector<32x128xf32>
    %259 = math.exp %258 : vector<32x128xf32>
    %cst_102 = arith.constant 1.000000e+00 : f32
    %260 = vector.broadcast %cst_102 : f32 to vector<32x128xf32>
    %261 = arith.addf %260, %259 : vector<32x128xf32>
    %262 = arith.divf %260, %261 : vector<32x128xf32>
    %263 = arith.mulf %257, %262 : vector<32x128xf32>
    %c2_103 = arith.constant 2 : index
    %c0_104 = arith.constant 0 : index
    %c0_105 = arith.constant 0 : index
    %c0_106 = arith.constant 0 : index
    %264 = vector.load %arg10[%c2_103, %c0_104, %c0_105, %c0_106] : memref<5x5x32x32xbf16, #tpu.memory_space<vmem>>, vector<1x1x32x32xbf16>
    %265 = vector.shape_cast %264 : vector<1x1x32x32xbf16> to vector<32x32xbf16>
    %266 = arith.truncf %263 : vector<32x128xf32> to vector<32x128xbf16>
    %cst_107 = arith.constant dense<0.000000e+00> : vector<32x128xf32>
    %267 = tpu.matmul %265, %266, %cst_107 {dimension_numbers = #tpu.dot_dimension_numbers<[1], [0], [0], [1], [0, 0, 1, 1], [], []>} : vector<32x32xbf16>, vector<32x128xbf16>, vector<32x128xf32> -> vector<32x128xf32>
    %268 = vector.extract_strided_slice %0 {offsets = [0, 15], sizes = [32, 1], strides = [1, 1]} : vector<32x32xf32> to vector<32x1xf32>
    %269 = vector.broadcast %268 : vector<32x1xf32> to vector<32x128xf32>
    %270 = arith.addf %267, %269 : vector<32x128xf32>
    %271 = arith.negf %270 : vector<32x128xf32>
    %272 = math.exp %271 : vector<32x128xf32>
    %cst_108 = arith.constant 1.000000e+00 : f32
    %273 = vector.broadcast %cst_108 : f32 to vector<32x128xf32>
    %274 = arith.addf %273, %272 : vector<32x128xf32>
    %275 = arith.divf %273, %274 : vector<32x128xf32>
    %276 = arith.mulf %270, %275 : vector<32x128xf32>
    %c2_109 = arith.constant 2 : index
    %c1_110 = arith.constant 1 : index
    %c0_111 = arith.constant 0 : index
    %c0_112 = arith.constant 0 : index
    %277 = vector.load %arg10[%c2_109, %c1_110, %c0_111, %c0_112] : memref<5x5x32x32xbf16, #tpu.memory_space<vmem>>, vector<1x1x32x32xbf16>
    %278 = vector.shape_cast %277 : vector<1x1x32x32xbf16> to vector<32x32xbf16>
    %279 = arith.truncf %276 : vector<32x128xf32> to vector<32x128xbf16>
    %cst_113 = arith.constant dense<0.000000e+00> : vector<32x128xf32>
    %280 = tpu.matmul %278, %279, %cst_113 {dimension_numbers = #tpu.dot_dimension_numbers<[1], [0], [0], [1], [0, 0, 1, 1], [], []>} : vector<32x32xbf16>, vector<32x128xbf16>, vector<32x128xf32> -> vector<32x128xf32>
    %281 = vector.extract_strided_slice %0 {offsets = [0, 16], sizes = [32, 1], strides = [1, 1]} : vector<32x32xf32> to vector<32x1xf32>
    %282 = vector.broadcast %281 : vector<32x1xf32> to vector<32x128xf32>
    %283 = arith.addf %280, %282 : vector<32x128xf32>
    %284 = arith.negf %283 : vector<32x128xf32>
    %285 = math.exp %284 : vector<32x128xf32>
    %cst_114 = arith.constant 1.000000e+00 : f32
    %286 = vector.broadcast %cst_114 : f32 to vector<32x128xf32>
    %287 = arith.addf %286, %285 : vector<32x128xf32>
    %288 = arith.divf %286, %287 : vector<32x128xf32>
    %289 = arith.mulf %283, %288 : vector<32x128xf32>
    %c2_115 = arith.constant 2 : index
    %c2_116 = arith.constant 2 : index
    %c0_117 = arith.constant 0 : index
    %c0_118 = arith.constant 0 : index
    %290 = vector.load %arg10[%c2_115, %c2_116, %c0_117, %c0_118] : memref<5x5x32x32xbf16, #tpu.memory_space<vmem>>, vector<1x1x32x32xbf16>
    %291 = vector.shape_cast %290 : vector<1x1x32x32xbf16> to vector<32x32xbf16>
    %292 = arith.truncf %289 : vector<32x128xf32> to vector<32x128xbf16>
    %cst_119 = arith.constant dense<0.000000e+00> : vector<32x128xf32>
    %293 = tpu.matmul %291, %292, %cst_119 {dimension_numbers = #tpu.dot_dimension_numbers<[1], [0], [0], [1], [0, 0, 1, 1], [], []>} : vector<32x32xbf16>, vector<32x128xbf16>, vector<32x128xf32> -> vector<32x128xf32>
    %294 = vector.extract_strided_slice %0 {offsets = [0, 17], sizes = [32, 1], strides = [1, 1]} : vector<32x32xf32> to vector<32x1xf32>
    %295 = vector.broadcast %294 : vector<32x1xf32> to vector<32x128xf32>
    %296 = arith.addf %293, %295 : vector<32x128xf32>
    %297 = arith.negf %296 : vector<32x128xf32>
    %298 = math.exp %297 : vector<32x128xf32>
    %cst_120 = arith.constant 1.000000e+00 : f32
    %299 = vector.broadcast %cst_120 : f32 to vector<32x128xf32>
    %300 = arith.addf %299, %298 : vector<32x128xf32>
    %301 = arith.divf %299, %300 : vector<32x128xf32>
    %302 = arith.mulf %296, %301 : vector<32x128xf32>
    %c2_121 = arith.constant 2 : index
    %c3_122 = arith.constant 3 : index
    %c0_123 = arith.constant 0 : index
    %c0_124 = arith.constant 0 : index
    %303 = vector.load %arg10[%c2_121, %c3_122, %c0_123, %c0_124] : memref<5x5x32x32xbf16, #tpu.memory_space<vmem>>, vector<1x1x32x32xbf16>
    %304 = vector.shape_cast %303 : vector<1x1x32x32xbf16> to vector<32x32xbf16>
    %305 = arith.truncf %302 : vector<32x128xf32> to vector<32x128xbf16>
    %cst_125 = arith.constant dense<0.000000e+00> : vector<32x128xf32>
    %306 = tpu.matmul %304, %305, %cst_125 {dimension_numbers = #tpu.dot_dimension_numbers<[1], [0], [0], [1], [0, 0, 1, 1], [], []>} : vector<32x32xbf16>, vector<32x128xbf16>, vector<32x128xf32> -> vector<32x128xf32>
    %307 = vector.extract_strided_slice %0 {offsets = [0, 18], sizes = [32, 1], strides = [1, 1]} : vector<32x32xf32> to vector<32x1xf32>
    %308 = vector.broadcast %307 : vector<32x1xf32> to vector<32x128xf32>
    %309 = arith.addf %306, %308 : vector<32x128xf32>
    %310 = arith.negf %309 : vector<32x128xf32>
    %311 = math.exp %310 : vector<32x128xf32>
    %cst_126 = arith.constant 1.000000e+00 : f32
    %312 = vector.broadcast %cst_126 : f32 to vector<32x128xf32>
    %313 = arith.addf %312, %311 : vector<32x128xf32>
    %314 = arith.divf %312, %313 : vector<32x128xf32>
    %315 = arith.mulf %309, %314 : vector<32x128xf32>
    %316 = arith.truncf %315 : vector<32x128xf32> to vector<32x128xbf16>
    %cst_127 = arith.constant dense<0.000000e+00> : vector<32x128xf32>
    %317 = tpu.matmul %316, %14, %cst_127 {dimension_numbers = #tpu.dot_dimension_numbers<[1], [0], [0], [1], [0, 0, 1, 1], [], []>} : vector<32x128xbf16>, vector<128x128xbf16>, vector<32x128xf32> -> vector<32x128xf32>
    %c2_128 = arith.constant 2 : index
    %c4_129 = arith.constant 4 : index
    %c0_130 = arith.constant 0 : index
    %c0_131 = arith.constant 0 : index
    %318 = vector.load %arg10[%c2_128, %c4_129, %c0_130, %c0_131] : memref<5x5x32x32xbf16, #tpu.memory_space<vmem>>, vector<1x1x32x32xbf16>
    %319 = vector.shape_cast %318 : vector<1x1x32x32xbf16> to vector<32x32xbf16>
    %320 = arith.truncf %317 : vector<32x128xf32> to vector<32x128xbf16>
    %cst_132 = arith.constant dense<0.000000e+00> : vector<32x128xf32>
    %321 = tpu.matmul %319, %320, %cst_132 {dimension_numbers = #tpu.dot_dimension_numbers<[1], [0], [0], [1], [0, 0, 1, 1], [], []>} : vector<32x32xbf16>, vector<32x128xbf16>, vector<32x128xf32> -> vector<32x128xf32>
    %322 = vector.extract_strided_slice %0 {offsets = [0, 19], sizes = [32, 1], strides = [1, 1]} : vector<32x32xf32> to vector<32x1xf32>
    %323 = vector.broadcast %322 : vector<32x1xf32> to vector<32x128xf32>
    %324 = arith.addf %321, %323 : vector<32x128xf32>
    %325 = arith.negf %324 : vector<32x128xf32>
    %326 = math.exp %325 : vector<32x128xf32>
    %cst_133 = arith.constant 1.000000e+00 : f32
    %327 = vector.broadcast %cst_133 : f32 to vector<32x128xf32>
    %328 = arith.addf %327, %326 : vector<32x128xf32>
    %329 = arith.divf %327, %328 : vector<32x128xf32>
    %330 = arith.mulf %324, %329 : vector<32x128xf32>
    %331 = arith.addf %244, %330 : vector<32x128xf32>
    %332 = arith.truncf %331 : vector<32x128xf32> to vector<32x128xbf16>
    %cst_134 = arith.constant dense<0.000000e+00> : vector<32x256xf32>
    %333 = tpu.matmul %332, %7, %cst_134 {dimension_numbers = #tpu.dot_dimension_numbers<[1], [0], [0], [1], [0, 0, 1, 1], [], []>} : vector<32x128xbf16>, vector<128x256xbf16>, vector<32x256xf32> -> vector<32x256xf32>
    %334 = arith.truncf %333 : vector<32x256xf32> to vector<32x256xbf16>
    %335 = arith.truncf %315 : vector<32x128xf32> to vector<32x128xbf16>
    %336 = vector.extract_strided_slice %334 {offsets = [0, 0], sizes = [32, 128], strides = [1, 1]} : vector<32x256xbf16> to vector<32x128xbf16>
    %337 = vector.extract_strided_slice %334 {offsets = [0, 128], sizes = [32, 128], strides = [1, 1]} : vector<32x256xbf16> to vector<32x128xbf16>
    %338 = tpu.concatenate %335, %336, %337 in 0 : vector<32x128xbf16>, vector<32x128xbf16>, vector<32x128xbf16> -> vector<96x128xbf16>
    %c3_135 = arith.constant 3 : index
    %c0_136 = arith.constant 0 : index
    %c0_137 = arith.constant 0 : index
    %339 = vector.load %arg9[%c3_135, %c0_136, %c0_137] : memref<5x32x96xbf16, #tpu.memory_space<vmem>>, vector<1x32x96xbf16>
    %340 = vector.shape_cast %339 : vector<1x32x96xbf16> to vector<32x96xbf16>
    %cst_138 = arith.constant dense<0.000000e+00> : vector<32x128xf32>
    %341 = tpu.matmul %340, %338, %cst_138 {dimension_numbers = #tpu.dot_dimension_numbers<[1], [0], [0], [1], [0, 0, 1, 1], [], []>} : vector<32x96xbf16>, vector<96x128xbf16>, vector<32x128xf32> -> vector<32x128xf32>
    %342 = vector.extract_strided_slice %0 {offsets = [0, 20], sizes = [32, 1], strides = [1, 1]} : vector<32x32xf32> to vector<32x1xf32>
    %343 = vector.broadcast %342 : vector<32x1xf32> to vector<32x128xf32>
    %344 = arith.addf %341, %343 : vector<32x128xf32>
    %345 = arith.negf %344 : vector<32x128xf32>
    %346 = math.exp %345 : vector<32x128xf32>
    %cst_139 = arith.constant 1.000000e+00 : f32
    %347 = vector.broadcast %cst_139 : f32 to vector<32x128xf32>
    %348 = arith.addf %347, %346 : vector<32x128xf32>
    %349 = arith.divf %347, %348 : vector<32x128xf32>
    %350 = arith.mulf %344, %349 : vector<32x128xf32>
    %c3_140 = arith.constant 3 : index
    %c0_141 = arith.constant 0 : index
    %c0_142 = arith.constant 0 : index
    %c0_143 = arith.constant 0 : index
    %351 = vector.load %arg10[%c3_140, %c0_141, %c0_142, %c0_143] : memref<5x5x32x32xbf16, #tpu.memory_space<vmem>>, vector<1x1x32x32xbf16>
    %352 = vector.shape_cast %351 : vector<1x1x32x32xbf16> to vector<32x32xbf16>
    %353 = arith.truncf %350 : vector<32x128xf32> to vector<32x128xbf16>
    %cst_144 = arith.constant dense<0.000000e+00> : vector<32x128xf32>
    %354 = tpu.matmul %352, %353, %cst_144 {dimension_numbers = #tpu.dot_dimension_numbers<[1], [0], [0], [1], [0, 0, 1, 1], [], []>} : vector<32x32xbf16>, vector<32x128xbf16>, vector<32x128xf32> -> vector<32x128xf32>
    %355 = vector.extract_strided_slice %0 {offsets = [0, 21], sizes = [32, 1], strides = [1, 1]} : vector<32x32xf32> to vector<32x1xf32>
    %356 = vector.broadcast %355 : vector<32x1xf32> to vector<32x128xf32>
    %357 = arith.addf %354, %356 : vector<32x128xf32>
    %358 = arith.negf %357 : vector<32x128xf32>
    %359 = math.exp %358 : vector<32x128xf32>
    %cst_145 = arith.constant 1.000000e+00 : f32
    %360 = vector.broadcast %cst_145 : f32 to vector<32x128xf32>
    %361 = arith.addf %360, %359 : vector<32x128xf32>
    %362 = arith.divf %360, %361 : vector<32x128xf32>
    %363 = arith.mulf %357, %362 : vector<32x128xf32>
    %c3_146 = arith.constant 3 : index
    %c1_147 = arith.constant 1 : index
    %c0_148 = arith.constant 0 : index
    %c0_149 = arith.constant 0 : index
    %364 = vector.load %arg10[%c3_146, %c1_147, %c0_148, %c0_149] : memref<5x5x32x32xbf16, #tpu.memory_space<vmem>>, vector<1x1x32x32xbf16>
    %365 = vector.shape_cast %364 : vector<1x1x32x32xbf16> to vector<32x32xbf16>
    %366 = arith.truncf %363 : vector<32x128xf32> to vector<32x128xbf16>
    %cst_150 = arith.constant dense<0.000000e+00> : vector<32x128xf32>
    %367 = tpu.matmul %365, %366, %cst_150 {dimension_numbers = #tpu.dot_dimension_numbers<[1], [0], [0], [1], [0, 0, 1, 1], [], []>} : vector<32x32xbf16>, vector<32x128xbf16>, vector<32x128xf32> -> vector<32x128xf32>
    %368 = vector.extract_strided_slice %0 {offsets = [0, 22], sizes = [32, 1], strides = [1, 1]} : vector<32x32xf32> to vector<32x1xf32>
    %369 = vector.broadcast %368 : vector<32x1xf32> to vector<32x128xf32>
    %370 = arith.addf %367, %369 : vector<32x128xf32>
    %371 = arith.negf %370 : vector<32x128xf32>
    %372 = math.exp %371 : vector<32x128xf32>
    %cst_151 = arith.constant 1.000000e+00 : f32
    %373 = vector.broadcast %cst_151 : f32 to vector<32x128xf32>
    %374 = arith.addf %373, %372 : vector<32x128xf32>
    %375 = arith.divf %373, %374 : vector<32x128xf32>
    %376 = arith.mulf %370, %375 : vector<32x128xf32>
    %c3_152 = arith.constant 3 : index
    %c2_153 = arith.constant 2 : index
    %c0_154 = arith.constant 0 : index
    %c0_155 = arith.constant 0 : index
    %377 = vector.load %arg10[%c3_152, %c2_153, %c0_154, %c0_155] : memref<5x5x32x32xbf16, #tpu.memory_space<vmem>>, vector<1x1x32x32xbf16>
    %378 = vector.shape_cast %377 : vector<1x1x32x32xbf16> to vector<32x32xbf16>
    %379 = arith.truncf %376 : vector<32x128xf32> to vector<32x128xbf16>
    %cst_156 = arith.constant dense<0.000000e+00> : vector<32x128xf32>
    %380 = tpu.matmul %378, %379, %cst_156 {dimension_numbers = #tpu.dot_dimension_numbers<[1], [0], [0], [1], [0, 0, 1, 1], [], []>} : vector<32x32xbf16>, vector<32x128xbf16>, vector<32x128xf32> -> vector<32x128xf32>
    %381 = vector.extract_strided_slice %0 {offsets = [0, 23], sizes = [32, 1], strides = [1, 1]} : vector<32x32xf32> to vector<32x1xf32>
    %382 = vector.broadcast %381 : vector<32x1xf32> to vector<32x128xf32>
    %383 = arith.addf %380, %382 : vector<32x128xf32>
    %384 = arith.negf %383 : vector<32x128xf32>
    %385 = math.exp %384 : vector<32x128xf32>
    %cst_157 = arith.constant 1.000000e+00 : f32
    %386 = vector.broadcast %cst_157 : f32 to vector<32x128xf32>
    %387 = arith.addf %386, %385 : vector<32x128xf32>
    %388 = arith.divf %386, %387 : vector<32x128xf32>
    %389 = arith.mulf %383, %388 : vector<32x128xf32>
    %c3_158 = arith.constant 3 : index
    %c3_159 = arith.constant 3 : index
    %c0_160 = arith.constant 0 : index
    %c0_161 = arith.constant 0 : index
    %390 = vector.load %arg10[%c3_158, %c3_159, %c0_160, %c0_161] : memref<5x5x32x32xbf16, #tpu.memory_space<vmem>>, vector<1x1x32x32xbf16>
    %391 = vector.shape_cast %390 : vector<1x1x32x32xbf16> to vector<32x32xbf16>
    %392 = arith.truncf %389 : vector<32x128xf32> to vector<32x128xbf16>
    %cst_162 = arith.constant dense<0.000000e+00> : vector<32x128xf32>
    %393 = tpu.matmul %391, %392, %cst_162 {dimension_numbers = #tpu.dot_dimension_numbers<[1], [0], [0], [1], [0, 0, 1, 1], [], []>} : vector<32x32xbf16>, vector<32x128xbf16>, vector<32x128xf32> -> vector<32x128xf32>
    %394 = vector.extract_strided_slice %0 {offsets = [0, 24], sizes = [32, 1], strides = [1, 1]} : vector<32x32xf32> to vector<32x1xf32>
    %395 = vector.broadcast %394 : vector<32x1xf32> to vector<32x128xf32>
    %396 = arith.addf %393, %395 : vector<32x128xf32>
    %397 = arith.negf %396 : vector<32x128xf32>
    %398 = math.exp %397 : vector<32x128xf32>
    %cst_163 = arith.constant 1.000000e+00 : f32
    %399 = vector.broadcast %cst_163 : f32 to vector<32x128xf32>
    %400 = arith.addf %399, %398 : vector<32x128xf32>
    %401 = arith.divf %399, %400 : vector<32x128xf32>
    %402 = arith.mulf %396, %401 : vector<32x128xf32>
    %403 = arith.truncf %402 : vector<32x128xf32> to vector<32x128xbf16>
    %cst_164 = arith.constant dense<0.000000e+00> : vector<32x128xf32>
    %404 = tpu.matmul %403, %14, %cst_164 {dimension_numbers = #tpu.dot_dimension_numbers<[1], [0], [0], [1], [0, 0, 1, 1], [], []>} : vector<32x128xbf16>, vector<128x128xbf16>, vector<32x128xf32> -> vector<32x128xf32>
    %c3_165 = arith.constant 3 : index
    %c4_166 = arith.constant 4 : index
    %c0_167 = arith.constant 0 : index
    %c0_168 = arith.constant 0 : index
    %405 = vector.load %arg10[%c3_165, %c4_166, %c0_167, %c0_168] : memref<5x5x32x32xbf16, #tpu.memory_space<vmem>>, vector<1x1x32x32xbf16>
    %406 = vector.shape_cast %405 : vector<1x1x32x32xbf16> to vector<32x32xbf16>
    %407 = arith.truncf %404 : vector<32x128xf32> to vector<32x128xbf16>
    %cst_169 = arith.constant dense<0.000000e+00> : vector<32x128xf32>
    %408 = tpu.matmul %406, %407, %cst_169 {dimension_numbers = #tpu.dot_dimension_numbers<[1], [0], [0], [1], [0, 0, 1, 1], [], []>} : vector<32x32xbf16>, vector<32x128xbf16>, vector<32x128xf32> -> vector<32x128xf32>
    %409 = vector.extract_strided_slice %0 {offsets = [0, 25], sizes = [32, 1], strides = [1, 1]} : vector<32x32xf32> to vector<32x1xf32>
    %410 = vector.broadcast %409 : vector<32x1xf32> to vector<32x128xf32>
    %411 = arith.addf %408, %410 : vector<32x128xf32>
    %412 = arith.negf %411 : vector<32x128xf32>
    %413 = math.exp %412 : vector<32x128xf32>
    %cst_170 = arith.constant 1.000000e+00 : f32
    %414 = vector.broadcast %cst_170 : f32 to vector<32x128xf32>
    %415 = arith.addf %414, %413 : vector<32x128xf32>
    %416 = arith.divf %414, %415 : vector<32x128xf32>
    %417 = arith.mulf %411, %416 : vector<32x128xf32>
    %418 = arith.addf %331, %417 : vector<32x128xf32>
    %419 = arith.truncf %418 : vector<32x128xf32> to vector<32x128xbf16>
    %cst_171 = arith.constant dense<0.000000e+00> : vector<32x256xf32>
    %420 = tpu.matmul %419, %7, %cst_171 {dimension_numbers = #tpu.dot_dimension_numbers<[1], [0], [0], [1], [0, 0, 1, 1], [], []>} : vector<32x128xbf16>, vector<128x256xbf16>, vector<32x256xf32> -> vector<32x256xf32>
    %421 = arith.truncf %420 : vector<32x256xf32> to vector<32x256xbf16>
    %422 = arith.truncf %402 : vector<32x128xf32> to vector<32x128xbf16>
    %423 = vector.extract_strided_slice %421 {offsets = [0, 0], sizes = [32, 128], strides = [1, 1]} : vector<32x256xbf16> to vector<32x128xbf16>
    %424 = vector.extract_strided_slice %421 {offsets = [0, 128], sizes = [32, 128], strides = [1, 1]} : vector<32x256xbf16> to vector<32x128xbf16>
    %425 = tpu.concatenate %422, %423, %424 in 0 : vector<32x128xbf16>, vector<32x128xbf16>, vector<32x128xbf16> -> vector<96x128xbf16>
    %c4_172 = arith.constant 4 : index
    %c0_173 = arith.constant 0 : index
    %c0_174 = arith.constant 0 : index
    %426 = vector.load %arg9[%c4_172, %c0_173, %c0_174] : memref<5x32x96xbf16, #tpu.memory_space<vmem>>, vector<1x32x96xbf16>
    %427 = vector.shape_cast %426 : vector<1x32x96xbf16> to vector<32x96xbf16>
    %cst_175 = arith.constant dense<0.000000e+00> : vector<32x128xf32>
    %428 = tpu.matmul %427, %425, %cst_175 {dimension_numbers = #tpu.dot_dimension_numbers<[1], [0], [0], [1], [0, 0, 1, 1], [], []>} : vector<32x96xbf16>, vector<96x128xbf16>, vector<32x128xf32> -> vector<32x128xf32>
    %429 = vector.extract_strided_slice %0 {offsets = [0, 26], sizes = [32, 1], strides = [1, 1]} : vector<32x32xf32> to vector<32x1xf32>
    %430 = vector.broadcast %429 : vector<32x1xf32> to vector<32x128xf32>
    %431 = arith.addf %428, %430 : vector<32x128xf32>
    %432 = arith.negf %431 : vector<32x128xf32>
    %433 = math.exp %432 : vector<32x128xf32>
    %cst_176 = arith.constant 1.000000e+00 : f32
    %434 = vector.broadcast %cst_176 : f32 to vector<32x128xf32>
    %435 = arith.addf %434, %433 : vector<32x128xf32>
    %436 = arith.divf %434, %435 : vector<32x128xf32>
    %437 = arith.mulf %431, %436 : vector<32x128xf32>
    %c4_177 = arith.constant 4 : index
    %c0_178 = arith.constant 0 : index
    %c0_179 = arith.constant 0 : index
    %c0_180 = arith.constant 0 : index
    %438 = vector.load %arg10[%c4_177, %c0_178, %c0_179, %c0_180] : memref<5x5x32x32xbf16, #tpu.memory_space<vmem>>, vector<1x1x32x32xbf16>
    %439 = vector.shape_cast %438 : vector<1x1x32x32xbf16> to vector<32x32xbf16>
    %440 = arith.truncf %437 : vector<32x128xf32> to vector<32x128xbf16>
    %cst_181 = arith.constant dense<0.000000e+00> : vector<32x128xf32>
    %441 = tpu.matmul %439, %440, %cst_181 {dimension_numbers = #tpu.dot_dimension_numbers<[1], [0], [0], [1], [0, 0, 1, 1], [], []>} : vector<32x32xbf16>, vector<32x128xbf16>, vector<32x128xf32> -> vector<32x128xf32>
    %442 = vector.extract_strided_slice %0 {offsets = [0, 27], sizes = [32, 1], strides = [1, 1]} : vector<32x32xf32> to vector<32x1xf32>
    %443 = vector.broadcast %442 : vector<32x1xf32> to vector<32x128xf32>
    %444 = arith.addf %441, %443 : vector<32x128xf32>
    %445 = arith.negf %444 : vector<32x128xf32>
    %446 = math.exp %445 : vector<32x128xf32>
    %cst_182 = arith.constant 1.000000e+00 : f32
    %447 = vector.broadcast %cst_182 : f32 to vector<32x128xf32>
    %448 = arith.addf %447, %446 : vector<32x128xf32>
    %449 = arith.divf %447, %448 : vector<32x128xf32>
    %450 = arith.mulf %444, %449 : vector<32x128xf32>
    %c4_183 = arith.constant 4 : index
    %c1_184 = arith.constant 1 : index
    %c0_185 = arith.constant 0 : index
    %c0_186 = arith.constant 0 : index
    %451 = vector.load %arg10[%c4_183, %c1_184, %c0_185, %c0_186] : memref<5x5x32x32xbf16, #tpu.memory_space<vmem>>, vector<1x1x32x32xbf16>
    %452 = vector.shape_cast %451 : vector<1x1x32x32xbf16> to vector<32x32xbf16>
    %453 = arith.truncf %450 : vector<32x128xf32> to vector<32x128xbf16>
    %cst_187 = arith.constant dense<0.000000e+00> : vector<32x128xf32>
    %454 = tpu.matmul %452, %453, %cst_187 {dimension_numbers = #tpu.dot_dimension_numbers<[1], [0], [0], [1], [0, 0, 1, 1], [], []>} : vector<32x32xbf16>, vector<32x128xbf16>, vector<32x128xf32> -> vector<32x128xf32>
    %455 = vector.extract_strided_slice %0 {offsets = [0, 28], sizes = [32, 1], strides = [1, 1]} : vector<32x32xf32> to vector<32x1xf32>
    %456 = vector.broadcast %455 : vector<32x1xf32> to vector<32x128xf32>
    %457 = arith.addf %454, %456 : vector<32x128xf32>
    %458 = arith.negf %457 : vector<32x128xf32>
    %459 = math.exp %458 : vector<32x128xf32>
    %cst_188 = arith.constant 1.000000e+00 : f32
    %460 = vector.broadcast %cst_188 : f32 to vector<32x128xf32>
    %461 = arith.addf %460, %459 : vector<32x128xf32>
    %462 = arith.divf %460, %461 : vector<32x128xf32>
    %463 = arith.mulf %457, %462 : vector<32x128xf32>
    %c4_189 = arith.constant 4 : index
    %c2_190 = arith.constant 2 : index
    %c0_191 = arith.constant 0 : index
    %c0_192 = arith.constant 0 : index
    %464 = vector.load %arg10[%c4_189, %c2_190, %c0_191, %c0_192] : memref<5x5x32x32xbf16, #tpu.memory_space<vmem>>, vector<1x1x32x32xbf16>
    %465 = vector.shape_cast %464 : vector<1x1x32x32xbf16> to vector<32x32xbf16>
    %466 = arith.truncf %463 : vector<32x128xf32> to vector<32x128xbf16>
    %cst_193 = arith.constant dense<0.000000e+00> : vector<32x128xf32>
    %467 = tpu.matmul %465, %466, %cst_193 {dimension_numbers = #tpu.dot_dimension_numbers<[1], [0], [0], [1], [0, 0, 1, 1], [], []>} : vector<32x32xbf16>, vector<32x128xbf16>, vector<32x128xf32> -> vector<32x128xf32>
    %468 = vector.extract_strided_slice %0 {offsets = [0, 29], sizes = [32, 1], strides = [1, 1]} : vector<32x32xf32> to vector<32x1xf32>
    %469 = vector.broadcast %468 : vector<32x1xf32> to vector<32x128xf32>
    %470 = arith.addf %467, %469 : vector<32x128xf32>
    %471 = arith.negf %470 : vector<32x128xf32>
    %472 = math.exp %471 : vector<32x128xf32>
    %cst_194 = arith.constant 1.000000e+00 : f32
    %473 = vector.broadcast %cst_194 : f32 to vector<32x128xf32>
    %474 = arith.addf %473, %472 : vector<32x128xf32>
    %475 = arith.divf %473, %474 : vector<32x128xf32>
    %476 = arith.mulf %470, %475 : vector<32x128xf32>
    %c4_195 = arith.constant 4 : index
    %c3_196 = arith.constant 3 : index
    %c0_197 = arith.constant 0 : index
    %c0_198 = arith.constant 0 : index
    %477 = vector.load %arg10[%c4_195, %c3_196, %c0_197, %c0_198] : memref<5x5x32x32xbf16, #tpu.memory_space<vmem>>, vector<1x1x32x32xbf16>
    %478 = vector.shape_cast %477 : vector<1x1x32x32xbf16> to vector<32x32xbf16>
    %479 = arith.truncf %476 : vector<32x128xf32> to vector<32x128xbf16>
    %cst_199 = arith.constant dense<0.000000e+00> : vector<32x128xf32>
    %480 = tpu.matmul %478, %479, %cst_199 {dimension_numbers = #tpu.dot_dimension_numbers<[1], [0], [0], [1], [0, 0, 1, 1], [], []>} : vector<32x32xbf16>, vector<32x128xbf16>, vector<32x128xf32> -> vector<32x128xf32>
    %481 = vector.extract_strided_slice %0 {offsets = [0, 30], sizes = [32, 1], strides = [1, 1]} : vector<32x32xf32> to vector<32x1xf32>
    %482 = vector.broadcast %481 : vector<32x1xf32> to vector<32x128xf32>
    %483 = arith.addf %480, %482 : vector<32x128xf32>
    %484 = arith.negf %483 : vector<32x128xf32>
    %485 = math.exp %484 : vector<32x128xf32>
    %cst_200 = arith.constant 1.000000e+00 : f32
    %486 = vector.broadcast %cst_200 : f32 to vector<32x128xf32>
    %487 = arith.addf %486, %485 : vector<32x128xf32>
    %488 = arith.divf %486, %487 : vector<32x128xf32>
    %489 = arith.mulf %483, %488 : vector<32x128xf32>
    %490 = arith.truncf %489 : vector<32x128xf32> to vector<32x128xbf16>
    %cst_201 = arith.constant dense<0.000000e+00> : vector<32x128xf32>
    %491 = tpu.matmul %490, %14, %cst_201 {dimension_numbers = #tpu.dot_dimension_numbers<[1], [0], [0], [1], [0, 0, 1, 1], [], []>} : vector<32x128xbf16>, vector<128x128xbf16>, vector<32x128xf32> -> vector<32x128xf32>
    %c4_202 = arith.constant 4 : index
    %c4_203 = arith.constant 4 : index
    %c0_204 = arith.constant 0 : index
    %c0_205 = arith.constant 0 : index
    %492 = vector.load %arg10[%c4_202, %c4_203, %c0_204, %c0_205] : memref<5x5x32x32xbf16, #tpu.memory_space<vmem>>, vector<1x1x32x32xbf16>
    %493 = vector.shape_cast %492 : vector<1x1x32x32xbf16> to vector<32x32xbf16>
    %494 = arith.truncf %491 : vector<32x128xf32> to vector<32x128xbf16>
    %cst_206 = arith.constant dense<0.000000e+00> : vector<32x128xf32>
    %495 = tpu.matmul %493, %494, %cst_206 {dimension_numbers = #tpu.dot_dimension_numbers<[1], [0], [0], [1], [0, 0, 1, 1], [], []>} : vector<32x32xbf16>, vector<32x128xbf16>, vector<32x128xf32> -> vector<32x128xf32>
    %496 = vector.extract_strided_slice %0 {offsets = [0, 31], sizes = [32, 1], strides = [1, 1]} : vector<32x32xf32> to vector<32x1xf32>
    %497 = vector.broadcast %496 : vector<32x1xf32> to vector<32x128xf32>
    %498 = arith.addf %495, %497 : vector<32x128xf32>
    %499 = arith.negf %498 : vector<32x128xf32>
    %500 = math.exp %499 : vector<32x128xf32>
    %cst_207 = arith.constant 1.000000e+00 : f32
    %501 = vector.broadcast %cst_207 : f32 to vector<32x128xf32>
    %502 = arith.addf %501, %500 : vector<32x128xf32>
    %503 = arith.divf %501, %502 : vector<32x128xf32>
    %504 = arith.mulf %498, %503 : vector<32x128xf32>
    %505 = arith.addf %418, %504 : vector<32x128xf32>
    %506 = arith.truncf %505 : vector<32x128xf32> to vector<32x128xbf16>
    %cst_208 = arith.constant dense<0.000000e+00> : vector<32x128xf32>
    %507 = tpu.matmul %506, %26, %cst_208 {dimension_numbers = #tpu.dot_dimension_numbers<[1], [0], [0], [1], [0, 0, 1, 1], [], []>} : vector<32x128xbf16>, vector<128x128xbf16>, vector<32x128xf32> -> vector<32x128xf32>
    %508 = vector.broadcast %25 : vector<1x128xf32> to vector<32x128xf32>
    %509 = arith.mulf %507, %508 : vector<32x128xf32>
    %c0_209 = arith.constant 0 : index
    %c0_210 = arith.constant 0 : index
    %510 = vector.load %arg12[%c0_209, %c0_210] : memref<8x32xbf16, #tpu.memory_space<vmem>>, vector<8x32xbf16>
    %511 = arith.truncf %509 : vector<32x128xf32> to vector<32x128xbf16>
    %cst_211 = arith.constant dense<0.000000e+00> : vector<8x128xf32>
    %512 = tpu.matmul %510, %511, %cst_211 {dimension_numbers = #tpu.dot_dimension_numbers<[1], [0], [0], [1], [0, 0, 1, 1], [], []>} : vector<8x32xbf16>, vector<32x128xbf16>, vector<8x128xf32> -> vector<8x128xf32>
    %c0_212 = arith.constant 0 : index
    %c0_213 = arith.constant 0 : index
    %513 = vector.load %arg13[%c0_212, %c0_213] : memref<8x1xf32, #tpu.memory_space<vmem>>, vector<8x1xf32>
    %514 = vector.broadcast %513 : vector<8x1xf32> to vector<8x128xf32>
    %515 = arith.addf %512, %514 : vector<8x128xf32>
    %c0_214 = arith.constant 0 : index
    %c0_215 = arith.constant 0 : index
    %516 = vector.load %arg14[%c0_214, %c0_215] : memref<8x128xf32, #tpu.memory_space<vmem>>, vector<8x128xf32>
    tpu.vector_store %arg14[%c0_214, %c0_215], %515 {strides = array<i32>} : memref<8x128xf32, #tpu.memory_space<vmem>>, vector<8x128xf32>,
    return
  }
  func.func @transform_0(%arg0: i32) -> (i32, i32) {
    %c0_i32 = arith.constant 0 : i32
    %c0_i32_0 = arith.constant 0 : i32
    %c0_i32_1 = arith.constant 0 : i32
    return %c0_i32, %c0_i32_0 : i32, i32
  }
  func.func @transform_1(%arg0: i32) -> (i32, i32) {
    %c0_i32 = arith.constant 0 : i32
    %c0_i32_0 = arith.constant 0 : i32
    %c0_i32_1 = arith.constant 0 : i32
    return %c0_i32, %c0_i32_0 : i32, i32
  }
  func.func @transform_2(%arg0: i32) -> (i32, i32) {
    %c0_i32 = arith.constant 0 : i32
    %c0_i32_0 = arith.constant 0 : i32
    %c0_i32_1 = arith.constant 0 : i32
    return %c0_i32, %c0_i32_0 : i32, i32
  }
  func.func @transform_3(%arg0: i32) -> (i32, i32) {
    %c0_i32 = arith.constant 0 : i32
    %c0_i32_0 = arith.constant 0 : i32
    %c0_i32_1 = arith.constant 0 : i32
    return %c0_i32, %c0_i32_0 : i32, i32
  }
  func.func @transform_4(%arg0: i32) -> (i32, i32) {
    %c0_i32 = arith.constant 0 : i32
    %c0_i32_0 = arith.constant 0 : i32
    %c0_i32_1 = arith.constant 0 : i32
    return %c0_i32, %c0_i32_0 : i32, i32
  }
  func.func @transform_5(%arg0: i32) -> (i32, i32) {
    %c0_i32 = arith.constant 0 : i32
    %c0_i32_0 = arith.constant 0 : i32
    %c0_i32_1 = arith.constant 0 : i32
    return %c0_i32, %c0_i32_0 : i32, i32
  }
  func.func @transform_6(%arg0: i32) -> (i32, i32) {
    %c0_i32 = arith.constant 0 : i32
    %c0_i32_0 = arith.constant 0 : i32
    %c0_i32_1 = arith.constant 0 : i32
    return %c0_i32, %c0_i32_0 : i32, i32
  }
  func.func @transform_7(%arg0: i32) -> (i32, i32) {
    %c0_i32 = arith.constant 0 : i32
    %c0_i32_0 = arith.constant 0 : i32
    %c0_i32_1 = arith.constant 0 : i32
    return %c0_i32, %c0_i32_0 : i32, i32
  }
  func.func @transform_8(%arg0: i32) -> (i32, i32, i32) {
    %c0_i32 = arith.constant 0 : i32
    %c0_i32_0 = arith.constant 0 : i32
    %c0_i32_1 = arith.constant 0 : i32
    %c0_i32_2 = arith.constant 0 : i32
    return %c0_i32, %c0_i32_0, %c0_i32_1 : i32, i32, i32
  }
  func.func @transform_9(%arg0: i32) -> (i32, i32, i32, i32) {
    %c0_i32 = arith.constant 0 : i32
    %c0_i32_0 = arith.constant 0 : i32
    %c0_i32_1 = arith.constant 0 : i32
    %c0_i32_2 = arith.constant 0 : i32
    %c0_i32_3 = arith.constant 0 : i32
    return %c0_i32, %c0_i32_0, %c0_i32_1, %c0_i32_2 : i32, i32, i32, i32
  }
  func.func @transform_10(%arg0: i32) -> (i32, i32) {
    %c0_i32 = arith.constant 0 : i32
    %c0_i32_0 = arith.constant 0 : i32
    %c0_i32_1 = arith.constant 0 : i32
    return %c0_i32, %c0_i32_0 : i32, i32
  }
  func.func @transform_11(%arg0: i32) -> (i32, i32) {
    %c0_i32 = arith.constant 0 : i32
    %c0_i32_0 = arith.constant 0 : i32
    %c0_i32_1 = arith.constant 0 : i32
    return %c0_i32, %c0_i32_0 : i32, i32
  }
  func.func @transform_12(%arg0: i32) -> (i32, i32) {
    %c0_i32 = arith.constant 0 : i32
    %c0_i32_0 = arith.constant 0 : i32
    %c0_i32_1 = arith.constant 0 : i32
    return %c0_i32, %c0_i32_0 : i32, i32
  }
  func.func @transform_13(%arg0: i32) -> (i32, i32) {
    %c0_i32 = arith.constant 0 : i32
    %c0_i32_0 = arith.constant 0 : i32
    %c0_i32_1 = arith.constant 0 : i32
    return %c0_i32, %c0_i32_0 : i32, i32
  }
}

</mosaic_0001>

<bundles_post_ra>
// kernel: cogn_forward.1
= control target key start
LH: loop header
LB: loop body
LE: loop exit
PB: predicated region body
PF: predicated region fallthrough
CT: control target
= control target key end

     0   :  { %18 = vsyncpa [#allocation3], 0  ;;  %s6980_s25 = smov [#allocation2]   ;;  %s8651_s0 = inlined_call_operand.vmem [shape: s32[1,128], index: 0, kind: input, shape index: {}]   ;;  %s8652_s1 = inlined_call_operand.vmem [shape: f32[8,128], index: 1, kind: input, shape index: {}]   ;;  %s8653_s2 = inlined_call_operand.vmem [shape: s32[1,256], index: 2, kind: input, shape index: {}]   ;;  %s8654_s3 = inlined_call_operand.vmem [shape: s32[128,1], index: 3, kind: input, shape index: {}]   ;;  %s8655_s4 = inlined_call_operand.vmem [shape: s32[128,1], index: 4, kind: input, shape index: {}]   ;;  %s8656_s5 = inlined_call_operand.vmem [shape: bf16[32,10], index: 5, kind: input, shape index: {}]   ;;  %s8657_s6 = inlined_call_operand.vmem [shape: bf16[32,32], index: 6, kind: input, shape index: {}]   ;;  %s8658_s7 = inlined_call_operand.vmem [shape: bf16[32,32], index: 7, kind: input, shape index: {}]   ;;  %s8659_s8 = inlined_call_operand.vmem [shape: bf16[5,32,96], index: 8, kind: input, shape index: {}]   ;;  %s8660_s9 = inlined_call_operand.hbm [shape: bf16[5,5,32,32], index: 9, kind: input, shape index: {}]   ;;  %s8661_s10 = inlined_call_operand.vmem [shape: f32[32,32], index: 10, kind: input, shape index: {}]   ;;  %s8662_s11 = inlined_call_operand.vmem [shape: bf16[8,32], index: 11, kind: input, shape index: {}]   ;;  %s8663_s12 = inlined_call_operand.vmem [shape: f32[8,1], index: 12, kind: input, shape index: {}]   ;;  %s8664_s13 = inlined_call_operand.vmem [shape: f32[8,128], index: 13, kind: output, shape index: {}]  }
   0x1   :  { %s42_s26 = sshll.u32 %s6980_s25, 4  ;;  %s43_s26 = int_to_ptr.vmem [resolvable:$true] %s42_s26 }
   0x2   :  { %s6966_s27 = scalar_lea.vmem %s43_s26, 6400  ;;  %p6971_p1 = scmp.lt.s32.totalorder %s43_s26, %s43_s26 }
   0x3   :  { %p6967_p0 = scmp.ne.s32.totalorder %s43_s26, %s6966_s27  ;;  %p6972_p2 = scmp.lt.s32.totalorder %s6966_s27, %s6966_s27 }
   0x5   :  { %p6973_p3 = por %p6972_p2, %p6971_p1 }
   0x7   :  { %p6974_p4 = pnand %p6973_p3, %p6967_p0 }
   0x9   :  { %6977 = shalt.err (!%p6974_p4)
}
   0xa   :  { %s6981_s28 = smov 64   ;;  %s6982_s29 = smov 4  }
   0xb   :  { %48 = dma.hbm_to_vmem [thread:$0]  %s8660_s9, 6400, %s43_s26, [#allocation3], %s6981_s28, %s6981_s28, %s6982_s29  }
   0xc   :  { %6978 = dma.done.wait [#allocation3], 6400  }
   0xd   :  { %6979 = vsyncadd [#allocation3], 4294960896  ;;  %v63_v0 = vlaneseq  ;;  %v6983_v1 = vmov 0.0   ;;  %vm622_vm0 = vcmask 1044480   ;;  %vm615_vm1 = vcmask 80896   ;;  %v6384_v8 = vld [vmem:[%s8656_s5] sm:$0xff]  }
   0xe   :  { %543 = vmatprep.mubr.f32.mxu0 %v6983_v1  ;;  %v5072_v7 = vld [vmem:[%s8651_s0] ss:$0 sm:$0xff]  ;;  %5848 = vmatprep.mubr.msk.bf16.mxu1 %vm615_vm1, %v6384_v8  ;;  %v6385_v21 = vld [vmem:[%s8656_s5 + $0x8] sm:$0xff]   ;;  %v6984_v22 = vmov 1.0   ;;  %v8735_v24 = vmov 0  ;;  %v8737_v27 = vmov 0 }
   0xf   :  { %v7094_v2 = vshrl.u32 %v63_v0, 7  ;;  %v80_v12 = vld [vmem:[%s8653_s2] sm:$0x3]  ;;  %v8739_v28 = vmov 0  ;;  %v8745_v35 = vmov 0  ;;  %v8747_v36 = vmov 0 }
  0x10   :  { %v8749_v39 = vmov 0  ;;  %v8751_v40 = vmov 0  ;;  %v8754_v41 = vmov 0  ;;  %v8757_v42 = vmov 0  ;;  %v478_v47 = vld [vmem:[%s8652_s1] sm:$0xff]  ;;  %v7414_v50 = vld [vmem:[%s8661_s10 + $0x10] sm:$0xff] }
  0x11   :  { %v7097_v3 = vadd.s32 8, %v7094_v2  ;;  %v78_v4 = vadd.s32 112, %v7094_v2  ;;  %v87_v5 = vsub.s32 1, %v7094_v2  ;;  %v83_v6 = vsub.s32 0, %v7094_v2  ;;  %v6386_v48 = vld [vmem:[%s8657_s6] sm:$0xff]   ;;  %v7423_v52 = vld [vmem:[%s8661_s10 + $0x8] sm:$0xff] }
  0x12   :  { %vm471_vm2 = vcmp.eq.s32.totalorder %v5072_v7, %v7094_v2  ;;  %v79_v9 = vadd.s32 120, %v7094_v2  ;;  %v77_v13 = vadd.s32 104, %v7094_v2  ;;  %v76_v17 = vadd.s32 96, %v7094_v2  ;;  %v7409_v49 = vld [vmem:[%s8661_s10] sm:$0xff]  ;;  %v7429_v53 = vld [vmem:[%s8661_s10 + $0x18] sm:$0xff]  ;;  %v6387_v60 = vld [vmem:[%s8657_s6 + $0x8] sm:$0xff]  }
  0x13   :  { %vm472_vm3 = vcmp.eq.s32.totalorder %v5072_v7, %v7097_v3  ;;  %v5073_v10 = vsel %vm471_vm2, 1.0, %v6983_v1  ;;  %v7118_v15 = vrot.slane %v80_v12, %v87_v5  ;;  %v7120_v16 = vrot.slane %v80_v12, %v83_v6  ;;  %v6388_v61 = vld [vmem:[%s8658_s7] sm:$0xff]  }
  0x14   :  { %v5074_v11 = vsel %vm472_vm3, 1.0, %v6983_v1  ;;  %v75_v18 = vadd.s32 88, %v7094_v2  ;;  %v74_v19 = vadd.s32 80, %v7094_v2  ;;  %v73_v25 = vadd.s32 72, %v7094_v2 }
  0x15   :  { %v477_v14 = vpack.c.bf16 %v5074_v11, %v5073_v10  ;;  %vm118_vm4 = vcmp.eq.s32.totalorder %v7118_v15, %v78_v4  ;;  %vm120_vm5 = vcmp.eq.s32.totalorder %v7118_v15, %v79_v9  ;;  %vm117_vm7 = vcmp.eq.s32.totalorder %v7120_v16, %v78_v4 }
  0x16   :  { %5075 = vmatprep.subr.msk.mxu0 %vm120_vm5, %v6984_v22  ;;  %vm7133_vm6 = vmpackc.low %vm120_vm5, %vm118_vm4  ;;  %vm119_vm8 = vcmp.eq.s32.totalorder %v7120_v16, %v79_v9  ;;  %vm116_vm10 = vcmp.eq.s32.totalorder %v7118_v15, %v77_v13  ;;  %vm114_vm11 = vcmp.eq.s32.totalorder %v7118_v15, %v76_v17  ;;  %v72_v26 = vadd.s32 64, %v7094_v2 }
  0x17   :  { %6276 = vmatprep.subr.msk.bf16.mxu1 %vm622_vm0, %v477_v14  ;;  %v624_v20 = vsel %vm622_vm0, %v477_v14, 0  ;;  %5076 = vmatpush1.msk.msra.mxu0 %vm119_vm8, %v6984_v22  ;;  %vm7140_vm9 = vmpackc.low %vm119_vm8, %vm117_vm7  ;;  %vm115_vm12 = vcmp.eq.s32.totalorder %v7120_v16, %v77_v13  ;;  %vm113_vm14 = vcmp.eq.s32.totalorder %v7120_v16, %v76_v17  ;;  %vm112_vm0 = vcmp.eq.s32.totalorder %v7118_v15, %v75_v18 }
  0x18   :  { %5847 = vmatpush3.bf16.msra.mxu1 %v624_v20  ;;  %v8736_v24 = vsel %vm7140_vm9, 4294967295, %v8735_v24  ;;  %5077 = vmatprep.subr.msk.mxu0 %vm118_vm4, %v6984_v22  ;;  %vm7152_vm13 = vmpackc.low %vm116_vm10, %vm114_vm11  ;;  %vm8666_vm2 = vcmp.eq.s32.totalorder %v7118_v15, %v74_v19  ;;  %v71_v29 = vadd.s32 56, %v7094_v2  ;;  %v70_v30 = vadd.s32 48, %v7094_v2 }
  0x19   :  { %v8738_v27 = vsel %vm7152_vm13, 4294967295, %v8737_v27  ;;  %5078 = vmatpush1.msk.msra.mxu0 %vm117_vm7, %v6984_v22  ;;  %vm7161_vm15 = vmpackc.low %vm115_vm12, %vm113_vm14  ;;  %vm8665_vm4 = vcmp.eq.s32.totalorder %v7120_v16, %v74_v19  ;;  %vm8670_vm7 = vcmp.eq.s32.totalorder %v7118_v15, %v73_v25  ;;  %vm8667_vm8 = vcmp.eq.s32.totalorder %v7118_v15, %v72_v26 }
  0x1a   :  { %v8740_v28 = vsel %vm7161_vm15, 4294967295, %v8739_v28  ;;  %5079 = vmatprep.subr.msk.mxu0 %vm116_vm10, %v6984_v22  ;;  %vm7175_vm3 = vmpackc.low %vm112_vm0, %vm8666_vm2  ;;  %v69_v33 = vadd.s32 40, %v7094_v2  ;;  %v68_v34 = vadd.s32 32, %v7094_v2  ;;  %vm8669_vm10 = vcmp.eq.s32.totalorder %v7120_v16, %v73_v25 }
  0x1b   :  { %5849 = vmatmul.mubr.msk.bf16.vlgmr.msra.gmra.mxu1 %vm615_vm1, %v6385_v21  ;;  %vm111_vm1 = vcmp.eq.s32.totalorder %v7120_v16, %v75_v18  ;;  %5080 = vmatpush1.msk.msra.mxu0 %vm115_vm12, %v6984_v22  ;;  %vm7201_vm12 = vmpackc.low %vm8670_vm7, %vm8667_vm8  ;;  %vm8672_vm2 = vcmp.eq.s32.totalorder %v7118_v15, %v71_v29  ;;  %vm8671_vm8 = vcmp.eq.s32.totalorder %v7118_v15, %v70_v30  ;;  %v7220_v37 = vadd.s32 24, %v7094_v2 }
  0x1c   :  { %vm7185_vm5 = vmpackc.low %vm111_vm1, %vm8665_vm4  ;;  %5081 = vmatprep.subr.msk.mxu0 %vm114_vm11, %v6984_v22  ;;  %v8746_v35 = vsel %vm7201_vm12, 4294967295, %v8745_v35  ;;  %vm8668_vm4 = vcmp.eq.s32.totalorder %v7120_v16, %v72_v26  ;;  %v7223_v38 = vadd.s32 16, %v7094_v2  ;;  %vm8677_vm7 = vcmp.eq.s32.totalorder %v7118_v15, %v69_v33 }
  0x1d   :  { %5082 = vmatpush1.msk.msra.mxu0 %vm113_vm14, %v6984_v22  ;;  %vm7213_vm11 = vmpackc.low %vm8669_vm10, %vm8668_vm4  ;;  %vm8675_vm14 = vcmp.eq.s32.totalorder %v7120_v16, %v71_v29  ;;  %vm8674_vm10 = vcmp.eq.s32.totalorder %v7120_v16, %v70_v30  ;;  %v8760_v43 = vmov 0  ;;  %v8763_v44 = vmov 0 }
  0x1e   :  { %v8748_v36 = vsel %vm7213_vm11, 4294967295, %v8747_v36  ;;  %5083 = vmatprep.subr.msk.mxu0 %vm112_vm0, %v6984_v22  ;;  %vm7233_vm4 = vmpackc.low %vm8672_vm2, %vm8671_vm8  ;;  %vm8676_vm8 = vcmp.eq.s32.totalorder %v7118_v15, %v68_v34  ;;  %vm8753_vm2 = vcmp.eq.s32.totalorder %v7118_v15, %v74_v19  ;;  %v8766_v45 = vmov 0 }
  0x1f   :  { %v8750_v39 = vsel %vm7233_vm4, 4294967295, %v8749_v39  ;;  %5084 = vmatpush1.msk.msra.mxu0 %vm111_vm1, %v6984_v22  ;;  %vm7245_vm0 = vmpackc.low %vm8675_vm14, %vm8674_vm10  ;;  %vm8680_vm4 = vcmp.eq.s32.totalorder %v7120_v16, %v69_v33  ;;  %vm8679_vm10 = vcmp.eq.s32.totalorder %v7120_v16, %v68_v34  ;;  %vm8756_vm14 = vcmp.eq.s32.totalorder %v7120_v16, %v74_v19 }
  0x20   :  { %v8752_v40 = vsel %vm7245_vm0, 4294967295, %v8751_v40  ;;  %5085 = vmatprep.subr.msk.mxu0 %vm8753_vm2, %v6984_v22  ;;  %vm7259_vm1 = vmpackc.low %vm8677_vm7, %vm8676_vm8  ;;  %vm8683_vm8 = vcmp.eq.s32.totalorder %v7118_v15, %v7220_v37  ;;  %vm8682_vm7 = vcmp.eq.s32.totalorder %v7118_v15, %v7223_v38  ;;  %v8769_v46 = vmov 0 }
  0x21   :  { %v8755_v41 = vsel %vm7259_vm1, 4294967295, %v8754_v41  ;;  %5086 = vmatpush1.msk.msra.mxu0 %vm8756_vm14, %v6984_v22  ;;  %vm7271_vm2 = vmpackc.low %vm8680_vm4, %vm8679_vm10  ;;  %vm8759_vm1 = vcmp.eq.s32.totalorder %v7118_v15, %v73_v25  ;;  %vm8686_vm14 = vcmp.eq.s32.totalorder %v7120_v16, %v7220_v37  ;;  %vm8685_vm4 = vcmp.eq.s32.totalorder %v7120_v16, %v7223_v38 }
  0x22   :  { %v8758_v42 = vsel %vm7271_vm2, 4294967295, %v8757_v42  ;;  %5087 = vmatprep.subr.msk.mxu0 %vm8759_vm1, %v6984_v22  ;;  %vm7290_vm10 = vmpackc.low %vm8683_vm8, %vm8682_vm7  ;;  %vm8762_vm2 = vcmp.eq.s32.totalorder %v7120_v16, %v73_v25  ;;  %vm8689_vm7 = vcmp.eq.s32.totalorder %v7118_v15, %v7097_v3  ;;  %vm8688_vm8 = vcmp.eq.s32.totalorder %v7118_v15, %v7094_v2 }
  0x23   :  { %v8761_v43 = vsel %vm7290_vm10, 4294967295, %v8760_v43  ;;  %5088 = vmatpush1.msk.msra.mxu0 %vm8762_vm2, %v6984_v22  ;;  %vm7305_vm1 = vmpackc.low %vm8686_vm14, %vm8685_vm4  ;;  %vm8765_vm10 = vcmp.eq.s32.totalorder %v7118_v15, %v72_v26  ;;  %vm8692_vm2 = vcmp.eq.s32.totalorder %v7120_v16, %v7097_v3  ;;  %vm8691_vm14 = vcmp.eq.s32.totalorder %v7120_v16, %v7094_v2 }
  0x24   :  { %v8764_v44 = vsel %vm7305_vm1, 4294967295, %v8763_v44  ;;  %5089 = vmatprep.subr.msk.mxu0 %vm8765_vm10, %v6984_v22  ;;  %vm7324_vm4 = vmpackc.low %vm8689_vm7, %vm8688_vm8  ;;  %vm8768_vm1 = vcmp.eq.s32.totalorder %v7120_v16, %v72_v26  ;;  %vm8771_vm8 = vcmp.eq.s32.totalorder %v7118_v15, %v71_v29  ;;  %vm8772_vm7 = vcmp.eq.s32.totalorder %v7120_v16, %v71_v29 }
  0x25   :  { %v8767_v45 = vsel %vm7324_vm4, 4294967295, %v8766_v45  ;;  %5090 = vmatpush1.msk.msra.mxu0 %vm8768_vm1, %v6984_v22  ;;  %vm7339_vm10 = vmpackc.low %vm8692_vm2, %vm8691_vm14  ;;  %vm8773_vm1 = vcmp.eq.s32.totalorder %v7118_v15, %v70_v30  ;;  %vm8774_vm4 = vcmp.eq.s32.totalorder %v7120_v16, %v70_v30  ;;  %vm8775_vm14 = vcmp.eq.s32.totalorder %v7118_v15, %v69_v33 }
  0x26   :  { %v8770_v46 = vsel %vm7339_vm10, 4294967295, %v8769_v46  ;;  %5091 = vmatprep.subr.msk.mxu0 %vm8771_vm8, %v6984_v22  ;;  %vm8776_vm2 = vcmp.eq.s32.totalorder %v7120_v16, %v69_v33  ;;  %vm8777_vm8 = vcmp.eq.s32.totalorder %v7118_v15, %v68_v34  ;;  %v6985_v51 = vmov 0  }
  0x27   :  { %5092 = vmatpush1.msk.msra.mxu0 %vm8772_vm7, %v6984_v22  ;;  %vm8778_vm7 = vcmp.eq.s32.totalorder %v7120_v16, %v68_v34  ;;  %6316 = vset.pattern.permute.xlu0 %v6985_v51  ;;  %v566_v12 = vcvt.s32.f32 %v7097_v3  ;;  %v568_v13 = vcvt.s32.f32 %v7220_v37  ;;  %v567_v14 = vcvt.s32.f32 %v7223_v38 }
  0x28   :  { %5093 = vmatprep.subr.msk.mxu0 %vm8773_vm1, %v6984_v22  ;;  %vm8782_vm1 = vcmp.eq.s32.totalorder %v7120_v16, %v7223_v38  ;;  %6317 = vset.pattern.permute.xlu1 %v6985_v51 }
  0x29   :  { %5094 = vmatpush1.msk.msra.mxu0 %vm8774_vm4, %v6984_v22  ;;  %vm8779_vm4 = vcmp.eq.s32.totalorder %v7118_v15, %v7220_v37  ;;  %683 = vperm.xlu0 %6316, %v7409_v49   ;;  %v572_v17 = vadd.f32 1.0, %v568_v13  ;;  %v571_v18 = vadd.f32 1.0, %v567_v14  ;;  %v6389_v14 = vld [vmem:[%s8658_s7 + $0x8] sm:$0xff]  }
  0x2a   :  { %5095 = vmatprep.subr.msk.mxu0 %vm8775_vm14, %v6984_v22  ;;  %vm8780_vm14 = vcmp.eq.s32.totalorder %v7120_v16, %v7220_v37  ;;  %693 = vperm.xlu1 %6317, %v7414_v50  }
  0x2b   :  { %5096 = vmatpush1.msk.msra.mxu0 %vm8776_vm2, %v6984_v22  ;;  %vm8781_vm2 = vcmp.eq.s32.totalorder %v7118_v15, %v7223_v38  ;;  %v575_v26 = vmul.f32 0.15625, %v571_v18 }
  0x2c   :  { %5097 = vmatprep.subr.msk.mxu0 %vm8777_vm8, %v6984_v22  ;;  %vm8783_vm8 = vcmp.eq.s32.totalorder %v7118_v15, %v7097_v3 }
  0x2d   :  { %5098 = vmatpush1.msk.msra.mxu0 %vm8778_vm7, %v6984_v22  ;;  %vm8784_vm7 = vcmp.eq.s32.totalorder %v7120_v16, %v7097_v3  ;;  %688 = vperm.xlu0 %6316, %v7423_v52  }
  0x2e   :  { %5099 = vmatprep.subr.msk.mxu0 %vm8779_vm4, %v6984_v22  ;;  %vm8785_vm4 = vcmp.eq.s32.totalorder %v7118_v15, %v7094_v2  ;;  %698 = vperm.xlu1 %6317, %v7429_v53   ;;  %v565_v15 = vcvt.s32.f32 %v7094_v2 }
  0x2f   :  { %5100 = vmatpush1.msk.msra.mxu0 %vm8780_vm14, %v6984_v22  ;;  %vm8786_vm14 = vcmp.eq.s32.totalorder %v7120_v16, %v7094_v2  ;;  %v570_v16 = vadd.f32 1.0, %v566_v12 }
  0x30   :  { %5101 = vmatprep.subr.msk.mxu0 %vm8781_vm2, %v6984_v22  ;;  %vm8693_vm2 = vcmask 261120   ;;  %v569_v19 = vadd.f32 1.0, %v565_v15  ;;  %v6986_v15 = vmov 1.0|1.0  }
  0x31   :  { %5102 = vmatpush1.msk.msra.mxu0 %vm8782_vm1, %v6984_v22  ;;  %5856 = vmatprep.mubr.msk.bf16.mxu1 %vm8693_vm2, %v6386_v48  ;;  %v574_v21 = vmul.f32 0.15625, %v570_v16  ;;  %v6987_v16 = vmov 1  }
  0x32   :  { %5103 = vmatprep.subr.msk.mxu0 %vm8783_vm8, %v6984_v22  ;;  %v573_v30 = vmul.f32 0.15625, %v569_v19  ;;  %6319 = vset.pattern.permute.xlu1 %v6987_v16 }
  0x33   :  { %5104 = vmatpush1.msk.msra.mxu0 %vm8784_vm7, %v6984_v22  ;;  %6318 = vset.pattern.permute.xlu0 %v6987_v16  ;;  %vm8787_vm7 = vnez %v8750_v39 }
  0x34   :  { %5105 = vmatprep.subr.msk.mxu0 %vm8785_vm4, %v6984_v22  ;;  %786 = vperm.xlu1 %6319, %v7429_v53   ;;  %vm8788_vm4 = vnez %v8755_v41 }
  0x35   :  { %5106 = vmatpush1.msk.msra.mxu0 %vm8786_vm14, %v6984_v22  ;;  %v576_v22 = vmul.f32 0.15625, %v572_v17  ;;  %782 = vperm.xlu0 %6318, %v7414_v50   ;;  %vm8789_vm14 = vnez %v8758_v42 }
  0x36   :  { %544 = vmatmul.mubr.f32.vlgmr.msra.gmra.mxu0 %v478_v47 }
  0x38   :  { %774 = vperm.xlu1 %6319, %v7409_v49  }
  0x39   :  { %778 = vperm.xlu0 %6318, %v7423_v52  }
  0xa4   :  { %v684_v17 = vpop.permute.xlu0 %683 }
  0xdb   :  { %v5850_v54 = vpop.f32.mrf.mxu1 }
  0xdd   :  { %v660_v55 = vpop.f32.mrf.mxu1 }
  0xdf   :  { %v5851_v56 = vpop.f32.mrf.mxu1 }
  0xe0   :  { %v680_v57 = vpack.c.bf16 %v5851_v56, %v5850_v54 }
  0xe1   :  { %v663_v58 = vpop.f32.mrf.mxu1 }
  0xe2   :  { %v679_v59 = vpack.c.bf16 %v663_v58, %v660_v55  ;;  %5852 = vmatprep.subr.bf16.mxu1 %v680_v57 }
  0xe3   :  { %5853 = vmatpush3.bf16.msra.mxu1 %v680_v57 }
  0xe4   :  { %5854 = vmatprep.subr.bf16.mxu1 %v679_v59 }
  0xe7   :  { %5855 = vmatpush3.bf16.msra.mxu1 %v679_v59 }
  0xea   :  { %5857 = vmatmul.mubr.msk.bf16.vlgmr.msra.gmra.mxu1 %vm8693_vm2, %v6387_v60 }
  0xeb   :  { %5864 = vmatprep.mubr.msk.bf16.mxu1 %vm8693_vm2, %v6388_v61 }
  0xf6   :  { %v545_v62 = vpop.f32.mrf.mxu0 }
  0xf8   :  { %v547_v63 = vpop.f32.mrf.mxu0 }
  0xf9   :  { %v550_v4 = vsub.f32 %v545_v62, %v547_v63 }
  0xfb   :  { %v551_v5 = vmul.f32 %v550_v4, %v550_v4 }
  0xfd   :  { %v552_v6 = vrot.slane %v551_v5, 4 }
  0xff   :  { %v553_v7 = vadd.f32 %v552_v6, %v551_v5 }
 0x101   :  { %v554_v8 = vrot.slane %v553_v7, 2 }
 0x103   :  { %v555_v9 = vadd.f32 %v554_v8, %v553_v7 }
 0x105   :  { %v556_v10 = vrot.slane %v555_v9, 1 }
 0x107   :  { %v557_v11 = vadd.f32 %v556_v10, %v555_v9 }
 0x109   :  { %6450 = vrsqrt.f32 %v557_v11  ;;  %vm560_vm1 = vcmp.eq.f32.partialorder %v557_v11, inf  ;;  %v563_v25 = vand.u32 2147483648, %v557_v11  ;;  %vm562_vm8 = vcmp.eq.f32.partialorder %v557_v11, 0.0 }
 0x116   :  { %v6451_v20 = vpop.eup %6450 }
 0x117   :  { %v559_v29 = vmul.f32 %v6451_v20, %v557_v11  ;;  %v694_v20 = vpop.permute.xlu1 %693 }
 0x119   :  { %v561_v3 = vsel %vm560_vm1, %v557_v11, %v559_v29  ;;  %vm8790_vm1 = vnez %v8761_v43 }
 0x11a   :  { %v564_v33 = vsel %vm562_vm8, %v563_v25, %v561_v3  ;;  %vm8791_vm8 = vnez %v8764_v44 }
 0x11b   :  { %v579_v34 = vsub.f32 %v564_v33, %v575_v26  ;;  %v580_v37 = vsub.f32 %v564_v33, %v576_v22  ;;  %v577_v38 = vsub.f32 %v564_v33, %v573_v30  ;;  %v578_v47 = vsub.f32 %v564_v33, %v574_v21  ;;  %v689_v22 = vpop.permute.xlu0 %688  ;;  %v699_v3 = vpop.permute.xlu1 %698 }
 0x11d   :  { %v583_v2 = vmul.f32 %v579_v34, %v579_v34  ;;  %v584_v48 = vmul.f32 %v580_v37, %v580_v37  ;;  %v581_v54 = vmul.f32 %v577_v38, %v577_v38  ;;  %v582_v55 = vmul.f32 %v578_v47, %v578_v47  ;;  %v6390_v38 = vld [vmem:[%s8659_s8] sm:$0xff]  }
 0x11e   :  { %v6988_v47 = vmov 2  }
 0x11f   :  { %v587_v56 = vsub.f32 0.0, %v583_v2  ;;  %v588_v57 = vsub.f32 0.0, %v584_v48  ;;  %v585_v58 = vsub.f32 0.0, %v581_v54  ;;  %v586_v59 = vsub.f32 0.0, %v582_v55  ;;  %6320 = vset.pattern.permute.xlu1 %v6988_v47  ;;  %6321 = vset.pattern.permute.xlu0 %v6988_v47 }
 0x120   :  { %928 = vperm.xlu1 %6320, %v7414_v50   ;;  %932 = vperm.xlu0 %6321, %v7429_v53  }
 0x121   :  { %v591_v60 = vmul.f32 20.48, %v587_v56  ;;  %v592_v61 = vmul.f32 20.48, %v588_v57  ;;  %v589_v62 = vmul.f32 20.48, %v585_v58 }
 0x122   :  { %v590_v63 = vmul.f32 20.48, %v586_v59 }
 0x123   :  { %v597_v4 = vmul.f32 1.442695, %v591_v60  ;;  %v599_v5 = vmul.f32 1.442695, %v592_v61  ;;  %v593_v6 = vmul.f32 1.442695, %v589_v62 }
 0x124   :  { %v595_v7 = vmul.f32 1.442695, %v590_v63  ;;  %920 = vperm.xlu1 %6320, %v7409_v49  }
 0x125   :  { %6452 = vpow2.f32 %v597_v4 }
 0x126   :  { %6454 = vpow2.f32 %v599_v5 }
 0x127   :  { %6456 = vpow2.f32 %v593_v6  ;;  %v787_v6 = vpop.permute.xlu1 %786 }
 0x128   :  { %6458 = vpow2.f32 %v595_v7  ;;  %924 = vperm.xlu1 %6320, %v7423_v52   ;;  %v783_v7 = vpop.permute.xlu0 %782 }
 0x132   :  { %v6453_v8 = vpop.eup %6452 }
 0x133   :  { %v6455_v9 = vpop.eup %6454 }
 0x134   :  { %v6457_v10 = vpop.eup %6456  ;;  %v772_v11 = vpack.c.bf16 %v6455_v9, %v6453_v8 }
 0x135   :  { %v6459_v12 = vpop.eup %6458 }
 0x136   :  { %5860 = vmatprep.subr.bf16.mxu1 %v772_v11  ;;  %v771_v13 = vpack.c.bf16 %v6459_v12, %v6457_v10  ;;  %v775_v12 = vpop.permute.xlu1 %774 }
 0x137   :  { %5861 = vmatpush3.bf16.msra.mxu1 %v772_v11 }
 0x138   :  { %5862 = vmatprep.subr.bf16.mxu1 %v771_v13 }
 0x13b   :  { %5863 = vmatpush3.bf16.msra.mxu1 %v771_v13  ;;  %v779_v13 = vpop.permute.xlu0 %778 }
 0x13c   :  { %5120 = vmatprep.subr.msk.bf16.mxu1 %vm7133_vm6, %v6986_v15 }
 0x13e   :  { %5865 = vmatmul.mubr.msk.bf16.vlgmr.msra.gmra.mxu1 %vm8693_vm2, %v6389_v14  ;;  %vm8792_vm2 = vnez %v8767_v45 }
 0x13f   :  { %5122 = vmatpush1.bf16.msk.msra.mxu1 %vm7140_vm9, %v6986_v15  ;;  %888 = vmatprep.mubr.bf16.mxu1 %v6985_v51 }
 0x140   :  { %5124 = vmatprep.subr.msk.bf16.mxu1 %vm7152_vm13, %v6986_v15 }
 0x143   :  { %5126 = vmatpush1.bf16.msk.msra.mxu1 %vm7161_vm15, %v6986_v15 }
 0x144   :  { %5128 = vmatprep.subr.msk.bf16.mxu1 %vm7175_vm3, %v6986_v15 }
 0x147   :  { %5130 = vmatpush1.bf16.msk.msra.mxu1 %vm7185_vm5, %v6986_v15 }
 0x148   :  { %5132 = vmatprep.subr.msk.bf16.mxu1 %vm7201_vm12, %v6986_v15 }
 0x14b   :  { %5134 = vmatpush1.bf16.msk.msra.mxu1 %vm7213_vm11, %v6986_v15 }
 0x14c   :  { %5136 = vmatprep.subr.msk.bf16.mxu1 %vm8787_vm7, %v6986_v15 }
 0x14f   :  { %5138 = vmatpush1.bf16.msk.msra.mxu1 %vm7245_vm0, %v6986_v15 }
 0x150   :  { %5140 = vmatprep.subr.msk.bf16.mxu1 %vm8788_vm4, %v6986_v15 }
 0x153   :  { %5142 = vmatpush1.bf16.msk.msra.mxu1 %vm8789_vm14, %v6986_v15 }
 0x154   :  { %5144 = vmatprep.subr.msk.bf16.mxu1 %vm8790_vm1, %v6986_v15 }
 0x157   :  { %5146 = vmatpush1.bf16.msk.msra.mxu1 %vm8791_vm8, %v6986_v15 }
 0x158   :  { %5148 = vmatprep.subr.msk.bf16.mxu1 %vm8792_vm2, %v6986_v15  ;;  %vm8793_vm2 = vcmask 261120  }
 0x15b   :  { %5150 = vmatpush1.bf16.msk.msra.mxu1 %vm7339_vm10, %v6986_v15  ;;  %vm8696_vm10 = vcmask 785408  }
 0x15c   :  { %5880 = vmatprep.mubr.msk.bf16.mxu0 %vm8696_vm10, %v6390_v38 }
 0x19b   :  { %v933_v38 = vpop.permute.xlu0 %932 }
 0x1aa   :  { %v5858_v18 = vpop.f32.mrf.mxu1 }
 0x1ab   :  { %v7510_v34 = vadd.f32 %v5858_v18, %v694_v20  ;;  %v6392_v20 = vld [vmem:[#allocation2] sm:$0xff]  }
 0x1ac   :  { %v752_v19 = vpop.f32.mrf.mxu1 }
 0x1ad   :  { %v7501_v26 = vadd.f32 %v752_v19, %v684_v17  ;;  %v6391_v19 = vld [vmem:[%s8659_s8 + $0x8] sm:$0xff]  }
 0x1ae   :  { %v5859_v21 = vpop.f32.mrf.mxu1 }
 0x1af   :  { %v7508_v33 = vadd.f32 %v5859_v21, %v699_v3  ;;  %v6989_v21 = vmov 3  }
 0x1b0   :  { %v755_v25 = vpop.f32.mrf.mxu1  ;;  %6323 = vset.pattern.permute.xlu1 %v6989_v21  ;;  %6322 = vset.pattern.permute.xlu0 %v6989_v21  ;;  %v6394_v21 = vld [vmem:[#allocation2 + $0x10] sm:$0xff]  }
 0x1b1   :  { %v7503_v29 = vadd.f32 %v755_v25, %v689_v22  ;;  %v855_v37 = vpack.c.bf16 %v7508_v33, %v7510_v34  ;;  %1048 = vperm.xlu1 %6323, %v7429_v53   ;;  %1044 = vperm.xlu0 %6322, %v7414_v50   ;;  %v929_v22 = vpop.permute.xlu1 %928 }
 0x1b3   :  { %v854_v30 = vpack.c.bf16 %v7503_v29, %v7501_v26 }
 0x1b5   :  { %889 = vmatmul.mubr.bf16.vlgmr.msra.gmra.mxu1 %v854_v30  ;;  %1036 = vperm.xlu1 %6323, %v7409_v49   ;;  %v921_v25 = vpop.permute.xlu1 %920 }
 0x1b6   :  { %898 = vmatprep.mubr.bf16.mxu1 %v6985_v51  ;;  %1040 = vperm.xlu0 %6322, %v7423_v52  }
 0x1bd   :  { %899 = vmatmul.mubr.bf16.gmra.mxu1 %v855_v37 }
 0x1fe   :  { %v5866_v2 = vpop.f32.mrf.mxu1 }
 0x1ff   :  { %v848_v9 = vadd.f32 %v5866_v2, %v783_v7 }
 0x200   :  { %v839_v48 = vpop.f32.mrf.mxu1 }
 0x201   :  { %v840_v16 = vadd.f32 %v839_v48, %v775_v12 }
 0x202   :  { %v5867_v54 = vpop.f32.mrf.mxu1 }
 0x203   :  { %v851_v10 = vadd.f32 %v5867_v54, %v787_v6 }
 0x204   :  { %v842_v55 = vpop.f32.mrf.mxu1 }
 0x205   :  { %v914_v14 = vpack.c.bf16 %v851_v10, %v848_v9  ;;  %v843_v17 = vadd.f32 %v842_v55, %v779_v13 }
 0x207   :  { %v913_v18 = vpack.c.bf16 %v843_v17, %v840_v16 }
 0x275   :  { %v890_v56 = vpop.f32.mrf.mxu1 }
 0x277   :  { %v892_v57 = vpop.f32.mrf.mxu1 }
 0x279   :  { %v894_v58 = vpop.f32.mrf.mxu1 }
 0x27a   :  { %v909_v11 = vpack.c.bf16 %v894_v58, %v890_v56  ;;  %v925_v56 = vpop.permute.xlu1 %924 }
 0x27b   :  { %v896_v59 = vpop.f32.mrf.mxu1 }
 0x27c   :  { %v910_v5 = vpack.c.bf16 %v896_v59, %v892_v57 }
 0x27d   :  { %v900_v60 = vpop.f32.mrf.mxu1 }
 0x27f   :  { %v902_v61 = vpop.f32.mrf.mxu1 }
 0x281   :  { %v904_v62 = vpop.f32.mrf.mxu1 }
 0x282   :  { %v911_v8 = vpack.c.bf16 %v904_v62, %v900_v60 }
 0x283   :  { %v906_v63 = vpop.f32.mrf.mxu1 }
 0x284   :  { %v912_v4 = vpack.c.bf16 %v906_v63, %v902_v61 }
 0x286   :  { %5868 = vmatprep.subr.bf16.mxu0 %v912_v4 }
 0x287   :  { %5869 = vmatpush3.bf16.msra.mxu0 %v912_v4 }
 0x288   :  { %5870 = vmatprep.subr.bf16.mxu0 %v910_v5 }
 0x28b   :  { %5871 = vmatpush3.bf16.msra.mxu0 %v910_v5 }
 0x28c   :  { %5872 = vmatprep.subr.bf16.mxu0 %v911_v8 }
 0x28f   :  { %5873 = vmatpush3.bf16.msra.mxu0 %v911_v8 }
 0x290   :  { %5874 = vmatprep.subr.bf16.mxu0 %v909_v11 }
 0x293   :  { %5875 = vmatpush3.bf16.msra.mxu0 %v909_v11 }
 0x294   :  { %5876 = vmatprep.subr.bf16.mxu0 %v914_v14 }
 0x297   :  { %5877 = vmatpush3.bf16.msra.mxu0 %v914_v14 }
 0x298   :  { %5878 = vmatprep.subr.bf16.mxu0 %v913_v18 }
 0x29b   :  { %5879 = vmatpush3.bf16.msra.mxu0 %v913_v18 }
 0x29e   :  { %5881 = vmatmul.mubr.msk.bf16.vlgmr.msra.gmra.mxu0 %vm8696_vm10, %v6391_v19  ;;  %vm8794_vm10 = vmmov %vm8793_vm2 }
 0x29f   :  { %5888 = vmatprep.mubr.msk.bf16.mxu0 %vm8793_vm2, %v6392_v20  ;;  %v6393_v20 = vld [vmem:[#allocation2 + $0x8] sm:$0xff]   ;;  %5896 = vmatprep.mubr.msk.bf16.mxu1 %vm8794_vm10, %v6394_v21  ;;  %v6395_v21 = vld [vmem:[#allocation2 + $0x18] sm:$0xff]   ;;  %vm8795_vm10 = vmmov %vm8793_vm2 }
 0x35e   :  { %v5882_v30 = vpop.f32.mrf.mxu0 }
 0x35f   :  { %v995_v3 = vadd.f32 %v5882_v30, %v929_v22  ;;  %v6990_v22 = vmov 4   ;;  %v1045_v30 = vpop.permute.xlu0 %1044 }
 0x360   :  { %v986_v37 = vpop.f32.mrf.mxu0  ;;  %6324 = vset.pattern.permute.xlu1 %v6990_v22  ;;  %6325 = vset.pattern.permute.xlu0 %v6990_v22  ;;  %v6396_v22 = vld [vmem:[#allocation2 + $0x20] sm:$0xff]  }
 0x361   :  { %v5157_v47 = vmul.f32 -1.442695, %v995_v3  ;;  %v987_v2 = vadd.f32 %v986_v37, %v921_v25  ;;  %1160 = vperm.xlu1 %6324, %v7414_v50   ;;  %1164 = vperm.xlu0 %6325, %v7429_v53   ;;  %v1049_v25 = vpop.permute.xlu1 %1048 }
 0x362   :  { %v5883_v48 = vpop.f32.mrf.mxu0 }
 0x363   :  { %6460 = vpow2.f32 %v5157_v47  ;;  %v5155_v54 = vmul.f32 -1.442695, %v987_v2  ;;  %v998_v55 = vadd.f32 %v5883_v48, %v933_v38 }
 0x364   :  { %v989_v57 = vpop.f32.mrf.mxu0 }
 0x365   :  { %6462 = vpow2.f32 %v5155_v54  ;;  %v5158_v58 = vmul.f32 -1.442695, %v998_v55  ;;  %v990_v59 = vadd.f32 %v989_v57, %v925_v56  ;;  %1152 = vperm.xlu1 %6324, %v7409_v49   ;;  %v1037_v37 = vpop.permute.xlu1 %1036  ;;  %v1041_v57 = vpop.permute.xlu0 %1040 }
 0x367   :  { %6464 = vpow2.f32 %v5158_v58  ;;  %v5156_v60 = vmul.f32 -1.442695, %v990_v59 }
 0x369   :  { %6466 = vpow2.f32 %v5156_v60  ;;  %1156 = vperm.xlu1 %6324, %v7423_v52  }
 0x370   :  { %v6461_v61 = vpop.eup %6460 }
 0x371   :  { %v1015_v62 = vadd.f32 1.0, %v6461_v61 }
 0x372   :  { %v6463_v63 = vpop.eup %6462 }
 0x373   :  { %v1013_v4 = vadd.f32 1.0, %v6463_v63  ;;  %6468 = vrcp.f32 %v1015_v62 }
 0x374   :  { %v6465_v5 = vpop.eup %6464 }
 0x375   :  { %v1016_v6 = vadd.f32 1.0, %v6465_v5  ;;  %6470 = vrcp.f32 %v1013_v4 }
 0x376   :  { %v6467_v7 = vpop.eup %6466 }
 0x377   :  { %6472 = vrcp.f32 %v1016_v6  ;;  %v1014_v8 = vadd.f32 1.0, %v6467_v7 }
 0x379   :  { %6474 = vrcp.f32 %v1014_v8 }
 0x380   :  { %v6469_v9 = vpop.eup %6468 }
 0x381   :  { %v1027_v12 = vmul.f32 %v6469_v9, %v995_v3 }
 0x382   :  { %v6471_v10 = vpop.eup %6470 }
 0x383   :  { %v1025_v16 = vmul.f32 %v6471_v10, %v987_v2 }
 0x384   :  { %v6473_v11 = vpop.eup %6472 }
 0x385   :  { %v1028_v13 = vmul.f32 %v6473_v11, %v998_v55 }
 0x386   :  { %v6475_v14 = vpop.eup %6474 }
 0x387   :  { %v1026_v17 = vmul.f32 %v6475_v14, %v990_v59  ;;  %v1034_v18 = vpack.c.bf16 %v1028_v13, %v1027_v12 }
 0x389   :  { %5884 = vmatprep.subr.bf16.mxu0 %v1034_v18  ;;  %v1033_v19 = vpack.c.bf16 %v1026_v17, %v1025_v16 }
 0x38a   :  { %5885 = vmatpush3.bf16.msra.mxu0 %v1034_v18 }
 0x38b   :  { %5886 = vmatprep.subr.bf16.mxu0 %v1033_v19 }
 0x38e   :  { %5887 = vmatpush3.bf16.msra.mxu0 %v1033_v19 }
 0x391   :  { %5889 = vmatmul.mubr.msk.bf16.vlgmr.msra.gmra.mxu0 %vm8793_vm2, %v6393_v20 }
 0x392   :  { %5904 = vmatprep.mubr.msk.bf16.mxu0 %vm8793_vm2, %v6396_v22  ;;  %v6397_v22 = vld [vmem:[#allocation2 + $0x28] sm:$0xff]  }
 0x451   :  { %v5890_v3 = vpop.f32.mrf.mxu0 }
 0x452   :  { %v1110_v38 = vadd.f32 %v5890_v3, %v1045_v30  ;;  %v1161_v30 = vpop.permute.xlu1 %1160 }
 0x453   :  { %v1101_v47 = vpop.f32.mrf.mxu0 }
 0x454   :  { %v5165_v2 = vmul.f32 -1.442695, %v1110_v38  ;;  %v1102_v48 = vadd.f32 %v1101_v47, %v1037_v37 }
 0x455   :  { %v5891_v54 = vpop.f32.mrf.mxu0 }
 0x456   :  { %6476 = vpow2.f32 %v5165_v2  ;;  %v5163_v55 = vmul.f32 -1.442695, %v1102_v48  ;;  %v1113_v56 = vadd.f32 %v5891_v54, %v1049_v25  ;;  %v6991_v25 = vmov 5   ;;  %v1153_v3 = vpop.permute.xlu1 %1152  ;;  %v1165_v2 = vpop.permute.xlu0 %1164 }
 0x457   :  { %v1104_v58 = vpop.f32.mrf.mxu0  ;;  %6327 = vset.pattern.permute.xlu1 %v6991_v25  ;;  %6326 = vset.pattern.permute.xlu0 %v6991_v25  ;;  %v6398_v25 = vld [vmem:[#allocation2 + $0x30] sm:$0xff]  }
 0x458   :  { %6478 = vpow2.f32 %v5163_v55  ;;  %v5166_v59 = vmul.f32 -1.442695, %v1113_v56  ;;  %v1105_v60 = vadd.f32 %v1104_v58, %v1041_v57  ;;  %1280 = vperm.xlu1 %6327, %v7429_v53   ;;  %1276 = vperm.xlu0 %6326, %v7414_v50  }
 0x45a   :  { %6480 = vpow2.f32 %v5166_v59  ;;  %v5164_v61 = vmul.f32 -1.442695, %v1105_v60  ;;  %v1157_v58 = vpop.permute.xlu1 %1156 }
 0x45c   :  { %6482 = vpow2.f32 %v5164_v61  ;;  %1268 = vperm.xlu1 %6327, %v7409_v49   ;;  %1272 = vperm.xlu0 %6326, %v7423_v52  }
 0x463   :  { %v6477_v62 = vpop.eup %6476 }
 0x464   :  { %v1130_v63 = vadd.f32 1.0, %v6477_v62 }
 0x465   :  { %v6479_v4 = vpop.eup %6478 }
 0x466   :  { %v1128_v5 = vadd.f32 1.0, %v6479_v4  ;;  %6484 = vrcp.f32 %v1130_v63 }
 0x467   :  { %v6481_v6 = vpop.eup %6480 }
 0x468   :  { %v1131_v7 = vadd.f32 1.0, %v6481_v6  ;;  %6486 = vrcp.f32 %v1128_v5 }
 0x469   :  { %v6483_v8 = vpop.eup %6482 }
 0x46a   :  { %6488 = vrcp.f32 %v1131_v7  ;;  %v1129_v9 = vadd.f32 1.0, %v6483_v8 }
 0x46c   :  { %6490 = vrcp.f32 %v1129_v9 }
 0x473   :  { %v6485_v10 = vpop.eup %6484 }
 0x474   :  { %v1142_v13 = vmul.f32 %v6485_v10, %v1110_v38 }
 0x475   :  { %v6487_v11 = vpop.eup %6486 }
 0x476   :  { %v1140_v17 = vmul.f32 %v6487_v11, %v1102_v48 }
 0x477   :  { %v6489_v12 = vpop.eup %6488 }
 0x478   :  { %v1143_v14 = vmul.f32 %v6489_v12, %v1113_v56 }
 0x479   :  { %v6491_v16 = vpop.eup %6490 }
 0x47a   :  { %v1141_v18 = vmul.f32 %v6491_v16, %v1105_v60  ;;  %v1150_v19 = vpack.c.bf16 %v1143_v14, %v1142_v13 }
 0x47c   :  { %5892 = vmatprep.subr.bf16.mxu1 %v1150_v19  ;;  %v1149_v20 = vpack.c.bf16 %v1141_v18, %v1140_v17 }
 0x47d   :  { %5893 = vmatpush3.bf16.msra.mxu1 %v1150_v19 }
 0x47e   :  { %5894 = vmatprep.subr.bf16.mxu1 %v1149_v20 }
 0x481   :  { %5895 = vmatpush3.bf16.msra.mxu1 %v1149_v20 }
 0x484   :  { %5897 = vmatmul.mubr.msk.bf16.vlgmr.msra.gmra.mxu1 %vm8795_vm10, %v6395_v21  ;;  %vm8796_vm10 = vmmov %vm8793_vm2 }
 0x485   :  { %5912 = vmatprep.mubr.msk.bf16.mxu1 %vm8793_vm2, %v6398_v25 }
 0x544   :  { %v5898_v37 = vpop.f32.mrf.mxu1 }
 0x545   :  { %v1226_v38 = vadd.f32 %v5898_v37, %v1161_v30  ;;  %v6992_v30 = vmov 6   ;;  %v216_v37 = vld [vmem:[%s8654_s3 + $0x68] sm:$0xff] }
 0x546   :  { %v1217_v47 = vpop.f32.mrf.mxu1  ;;  %6328 = vset.pattern.permute.xlu1 %v6992_v30  ;;  %6329 = vset.pattern.permute.xlu0 %v6992_v30 }
 0x547   :  { %v5173_v48 = vmul.f32 -1.442695, %v1226_v38  ;;  %v1218_v54 = vadd.f32 %v1217_v47, %v1153_v3  ;;  %1384 = vperm.xlu1 %6328, %v7409_v49   ;;  %1388 = vperm.xlu0 %6329, %v7423_v52   ;;  %v217_v3 = vld [vmem:[%s8654_s3 + $0x70] sm:$0xff]  ;;  %v218_v49 = vld [vmem:[%s8654_s3 + $0x78] sm:$0xff] }
 0x548   :  { %v5899_v55 = vpop.f32.mrf.mxu1  ;;  %v214_v52 = vld [vmem:[%s8654_s3 + $0x58] sm:$0xff] }
 0x549   :  { %6492 = vpow2.f32 %v5173_v48  ;;  %v5171_v56 = vmul.f32 -1.442695, %v1218_v54  ;;  %v1229_v57 = vadd.f32 %v5899_v55, %v1165_v2  ;;  %v210_v47 = vld [vmem:[%s8654_s3 + $0x38] sm:$0xff]  ;;  %v211_v2 = vld [vmem:[%s8654_s3 + $0x40] sm:$0xff]  ;;  %v208_v48 = vld [vmem:[%s8654_s3 + $0x28] sm:$0xff] }
 0x54a   :  { %v1220_v59 = vpop.f32.mrf.mxu1  ;;  %v206_v55 = vld [vmem:[%s8654_s3 + $0x18] sm:$0xff] }
 0x54b   :  { %6494 = vpow2.f32 %v5171_v56  ;;  %v5174_v60 = vmul.f32 -1.442695, %v1229_v57  ;;  %v1221_v61 = vadd.f32 %v1220_v59, %v1157_v58  ;;  %1392 = vperm.xlu1 %6328, %v7414_v50   ;;  %6330 = vset.pattern.permute.xlu0 %v6985_v51  ;;  %v215_v50 = vld [vmem:[%s8654_s3 + $0x60] sm:$0xff]  ;;  %v205_v58 = vld [vmem:[%s8654_s3 + $0x10] sm:$0xff] }
 0x54c   :  { %262 = vperm.xlu0 %6330, %v217_v3   ;;  %v207_v56 = vld [vmem:[%s8654_s3 + $0x20] sm:$0xff] }
 0x54d   :  { %6496 = vpow2.f32 %v5174_v60  ;;  %v5172_v62 = vmul.f32 -1.442695, %v1221_v61  ;;  %v203_v59 = vld [vmem:[%s8654_s3] sm:$0xff]  ;;  %v1281_v60 = vpop.permute.xlu1 %1280 }
 0x54f   :  { %6498 = vpow2.f32 %v5172_v62  ;;  %1396 = vperm.xlu1 %6328, %v7429_v53   ;;  %v212_v53 = vld [vmem:[%s8654_s3 + $0x48] sm:$0xff] }
 0x550   :  { %259 = vperm.xlu0 %6330, %v216_v37  }
 0x553   :  { %6331 = vset.pattern.permute.xlu1 %v6985_v51 }
 0x554   :  { %265 = vperm.xlu1 %6331, %v218_v49   ;;  %253 = vperm.xlu0 %6330, %v214_v52  }
 0x556   :  { %v6493_v63 = vpop.eup %6492 }
 0x557   :  { %v1246_v4 = vadd.f32 1.0, %v6493_v63  ;;  %v1269_v63 = vpop.permute.xlu1 %1268 }
 0x558   :  { %v6495_v5 = vpop.eup %6494  ;;  %256 = vperm.xlu1 %6331, %v215_v50   ;;  %247 = vperm.xlu0 %6330, %v212_v53  }
 0x559   :  { %v1244_v6 = vadd.f32 1.0, %v6495_v5  ;;  %6500 = vrcp.f32 %v1246_v4 }
 0x55a   :  { %v6497_v7 = vpop.eup %6496 }
 0x55b   :  { %v1247_v8 = vadd.f32 1.0, %v6497_v7  ;;  %6502 = vrcp.f32 %v1244_v6 }
 0x55c   :  { %v6499_v9 = vpop.eup %6498  ;;  %241 = vperm.xlu0 %6330, %v210_v47  }
 0x55d   :  { %6504 = vrcp.f32 %v1247_v8  ;;  %v1245_v10 = vadd.f32 1.0, %v6499_v9 }
 0x55f   :  { %6506 = vrcp.f32 %v1245_v10 }
 0x560   :  { %235 = vperm.xlu0 %6330, %v208_v48  }
 0x564   :  { %229 = vperm.xlu0 %6330, %v206_v55  }
 0x566   :  { %v6501_v11 = vpop.eup %6500 }
 0x567   :  { %v1258_v14 = vmul.f32 %v6501_v11, %v1226_v38  ;;  %v213_v38 = vld [vmem:[%s8654_s3 + $0x50] sm:$0xff] }
 0x568   :  { %v6503_v12 = vpop.eup %6502  ;;  %250 = vperm.xlu1 %6331, %v213_v38  }
 0x569   :  { %v1256_v18 = vmul.f32 %v6503_v12, %v1218_v54  ;;  %v209_v54 = vld [vmem:[%s8654_s3 + $0x30] sm:$0xff] }
 0x56a   :  { %v6505_v13 = vpop.eup %6504 }
 0x56b   :  { %v1259_v16 = vmul.f32 %v6505_v13, %v1229_v57  ;;  %v204_v57 = vld [vmem:[%s8654_s3 + $0x8] sm:$0xff] }
 0x56c   :  { %v6507_v17 = vpop.eup %6506  ;;  %244 = vperm.xlu1 %6331, %v211_v2   ;;  %223 = vperm.xlu0 %6330, %v204_v57  }
 0x56d   :  { %v1257_v19 = vmul.f32 %v6507_v17, %v1221_v61  ;;  %v1266_v20 = vpack.c.bf16 %v1259_v16, %v1258_v14  ;;  %v1277_v61 = vpop.permute.xlu0 %1276 }
 0x56f   :  { %5900 = vmatprep.subr.bf16.mxu0 %v1266_v20  ;;  %v1265_v21 = vpack.c.bf16 %v1257_v19, %v1256_v18 }
 0x570   :  { %5901 = vmatpush3.bf16.msra.mxu0 %v1266_v20  ;;  %238 = vperm.xlu1 %6331, %v209_v54   ;;  %v6399_v54 = vld [vmem:[#allocation2 + $0x38] sm:$0xff]  }
 0x571   :  { %5902 = vmatprep.subr.bf16.mxu0 %v1265_v21  ;;  %v1273_v11 = vpop.permute.xlu0 %1272 }
 0x574   :  { %5903 = vmatpush3.bf16.msra.mxu0 %v1265_v21  ;;  %232 = vperm.xlu1 %6331, %v207_v56  }
 0x577   :  { %5905 = vmatmul.mubr.msk.bf16.vlgmr.msra.gmra.mxu0 %vm8796_vm10, %v6397_v22  ;;  %vm8797_vm10 = vmmov %vm8793_vm2 }
 0x578   :  { %226 = vperm.xlu1 %6331, %v205_v58  }
 0x57c   :  { %220 = vperm.xlu1 %6331, %v203_v59   ;;  %v7605_v59 = vand.u32 127, %v63_v0 }
 0x5c2   :  { %v7599_v55 = vpop.permute.xlu1 %1384  ;;  %v7601_v56 = vpop.permute.xlu0 %1388 }
 0x5c6   :  { %v1393_v57 = vpop.permute.xlu1 %1392 }
 0x5c7   :  { %v263_v58 = vpop.permute.xlu0 %262 }
 0x5c8   :  { %vm281_vm2 = vcmp.eq.s32.totalorder %v263_v58, %v7605_v59 }
 0x637   :  { %v5906_v62 = vpop.f32.mrf.mxu0 }
 0x638   :  { %v1342_v4 = vadd.f32 %v5906_v62, %v1277_v61  ;;  %v260_v61 = vpop.permute.xlu0 %259 }
 0x639   :  { %v1333_v5 = vpop.f32.mrf.mxu0 }
 0x63a   :  { %v5181_v6 = vmul.f32 -1.442695, %v1342_v4  ;;  %v1334_v7 = vadd.f32 %v1333_v5, %v1269_v63  ;;  %v8800_v5 = vmov 0 }
 0x63b   :  { %v5907_v8 = vpop.f32.mrf.mxu0 }
 0x63c   :  { %6508 = vpow2.f32 %v5181_v6  ;;  %v5179_v9 = vmul.f32 -1.442695, %v1334_v7  ;;  %v1345_v10 = vadd.f32 %v5907_v8, %v1281_v60  ;;  %v7607_v60 = vpop.permute.xlu1 %1396  ;;  %v254_v63 = vpop.permute.xlu0 %253  ;;  %v8802_v8 = vmov 0 }
 0x63d   :  { %v1336_v12 = vpop.f32.mrf.mxu0 }
 0x63e   :  { %6510 = vpow2.f32 %v5179_v9  ;;  %v5182_v13 = vmul.f32 -1.442695, %v1345_v10  ;;  %v1337_v14 = vadd.f32 %v1336_v12, %v1273_v11  ;;  %v8804_v11 = vmov 0 }
 0x640   :  { %6512 = vpow2.f32 %v5182_v13  ;;  %v5180_v16 = vmul.f32 -1.442695, %v1337_v14  ;;  %v266_v62 = vpop.permute.xlu1 %265  ;;  %v248_v6 = vpop.permute.xlu0 %247  ;;  %v8806_v13 = vmov 0 }
 0x641   :  { %vm282_vm8 = vcmp.eq.s32.totalorder %v266_v62, %v7605_v59 }
 0x642   :  { %6514 = vpow2.f32 %v5180_v16  ;;  %vm7611_vm1 = vmpackc.low %vm282_vm8, %vm281_vm2  ;;  %vm278_vm8 = vcmp.eq.s32.totalorder %v254_v63, %v7605_v59 }
 0x643   :  { %5916 = vmatprep.subr.msk.bf16.mxu0 %vm7611_vm1, %v6986_v15 }
 0x644   :  { %v257_v0 = vpop.permute.xlu1 %256  ;;  %5917 = vmatpush3.bf16.msk.msra.mxu0 %vm7611_vm1, %v6986_v15 }
 0x645   :  { %vm279_vm14 = vcmp.eq.s32.totalorder %v257_v0, %v7605_v59 }
 0x649   :  { %v6509_v17 = vpop.eup %6508 }
 0x64a   :  { %v1362_v18 = vadd.f32 1.0, %v6509_v17  ;;  %v8808_v17 = vmov 0 }
 0x64b   :  { %v6511_v19 = vpop.eup %6510 }
 0x64c   :  { %v1360_v20 = vadd.f32 1.0, %v6511_v19  ;;  %6516 = vrcp.f32 %v1362_v18 }
 0x64d   :  { %v6513_v21 = vpop.eup %6512 }
 0x64e   :  { %v1363_v22 = vadd.f32 1.0, %v6513_v21  ;;  %6518 = vrcp.f32 %v1360_v20  ;;  %v8810_v20 = vmov 0 }
 0x64f   :  { %v6515_v25 = vpop.eup %6514 }
 0x650   :  { %6520 = vrcp.f32 %v1363_v22  ;;  %v1361_v30 = vadd.f32 1.0, %v6515_v25  ;;  %v8812_v25 = vmov 0 }
 0x652   :  { %6522 = vrcp.f32 %v1361_v30 }
 0x659   :  { %v6517_v3 = vpop.eup %6516 }
 0x65a   :  { %v1374_v52 = vmul.f32 %v6517_v3, %v1342_v4  ;;  %v8798_v4 = vmov 0 }
 0x65b   :  { %v6519_v37 = vpop.eup %6518  ;;  %v8799_v4 = vsel %vm7611_vm1, 4294967295, %v8798_v4 }
 0x65c   :  { %v1372_v38 = vmul.f32 %v6519_v37, %v1334_v7  ;;  %v251_v7 = vpop.permute.xlu1 %250 }
 0x65d   :  { %v6521_v49 = vpop.eup %6520  ;;  %vm277_vm2 = vcmp.eq.s32.totalorder %v251_v7, %v7605_v59 }
 0x65e   :  { %v1375_v50 = vmul.f32 %v6521_v49, %v1345_v10  ;;  %vm7635_vm1 = vmpackc.low %vm278_vm8, %vm277_vm2  ;;  %v242_v10 = vpop.permute.xlu0 %241 }
 0x65f   :  { %v6523_v53 = vpop.eup %6522  ;;  %v8803_v8 = vsel %vm7635_vm1, 4294967295, %v8802_v8  ;;  %vm274_vm8 = vcmp.eq.s32.totalorder %v242_v10, %v7605_v59 }
 0x660   :  { %v1373_v47 = vmul.f32 %v6523_v53, %v1337_v14  ;;  %v1382_v2 = vpack.c.bf16 %v1375_v50, %v1374_v52  ;;  %v245_v9 = vpop.permute.xlu1 %244 }
 0x662   :  { %5908 = vmatprep.subr.bf16.mxu1 %v1382_v2  ;;  %v1381_v48 = vpack.c.bf16 %v1373_v47, %v1372_v38  ;;  %v236_v16 = vpop.permute.xlu0 %235 }
 0x663   :  { %5909 = vmatpush3.bf16.msra.mxu1 %v1382_v2 }
 0x664   :  { %5910 = vmatprep.subr.bf16.mxu1 %v1381_v48  ;;  %v239_v12 = vpop.permute.xlu1 %238 }
 0x665   :  { %vm273_vm2 = vcmp.eq.s32.totalorder %v239_v12, %v7605_v59 }
 0x666   :  { %v230_v19 = vpop.permute.xlu0 %229 }
 0x667   :  { %5911 = vmatpush3.bf16.msra.mxu1 %v1381_v48 }
 0x668   :  { %v233_v14 = vpop.permute.xlu1 %232 }
 0x66a   :  { %5913 = vmatmul.mubr.msk.bf16.vlgmr.msra.gmra.mxu1 %vm8797_vm10, %v6399_v54  ;;  %vm280_vm10 = vcmp.eq.s32.totalorder %v260_v61, %v7605_v59  ;;  %v224_v22 = vpop.permute.xlu0 %223 }
 0x66b   :  { %vm7623_vm4 = vmpackc.low %vm280_vm10, %vm279_vm14  ;;  %vm276_vm14 = vcmp.eq.s32.totalorder %v248_v6, %v7605_v59  ;;  %vm275_vm10 = vcmp.eq.s32.totalorder %v245_v9, %v7605_v59 }
 0x66c   :  { %v8801_v5 = vsel %vm7623_vm4, 4294967295, %v8800_v5  ;;  %5918 = vmatprep.subr.msk.bf16.mxu0 %vm7623_vm4, %v6986_v15  ;;  %v227_v18 = vpop.permute.xlu1 %226 }
 0x66d   :  { %5919 = vmatpush3.bf16.msk.msra.mxu0 %vm7623_vm4, %v6986_v15  ;;  %vm7647_vm4 = vmpackc.low %vm276_vm14, %vm275_vm10  ;;  %vm271_vm14 = vcmp.eq.s32.totalorder %v233_v14, %v7605_v59  ;;  %vm272_vm10 = vcmp.eq.s32.totalorder %v236_v16, %v7605_v59 }
 0x66e   :  { %5920 = vmatprep.subr.msk.bf16.mxu0 %vm7635_vm1, %v6986_v15  ;;  %v8805_v11 = vsel %vm7647_vm4, 4294967295, %v8804_v11 }
 0x670   :  { %v221_v21 = vpop.permute.xlu1 %220 }
 0x671   :  { %5921 = vmatpush3.bf16.msk.msra.mxu0 %vm7635_vm1, %v6986_v15  ;;  %vm7659_vm1 = vmpackc.low %vm274_vm8, %vm273_vm2  ;;  %vm269_vm8 = vcmp.eq.s32.totalorder %v227_v18, %v7605_v59  ;;  %vm270_vm2 = vcmp.eq.s32.totalorder %v230_v19, %v7605_v59 }
 0x672   :  { %5922 = vmatprep.subr.msk.bf16.mxu0 %vm7647_vm4, %v6986_v15  ;;  %v8807_v13 = vsel %vm7659_vm1, 4294967295, %v8806_v13 }
 0x675   :  { %5923 = vmatpush3.bf16.msk.msra.mxu0 %vm7647_vm4, %v6986_v15  ;;  %vm7671_vm4 = vmpackc.low %vm272_vm10, %vm271_vm14  ;;  %vm267_vm14 = vcmp.eq.s32.totalorder %v221_v21, %v7605_v59  ;;  %vm268_vm10 = vcmp.eq.s32.totalorder %v224_v22, %v7605_v59  ;;  %v6400_v21 = vld [vmem:[#allocation2 + $0x40] sm:$0xff]   ;;  %v6993_v22 = vmov 7  }
 0x676   :  { %5924 = vmatprep.subr.msk.bf16.mxu0 %vm7659_vm1, %v6986_v15  ;;  %v8809_v17 = vsel %vm7671_vm4, 4294967295, %v8808_v17  ;;  %6332 = vset.pattern.permute.xlu1 %v6993_v22 }
 0x677   :  { %6333 = vset.pattern.permute.xlu0 %v6993_v22 }
 0x679   :  { %5925 = vmatpush3.bf16.msk.msra.mxu0 %vm7659_vm1, %v6986_v15  ;;  %vm7683_vm1 = vmpackc.low %vm270_vm2, %vm269_vm8  ;;  %vm8814_vm8 = vcmask 261120  }
 0x67a   :  { %5926 = vmatprep.subr.msk.bf16.mxu0 %vm7671_vm4, %v6986_v15  ;;  %v8811_v20 = vsel %vm7683_vm1, 4294967295, %v8810_v20  ;;  %5940 = vmatprep.mubr.msk.bf16.mxu1 %vm8814_vm8, %v6400_v21  ;;  %vm8815_vm2 = vmmov %vm8814_vm8  ;;  %vm8818_vm8 = vnez %v8761_v43 }
 0x67d   :  { %5927 = vmatpush3.bf16.msk.msra.mxu0 %vm7671_vm4, %v6986_v15  ;;  %vm7695_vm4 = vmpackc.low %vm268_vm10, %vm267_vm14  ;;  %vm8816_vm14 = vnez %v8755_v41  ;;  %vm8817_vm10 = vnez %v8758_v42 }
 0x67e   :  { %5928 = vmatprep.subr.msk.bf16.mxu0 %vm7683_vm1, %v6986_v15  ;;  %v8813_v25 = vsel %vm7695_vm4, 4294967295, %v8812_v25 }
 0x681   :  { %5929 = vmatpush3.bf16.msk.msra.mxu0 %vm7683_vm1, %v6986_v15 }
 0x682   :  { %5930 = vmatprep.subr.msk.bf16.mxu0 %vm7695_vm4, %v6986_v15 }
 0x685   :  { %5931 = vmatpush3.bf16.msk.msra.mxu0 %vm7695_vm4, %v6986_v15 }
 0x72a   :  { %v5914_v30 = vpop.f32.mrf.mxu1 }
 0x72b   :  { %v1458_v3 = vadd.f32 %v5914_v30, %v1393_v57  ;;  %v7718_v30 = vld [vmem:[%s8661_s10] sm:$0xff] }
 0x72c   :  { %v1449_v37 = vpop.f32.mrf.mxu1  ;;  %1551 = vperm.xlu1 %6332, %v7718_v30  }
 0x72d   :  { %v5189_v49 = vmul.f32 -1.442695, %v1458_v3  ;;  %v1450_v52 = vadd.f32 %v1449_v37, %v7599_v55  ;;  %v7730_v37 = vld [vmem:[%s8661_s10 + $0x10] sm:$0xff] }
 0x72e   :  { %v5915_v50 = vpop.f32.mrf.mxu1 }
 0x72f   :  { %v5187_v53 = vmul.f32 -1.442695, %v1450_v52  ;;  %v1461_v38 = vadd.f32 %v5915_v50, %v7607_v60  ;;  %6524 = vpow2.f32 %v5189_v49  ;;  %v7736_v49 = vld [vmem:[%s8661_s10 + $0x18] sm:$0xff] }
 0x730   :  { %v1452_v47 = vpop.f32.mrf.mxu1  ;;  %1559 = vperm.xlu1 %6332, %v7730_v37  }
 0x731   :  { %6526 = vpow2.f32 %v5187_v53  ;;  %v5190_v2 = vmul.f32 -1.442695, %v1461_v38  ;;  %v1453_v48 = vadd.f32 %v1452_v47, %v7601_v56 }
 0x733   :  { %6528 = vpow2.f32 %v5190_v2  ;;  %v5188_v54 = vmul.f32 -1.442695, %v1453_v48 }
 0x734   :  { %1563 = vperm.xlu1 %6332, %v7736_v49  }
 0x735   :  { %6530 = vpow2.f32 %v5188_v54 }
 0x73c   :  { %v6525_v58 = vpop.eup %6524 }
 0x73d   :  { %v1478_v63 = vadd.f32 1.0, %v6525_v58 }
 0x73e   :  { %v6527_v61 = vpop.eup %6526 }
 0x73f   :  { %v1476_v57 = vadd.f32 1.0, %v6527_v61 }
 0x740   :  { %v6529_v62 = vpop.eup %6528 }
 0x741   :  { %v1479_v0 = vadd.f32 1.0, %v6529_v62  ;;  %6532 = vrcp.f32 %v1476_v57 }
 0x742   :  { %v6531_v55 = vpop.eup %6530 }
 0x743   :  { %6534 = vrcp.f32 %v1479_v0  ;;  %v1477_v6 = vadd.f32 1.0, %v6531_v55 }
 0x744   :  { %6536 = vrcp.f32 %v1478_v63 }
 0x745   :  { %6538 = vrcp.f32 %v1477_v6 }
 0x74e   :  { %v6533_v60 = vpop.eup %6532 }
 0x74f   :  { %v1488_v12 = vmul.f32 %v6533_v60, %v1450_v52 }
 0x750   :  { %v6535_v7 = vpop.eup %6534 }
 0x751   :  { %v6537_v9 = vpop.eup %6536  ;;  %v1491_v56 = vmul.f32 %v6535_v7, %v1461_v38 }
 0x752   :  { %v6539_v10 = vpop.eup %6538  ;;  %v1490_v16 = vmul.f32 %v6537_v9, %v1458_v3  ;;  %v7724_v3 = vld [vmem:[%s8661_s10 + $0x8] sm:$0xff] }
 0x753   :  { %v1489_v14 = vmul.f32 %v6539_v10, %v1453_v48  ;;  %1555 = vperm.xlu0 %6333, %v7724_v3   ;;  %v6401_v48 = vld [vmem:[#allocation2 + $0x48] sm:$0xff]  }
 0x754   :  { %v7710_v19 = vpack.c.bf16 %v1491_v56, %v1490_v16 }
 0x755   :  { %v7708_v18 = vpack.c.bf16 %v1489_v14, %v1488_v12 }
 0x757   :  { %5932 = vmatprep.mubr.bf16.mxu0 %v7708_v18 }
 0x758   :  { %5933 = vmatmul.mubr.bf16.vlgmr.msra.gmra.mxu0 %v7710_v19 }
 0x7a7   :  { %v1552_v54 = vpop.permute.xlu1 %1551 }
 0x7ab   :  { %v1560_v58 = vpop.permute.xlu1 %1559 }
 0x7af   :  { %v1564_v63 = vpop.permute.xlu1 %1563 }
 0x7ce   :  { %v1556_v6 = vpop.permute.xlu0 %1555 }
 0x818   :  { %v5934_v52 = vpop.f32.mrf.mxu0 }
 0x81a   :  { %v1528_v50 = vpop.f32.mrf.mxu0 }
 0x81c   :  { %v5935_v53 = vpop.f32.mrf.mxu0 }
 0x81d   :  { %v1549_v38 = vpack.c.bf16 %v5935_v53, %v5934_v52 }
 0x81e   :  { %v1531_v47 = vpop.f32.mrf.mxu0 }
 0x81f   :  { %v1548_v2 = vpack.c.bf16 %v1531_v47, %v1528_v50  ;;  %5936 = vmatprep.subr.bf16.mxu1 %v1549_v38 }
 0x820   :  { %5937 = vmatpush3.bf16.msra.mxu1 %v1549_v38 }
 0x821   :  { %5938 = vmatprep.subr.bf16.mxu1 %v1548_v2 }
 0x824   :  { %5939 = vmatpush3.bf16.msra.mxu1 %v1548_v2 }
 0x825   :  { %5216 = vmatprep.subr.msk.bf16.mxu1 %vm7133_vm6, %v6986_v15 }
 0x827   :  { %5941 = vmatmul.mubr.msk.bf16.vlgmr.msra.gmra.mxu1 %vm8815_vm2, %v6401_v48  ;;  %vm8819_vm2 = vnez %v8764_v44 }
 0x828   :  { %5218 = vmatpush1.bf16.msk.msra.mxu1 %vm7140_vm9, %v6986_v15  ;;  %1697 = vmatprep.mubr.bf16.mxu1 %v6985_v51 }
 0x829   :  { %5220 = vmatprep.subr.msk.bf16.mxu1 %vm7152_vm13, %v6986_v15 }
 0x82c   :  { %5222 = vmatpush1.bf16.msk.msra.mxu1 %vm7161_vm15, %v6986_v15 }
 0x82d   :  { %5224 = vmatprep.subr.msk.bf16.mxu1 %vm7175_vm3, %v6986_v15 }
 0x830   :  { %5226 = vmatpush1.bf16.msk.msra.mxu1 %vm7185_vm5, %v6986_v15 }
 0x831   :  { %5228 = vmatprep.subr.msk.bf16.mxu1 %vm7201_vm12, %v6986_v15 }
 0x834   :  { %5230 = vmatpush1.bf16.msk.msra.mxu1 %vm7213_vm11, %v6986_v15 }
 0x835   :  { %5232 = vmatprep.subr.msk.bf16.mxu1 %vm8787_vm7, %v6986_v15  ;;  %vm8820_vm7 = vnez %v8767_v45 }
 0x838   :  { %5234 = vmatpush1.bf16.msk.msra.mxu1 %vm7245_vm0, %v6986_v15  ;;  %vm8821_vm0 = vnez %v8770_v46 }
 0x839   :  { %5236 = vmatprep.subr.msk.bf16.mxu1 %vm8816_vm14, %v6986_v15 }
 0x83c   :  { %5238 = vmatpush1.bf16.msk.msra.mxu1 %vm8817_vm10, %v6986_v15 }
 0x83d   :  { %5240 = vmatprep.subr.msk.bf16.mxu1 %vm8818_vm8, %v6986_v15  ;;  %vm8828_vm8 = vnez %v8803_v8 }
 0x840   :  { %5242 = vmatpush1.bf16.msk.msra.mxu1 %vm8819_vm2, %v6986_v15  ;;  %vm8827_vm2 = vnez %v8801_v5 }
 0x841   :  { %5244 = vmatprep.subr.msk.bf16.mxu1 %vm8820_vm7, %v6986_v15  ;;  %vm8823_vm7 = vcmask 261120  }
 0x844   :  { %5246 = vmatpush1.bf16.msk.msra.mxu1 %vm8821_vm0, %v6986_v15  ;;  %vm8822_vm0 = vcmask 785408  }
 0x8e7   :  { %v5942_v61 = vpop.f32.mrf.mxu1 }
 0x8e8   :  { %v1625_v57 = vadd.f32 %v5942_v61, %v1560_v58 }
 0x8e9   :  { %v1616_v62 = vpop.f32.mrf.mxu1 }
 0x8ea   :  { %v1617_v0 = vadd.f32 %v1616_v62, %v1552_v54  ;;  %v5213_v9 = vmul.f32 -1.442695, %v1625_v57 }
 0x8eb   :  { %v5943_v55 = vpop.f32.mrf.mxu1 }
 0x8ec   :  { %v5211_v60 = vmul.f32 -1.442695, %v1617_v0  ;;  %v1628_v7 = vadd.f32 %v5943_v55, %v1564_v63 }
 0x8ed   :  { %v1619_v10 = vpop.f32.mrf.mxu1 }
 0x8ee   :  { %6540 = vpow2.f32 %v5211_v60  ;;  %v5214_v56 = vmul.f32 -1.442695, %v1628_v7  ;;  %v1620_v12 = vadd.f32 %v1619_v10, %v1556_v6 }
 0x8f0   :  { %6542 = vpow2.f32 %v5214_v56  ;;  %v5212_v14 = vmul.f32 -1.442695, %v1620_v12 }
 0x8f1   :  { %6544 = vpow2.f32 %v5213_v9 }
 0x8f2   :  { %6546 = vpow2.f32 %v5212_v14 }
 0x8fb   :  { %v6541_v16 = vpop.eup %6540 }
 0x8fc   :  { %v1643_v21 = vadd.f32 1.0, %v6541_v16 }
 0x8fd   :  { %v6543_v22 = vpop.eup %6542 }
 0x8fe   :  { %v6545_v52 = vpop.eup %6544  ;;  %6548 = vrcp.f32 %v1643_v21  ;;  %v1646_v53 = vadd.f32 1.0, %v6543_v22 }
 0x8ff   :  { %v6547_v50 = vpop.eup %6546  ;;  %v1645_v47 = vadd.f32 1.0, %v6545_v52 }
 0x900   :  { %v1644_v38 = vadd.f32 1.0, %v6547_v50 }
 0x902   :  { %6550 = vrcp.f32 %v1644_v38  ;;  %v6403_v38 = vld [vmem:[%s8659_s8 + $0x18] sm:$0xff]  }
 0x903   :  { %6552 = vrcp.f32 %v1646_v53 }
 0x904   :  { %6554 = vrcp.f32 %v1645_v47  ;;  %v6404_v47 = vld [vmem:[#allocation2 + $0x50] sm:$0xff]  }
 0x90b   :  { %v6549_v2 = vpop.eup %6548 }
 0x90c   :  { %v1655_v48 = vmul.f32 %v6549_v2, %v1617_v0  ;;  %v6995_v2 = vmov 9  }
 0x90e   :  { %v7790_v62 = vadd.f32 %v1655_v48, %v7501_v26 }
 0x90f   :  { %v6551_v54 = vpop.eup %6550 }
 0x910   :  { %v1656_v58 = vmul.f32 %v6551_v54, %v1620_v12  ;;  %v6553_v61 = vpop.eup %6552 }
 0x911   :  { %v6555_v55 = vpop.eup %6554  ;;  %v1658_v6 = vmul.f32 %v6553_v61, %v1628_v7 }
 0x912   :  { %v7793_v63 = vadd.f32 %v1656_v58, %v7503_v29  ;;  %v1657_v9 = vmul.f32 %v6555_v55, %v1625_v57  ;;  %v6402_v29 = vld [vmem:[%s8659_s8 + $0x10] sm:$0xff]   ;;  %v6994_v57 = vmov 8  }
 0x913   :  { %v7799_v0 = vadd.f32 %v1658_v6, %v7508_v33  ;;  %5956 = vmatprep.mubr.msk.bf16.mxu0 %vm8822_vm0, %v6402_v29  ;;  %6335 = vset.pattern.permute.xlu1 %v6994_v57 }
 0x914   :  { %v1663_v60 = vpack.c.bf16 %v7793_v63, %v7790_v62  ;;  %v7802_v10 = vadd.f32 %v1657_v9, %v7510_v34  ;;  %6334 = vset.pattern.permute.xlu0 %v6994_v57  ;;  %1740 = vperm.xlu1 %6335, %v7736_v49  }
 0x915   :  { %1736 = vperm.xlu0 %6334, %v7730_v37  }
 0x916   :  { %1698 = vmatmul.mubr.bf16.vlgmr.msra.gmra.mxu1 %v1663_v60  ;;  %v1664_v26 = vpack.c.bf16 %v7799_v0, %v7802_v10 }
 0x917   :  { %1707 = vmatprep.mubr.bf16.mxu1 %v6985_v51 }
 0x918   :  { %1728 = vperm.xlu1 %6335, %v7718_v30  }
 0x919   :  { %1732 = vperm.xlu0 %6334, %v7724_v3  }
 0x91c   :  { %6336 = vset.pattern.permute.xlu1 %v6995_v2 }
 0x91d   :  { %6337 = vset.pattern.permute.xlu0 %v6995_v2  ;;  %1852 = vperm.xlu1 %6336, %v7730_v37  }
 0x91e   :  { %1708 = vmatmul.mubr.bf16.gmra.mxu1 %v1664_v26  ;;  %1856 = vperm.xlu0 %6337, %v7736_v49  }
 0x91f   :  { %5964 = vmatprep.mubr.msk.bf16.mxu1 %vm8823_vm7, %v6404_v47 }
 0x921   :  { %1844 = vperm.xlu1 %6336, %v7718_v30  }
 0x925   :  { %1848 = vperm.xlu1 %6336, %v7724_v3  }
 0x990   :  { %v1737_v48 = vpop.permute.xlu0 %1736 }
 0x994   :  { %v1733_v29 = vpop.permute.xlu0 %1732 }
 0x9d6   :  { %v1699_v33 = vpop.f32.mrf.mxu1 }
 0x9d8   :  { %v1701_v34 = vpop.f32.mrf.mxu1 }
 0x9da   :  { %v1703_v7 = vpop.f32.mrf.mxu1 }
 0x9db   :  { %v1718_v53 = vpack.c.bf16 %v1703_v7, %v1699_v33 }
 0x9dc   :  { %v1705_v56 = vpop.f32.mrf.mxu1 }
 0x9dd   :  { %v1719_v52 = vpack.c.bf16 %v1705_v56, %v1701_v34 }
 0x9de   :  { %v1709_v12 = vpop.f32.mrf.mxu1 }
 0x9e0   :  { %v1711_v14 = vpop.f32.mrf.mxu1 }
 0x9e2   :  { %v1713_v16 = vpop.f32.mrf.mxu1 }
 0x9e3   :  { %v1720_v50 = vpack.c.bf16 %v1713_v16, %v1709_v12 }
 0x9e4   :  { %v1715_v21 = vpop.f32.mrf.mxu1 }
 0x9e5   :  { %v1721_v22 = vpack.c.bf16 %v1715_v21, %v1711_v14 }
 0x9e7   :  { %5944 = vmatprep.subr.bf16.mxu0 %v1721_v22 }
 0x9e8   :  { %5945 = vmatpush3.bf16.msra.mxu0 %v1721_v22 }
 0x9e9   :  { %5946 = vmatprep.subr.bf16.mxu0 %v1719_v52 }
 0x9ec   :  { %5947 = vmatpush3.bf16.msra.mxu0 %v1719_v52 }
 0x9ed   :  { %5948 = vmatprep.subr.bf16.mxu0 %v1720_v50 }
 0x9f0   :  { %5949 = vmatpush3.bf16.msra.mxu0 %v1720_v50 }
 0x9f1   :  { %5950 = vmatprep.subr.bf16.mxu0 %v1718_v53 }
 0x9f4   :  { %5951 = vmatpush3.bf16.msra.mxu0 %v1718_v53 }
 0x9f5   :  { %5952 = vmatprep.subr.bf16.mxu0 %v7710_v19 }
 0x9f8   :  { %5953 = vmatpush3.bf16.msra.mxu0 %v7710_v19  ;;  %v1741_v19 = vpop.permute.xlu1 %1740 }
 0x9f9   :  { %5954 = vmatprep.subr.bf16.mxu0 %v7708_v18 }
 0x9fc   :  { %5955 = vmatpush3.bf16.msra.mxu0 %v7708_v18  ;;  %v1729_v18 = vpop.permute.xlu1 %1728 }
 0x9ff   :  { %5957 = vmatmul.mubr.msk.bf16.vlgmr.msra.gmra.mxu0 %vm8822_vm0, %v6403_v38  ;;  %vm8824_vm0 = vmmov %vm8823_vm7 }
 0xabf   :  { %v5958_v54 = vpop.f32.mrf.mxu0 }
 0xac0   :  { %v1802_v58 = vadd.f32 %v5958_v54, %v1737_v48 }
 0xac1   :  { %v1793_v61 = vpop.f32.mrf.mxu0 }
 0xac2   :  { %v5257_v55 = vmul.f32 -1.442695, %v1802_v58  ;;  %v1794_v6 = vadd.f32 %v1793_v61, %v1729_v18 }
 0xac3   :  { %v5959_v60 = vpop.f32.mrf.mxu0 }
 0xac4   :  { %6556 = vpow2.f32 %v5257_v55  ;;  %v5255_v9 = vmul.f32 -1.442695, %v1794_v6  ;;  %v1805_v26 = vadd.f32 %v5959_v60, %v1741_v19  ;;  %v6405_v60 = vld [vmem:[#allocation2 + $0x58] sm:$0xff]  }
 0xac5   :  { %v1796_v57 = vpop.f32.mrf.mxu0 }
 0xac6   :  { %6558 = vpow2.f32 %v5255_v9  ;;  %v5258_v33 = vmul.f32 -1.442695, %v1805_v26  ;;  %v1797_v34 = vadd.f32 %v1796_v57, %v1733_v29  ;;  %v6406_v9 = vld [vmem:[#allocation2 + $0x60] sm:$0xff]   ;;  %v6996_v29 = vmov 10  }
 0xac7   :  { %5972 = vmatprep.mubr.msk.bf16.mxu0 %vm8824_vm0, %v6406_v9  ;;  %6339 = vset.pattern.permute.xlu1 %v6996_v29 }
 0xac8   :  { %6560 = vpow2.f32 %v5258_v33  ;;  %v5256_v7 = vmul.f32 -1.442695, %v1797_v34  ;;  %6338 = vset.pattern.permute.xlu0 %v6996_v29  ;;  %1972 = vperm.xlu1 %6339, %v7736_v49  }
 0xac9   :  { %1968 = vperm.xlu0 %6338, %v7730_v37  }
 0xaca   :  { %6562 = vpow2.f32 %v5256_v7 }
 0xacc   :  { %1960 = vperm.xlu1 %6339, %v7718_v30  }
 0xacd   :  { %1964 = vperm.xlu0 %6338, %v7724_v3  }
 0xad1   :  { %v6557_v56 = vpop.eup %6556 }
 0xad2   :  { %v1822_v12 = vadd.f32 1.0, %v6557_v56 }
 0xad3   :  { %v6559_v14 = vpop.eup %6558 }
 0xad4   :  { %v1820_v16 = vadd.f32 1.0, %v6559_v14  ;;  %6564 = vrcp.f32 %v1822_v12 }
 0xad5   :  { %v6561_v21 = vpop.eup %6560 }
 0xad6   :  { %v1823_v22 = vadd.f32 1.0, %v6561_v21  ;;  %6566 = vrcp.f32 %v1820_v16 }
 0xad7   :  { %v6563_v52 = vpop.eup %6562 }
 0xad8   :  { %6568 = vrcp.f32 %v1823_v22  ;;  %v1821_v50 = vadd.f32 1.0, %v6563_v52 }
 0xada   :  { %6570 = vrcp.f32 %v1821_v50 }
 0xae1   :  { %v6565_v53 = vpop.eup %6564 }
 0xae2   :  { %v1834_v2 = vmul.f32 %v6565_v53, %v1802_v58  ;;  %v1853_v58 = vpop.permute.xlu1 %1852 }
 0xae3   :  { %v6567_v38 = vpop.eup %6566 }
 0xae4   :  { %v1832_v54 = vmul.f32 %v6567_v38, %v1794_v6 }
 0xae5   :  { %v6569_v47 = vpop.eup %6568 }
 0xae6   :  { %v1835_v19 = vmul.f32 %v6569_v47, %v1805_v26  ;;  %v1845_v6 = vpop.permute.xlu1 %1844 }
 0xae7   :  { %v6571_v48 = vpop.eup %6570 }
 0xae8   :  { %v1833_v18 = vmul.f32 %v6571_v48, %v1797_v34  ;;  %v1842_v61 = vpack.c.bf16 %v1835_v19, %v1834_v2  ;;  %v1857_v34 = vpop.permute.xlu0 %1856 }
 0xaea   :  { %5960 = vmatprep.subr.bf16.mxu1 %v1842_v61  ;;  %v1841_v55 = vpack.c.bf16 %v1833_v18, %v1832_v54  ;;  %v1849_v21 = vpop.permute.xlu1 %1848 }
 0xaeb   :  { %5961 = vmatpush3.bf16.msra.mxu1 %v1842_v61 }
 0xaec   :  { %5962 = vmatprep.subr.bf16.mxu1 %v1841_v55 }
 0xaef   :  { %5963 = vmatpush3.bf16.msra.mxu1 %v1841_v55 }
 0xaf2   :  { %5965 = vmatmul.mubr.msk.bf16.vlgmr.msra.gmra.mxu1 %vm8823_vm7, %v6405_v60  ;;  %vm8825_vm7 = vmmov %vm8824_vm0 }
 0xbb2   :  { %v5966_v26 = vpop.f32.mrf.mxu1 }
 0xbb3   :  { %v1918_v57 = vadd.f32 %v5966_v26, %v1853_v58 }
 0xbb4   :  { %v1909_v33 = vpop.f32.mrf.mxu1 }
 0xbb5   :  { %v5265_v7 = vmul.f32 -1.442695, %v1918_v57  ;;  %v1910_v56 = vadd.f32 %v1909_v33, %v1845_v6 }
 0xbb6   :  { %v5967_v12 = vpop.f32.mrf.mxu1 }
 0xbb7   :  { %6572 = vpow2.f32 %v5265_v7  ;;  %v5263_v14 = vmul.f32 -1.442695, %v1910_v56  ;;  %v1921_v16 = vadd.f32 %v5967_v12, %v1857_v34  ;;  %v6407_v12 = vld [vmem:[#allocation2 + $0x68] sm:$0xff]  }
 0xbb8   :  { %v1912_v22 = vpop.f32.mrf.mxu1 }
 0xbb9   :  { %6574 = vpow2.f32 %v5263_v14  ;;  %v5266_v52 = vmul.f32 -1.442695, %v1921_v16  ;;  %v1913_v50 = vadd.f32 %v1912_v22, %v1849_v21  ;;  %v6408_v14 = vld [vmem:[#allocation2 + $0x70] sm:$0xff]   ;;  %v6997_v21 = vmov 11  }
 0xbba   :  { %5980 = vmatprep.mubr.msk.bf16.mxu1 %vm8824_vm0, %v6408_v14  ;;  %6340 = vset.pattern.permute.xlu1 %v6997_v21 }
 0xbbb   :  { %6576 = vpow2.f32 %v5266_v52  ;;  %v5264_v53 = vmul.f32 -1.442695, %v1913_v50  ;;  %6341 = vset.pattern.permute.xlu0 %v6997_v21  ;;  %2084 = vperm.xlu1 %6340, %v7730_v37  }
 0xbbc   :  { %2088 = vperm.xlu0 %6341, %v7736_v49  }
 0xbbd   :  { %6578 = vpow2.f32 %v5264_v53 }
 0xbbf   :  { %2076 = vperm.xlu1 %6340, %v7718_v30  }
 0xbc3   :  { %2080 = vperm.xlu1 %6340, %v7724_v3  }
 0xbc4   :  { %v6573_v38 = vpop.eup %6572 }
 0xbc5   :  { %v1938_v47 = vadd.f32 1.0, %v6573_v38 }
 0xbc6   :  { %v6575_v2 = vpop.eup %6574 }
 0xbc7   :  { %v1936_v19 = vadd.f32 1.0, %v6575_v2  ;;  %6580 = vrcp.f32 %v1938_v47 }
 0xbc8   :  { %v6577_v48 = vpop.eup %6576 }
 0xbc9   :  { %v1939_v54 = vadd.f32 1.0, %v6577_v48  ;;  %6582 = vrcp.f32 %v1936_v19 }
 0xbca   :  { %v6579_v18 = vpop.eup %6578 }
 0xbcb   :  { %6584 = vrcp.f32 %v1939_v54  ;;  %v1937_v61 = vadd.f32 1.0, %v6579_v18 }
 0xbcd   :  { %6586 = vrcp.f32 %v1937_v61 }
 0xbd4   :  { %v6581_v55 = vpop.eup %6580 }
 0xbd5   :  { %v1950_v29 = vmul.f32 %v6581_v55, %v1918_v57  ;;  %v1973_v57 = vpop.permute.xlu1 %1972 }
 0xbd6   :  { %v6583_v60 = vpop.eup %6582 }
 0xbd7   :  { %v1948_v26 = vmul.f32 %v6583_v60, %v1910_v56  ;;  %v1969_v56 = vpop.permute.xlu0 %1968 }
 0xbd8   :  { %v6585_v9 = vpop.eup %6584 }
 0xbd9   :  { %v1951_v58 = vmul.f32 %v6585_v9, %v1921_v16  ;;  %v1961_v22 = vpop.permute.xlu1 %1960 }
 0xbda   :  { %v6587_v6 = vpop.eup %6586 }
 0xbdb   :  { %v1949_v33 = vmul.f32 %v6587_v6, %v1913_v50  ;;  %v1958_v34 = vpack.c.bf16 %v1951_v58, %v1950_v29  ;;  %v1965_v48 = vpop.permute.xlu0 %1964 }
 0xbdd   :  { %5968 = vmatprep.subr.bf16.mxu0 %v1958_v34  ;;  %v1957_v7 = vpack.c.bf16 %v1949_v33, %v1948_v26 }
 0xbde   :  { %5969 = vmatpush3.bf16.msra.mxu0 %v1958_v34 }
 0xbdf   :  { %5970 = vmatprep.subr.bf16.mxu0 %v1957_v7 }
 0xbe2   :  { %5971 = vmatpush3.bf16.msra.mxu0 %v1957_v7 }
 0xbe5   :  { %5973 = vmatmul.mubr.msk.bf16.vlgmr.msra.gmra.mxu0 %vm8825_vm7, %v6407_v12  ;;  %vm8826_vm7 = vnez %v8799_v4 }
 0xca5   :  { %v5974_v16 = vpop.f32.mrf.mxu0 }
 0xca6   :  { %v2034_v52 = vadd.f32 %v5974_v16, %v1969_v56 }
 0xca7   :  { %v2025_v50 = vpop.f32.mrf.mxu0 }
 0xca8   :  { %v5273_v53 = vmul.f32 -1.442695, %v2034_v52  ;;  %v2026_v38 = vadd.f32 %v2025_v50, %v1961_v22 }
 0xca9   :  { %v5975_v47 = vpop.f32.mrf.mxu0 }
 0xcaa   :  { %6588 = vpow2.f32 %v5273_v53  ;;  %v5271_v2 = vmul.f32 -1.442695, %v2026_v38  ;;  %v2037_v19 = vadd.f32 %v5975_v47, %v1973_v57  ;;  %v6409_v47 = vld [vmem:[#allocation2 + $0x78] sm:$0xff]  }
 0xcab   :  { %v2028_v54 = vpop.f32.mrf.mxu0 }
 0xcac   :  { %6590 = vpow2.f32 %v5271_v2  ;;  %v5274_v18 = vmul.f32 -1.442695, %v2037_v19  ;;  %v2029_v61 = vadd.f32 %v2028_v54, %v1965_v48  ;;  %v2085_v2 = vpop.permute.xlu1 %2084 }
 0xcae   :  { %6592 = vpow2.f32 %v5274_v18  ;;  %v5272_v55 = vmul.f32 -1.442695, %v2029_v61 }
 0xcb0   :  { %6594 = vpow2.f32 %v5272_v55 }
 0xcb7   :  { %v6589_v60 = vpop.eup %6588 }
 0xcb8   :  { %v2054_v9 = vadd.f32 1.0, %v6589_v60 }
 0xcb9   :  { %v6591_v29 = vpop.eup %6590 }
 0xcba   :  { %v2052_v58 = vadd.f32 1.0, %v6591_v29  ;;  %6596 = vrcp.f32 %v2054_v9 }
 0xcbb   :  { %v6593_v6 = vpop.eup %6592 }
 0xcbc   :  { %v2055_v26 = vadd.f32 1.0, %v6593_v6  ;;  %6598 = vrcp.f32 %v2052_v58 }
 0xcbd   :  { %v6595_v33 = vpop.eup %6594 }
 0xcbe   :  { %6600 = vrcp.f32 %v2055_v26  ;;  %v2053_v34 = vadd.f32 1.0, %v6595_v33 }
 0xcc0   :  { %6602 = vrcp.f32 %v2053_v34 }
 0xcc7   :  { %v6597_v7 = vpop.eup %6596 }
 0xcc8   :  { %v2066_v21 = vmul.f32 %v6597_v7, %v2034_v52  ;;  %v6410_v52 = vld [vmem:[#allocation2 + $0x80] sm:$0xff]  }
 0xcc9   :  { %v6599_v12 = vpop.eup %6598 }
 0xcca   :  { %v2064_v16 = vmul.f32 %v6599_v12, %v2026_v38  ;;  %v6998_v38 = vmov 12  }
 0xccb   :  { %v6601_v14 = vpop.eup %6600  ;;  %6343 = vset.pattern.permute.xlu1 %v6998_v38  ;;  %6342 = vset.pattern.permute.xlu0 %v6998_v38 }
 0xccc   :  { %v2067_v57 = vmul.f32 %v6601_v14, %v2037_v19  ;;  %2196 = vperm.xlu1 %6343, %v7724_v3   ;;  %2192 = vperm.xlu0 %6342, %v7718_v30   ;;  %v2077_v19 = vpop.permute.xlu1 %2076 }
 0xccd   :  { %v6603_v56 = vpop.eup %6602 }
 0xcce   :  { %v2065_v22 = vmul.f32 %v6603_v56, %v2029_v61  ;;  %v2074_v50 = vpack.c.bf16 %v2067_v57, %v2066_v21  ;;  %v2089_v61 = vpop.permute.xlu0 %2088 }
 0xcd0   :  { %5976 = vmatprep.subr.bf16.mxu1 %v2074_v50  ;;  %v2073_v53 = vpack.c.bf16 %v2065_v22, %v2064_v16  ;;  %2200 = vperm.xlu1 %6343, %v7730_v37   ;;  %v2081_v6 = vpop.permute.xlu1 %2080 }
 0xcd1   :  { %5977 = vmatpush3.bf16.msra.mxu1 %v2074_v50  ;;  %2204 = vperm.xlu0 %6342, %v7736_v49  }
 0xcd2   :  { %5978 = vmatprep.subr.bf16.mxu1 %v2073_v53 }
 0xcd5   :  { %5979 = vmatpush3.bf16.msra.mxu1 %v2073_v53 }
 0xcd6   :  { %5992 = vmatprep.subr.msk.bf16.mxu1 %vm8826_vm7, %v6986_v15 }
 0xcd8   :  { %5981 = vmatmul.mubr.msk.bf16.vlgmr.msra.gmra.mxu1 %vm8824_vm0, %v6409_v47  ;;  %vm8829_vm0 = vnez %v8805_v11 }
 0xcd9   :  { %5993 = vmatpush3.bf16.msk.msra.mxu1 %vm8826_vm7, %v6986_v15  ;;  %vm8830_vm7 = vnez %v8807_v13 }
 0xcda   :  { %5994 = vmatprep.subr.msk.bf16.mxu1 %vm8827_vm2, %v6986_v15 }
 0xcdd   :  { %5995 = vmatpush3.bf16.msk.msra.mxu1 %vm8827_vm2, %v6986_v15  ;;  %vm8831_vm2 = vnez %v8809_v17 }
 0xcde   :  { %5996 = vmatprep.subr.msk.bf16.mxu1 %vm8828_vm8, %v6986_v15 }
 0xce1   :  { %5997 = vmatpush3.bf16.msk.msra.mxu1 %vm8828_vm8, %v6986_v15 }
 0xce2   :  { %5998 = vmatprep.subr.msk.bf16.mxu1 %vm8829_vm0, %v6986_v15 }
 0xce5   :  { %5999 = vmatpush3.bf16.msk.msra.mxu1 %vm8829_vm0, %v6986_v15 }
 0xce6   :  { %6000 = vmatprep.subr.msk.bf16.mxu1 %vm8830_vm7, %v6986_v15 }
 0xce9   :  { %6001 = vmatpush3.bf16.msk.msra.mxu1 %vm8830_vm7, %v6986_v15  ;;  %vm8832_vm7 = vcmask 261120  }
 0xcea   :  { %6002 = vmatprep.subr.msk.bf16.mxu1 %vm8831_vm2, %v6986_v15  ;;  %5988 = vmatprep.mubr.msk.bf16.mxu0 %vm8832_vm7, %v6410_v52 }
 0xced   :  { %6003 = vmatpush3.bf16.msk.msra.mxu1 %vm8831_vm2, %v6986_v15 }
 0xcee   :  { %6004 = vmatprep.subr.msk.bf16.mxu1 %vm7683_vm1, %v6986_v15 }
 0xcf1   :  { %6005 = vmatpush3.bf16.msk.msra.mxu1 %vm7683_vm1, %v6986_v15 }
 0xcf2   :  { %6006 = vmatprep.subr.msk.bf16.mxu1 %vm7695_vm4, %v6986_v15 }
 0xcf5   :  { %6007 = vmatpush3.bf16.msk.msra.mxu1 %vm7695_vm4, %v6986_v15 }
 0xd98   :  { %v5982_v48 = vpop.f32.mrf.mxu1 }
 0xd99   :  { %v2150_v54 = vadd.f32 %v5982_v48, %v2085_v2 }
 0xd9a   :  { %v2141_v18 = vpop.f32.mrf.mxu1 }
 0xd9b   :  { %v5281_v55 = vmul.f32 -1.442695, %v2150_v54  ;;  %v2142_v60 = vadd.f32 %v2141_v18, %v2077_v19 }
 0xd9c   :  { %v5983_v9 = vpop.f32.mrf.mxu1 }
 0xd9d   :  { %6604 = vpow2.f32 %v5281_v55  ;;  %v5279_v29 = vmul.f32 -1.442695, %v2142_v60  ;;  %v2153_v58 = vadd.f32 %v5983_v9, %v2089_v61  ;;  %v6411_v9 = vld [vmem:[#allocation2 + $0x88] sm:$0xff]  }
 0xd9e   :  { %v2144_v26 = vpop.f32.mrf.mxu1 }
 0xd9f   :  { %6606 = vpow2.f32 %v5279_v29  ;;  %v5282_v33 = vmul.f32 -1.442695, %v2153_v58  ;;  %v2145_v34 = vadd.f32 %v2144_v26, %v2081_v6  ;;  %v2197_v29 = vpop.permute.xlu1 %2196  ;;  %v2193_v6 = vpop.permute.xlu0 %2192 }
 0xda1   :  { %6608 = vpow2.f32 %v5282_v33  ;;  %v5280_v7 = vmul.f32 -1.442695, %v2145_v34 }
 0xda3   :  { %6610 = vpow2.f32 %v5280_v7  ;;  %v2201_v26 = vpop.permute.xlu1 %2200 }
 0xdaa   :  { %v6605_v12 = vpop.eup %6604 }
 0xdab   :  { %v2170_v14 = vadd.f32 1.0, %v6605_v12 }
 0xdac   :  { %v6607_v21 = vpop.eup %6606 }
 0xdad   :  { %v2168_v57 = vadd.f32 1.0, %v6607_v21  ;;  %6612 = vrcp.f32 %v2170_v14 }
 0xdae   :  { %v6609_v56 = vpop.eup %6608 }
 0xdaf   :  { %v2171_v16 = vadd.f32 1.0, %v6609_v56  ;;  %6614 = vrcp.f32 %v2168_v57 }
 0xdb0   :  { %v6611_v22 = vpop.eup %6610 }
 0xdb1   :  { %6616 = vrcp.f32 %v2171_v16  ;;  %v2169_v50 = vadd.f32 1.0, %v6611_v22 }
 0xdb3   :  { %6618 = vrcp.f32 %v2169_v50 }
 0xdba   :  { %v6613_v53 = vpop.eup %6612 }
 0xdbb   :  { %v2182_v38 = vmul.f32 %v6613_v53, %v2150_v54  ;;  %v2205_v54 = vpop.permute.xlu0 %2204 }
 0xdbc   :  { %v6615_v47 = vpop.eup %6614 }
 0xdbd   :  { %v2180_v48 = vmul.f32 %v6615_v47, %v2142_v60 }
 0xdbe   :  { %v6617_v52 = vpop.eup %6616 }
 0xdbf   :  { %v2183_v2 = vmul.f32 %v6617_v52, %v2153_v58 }
 0xdc0   :  { %v6619_v19 = vpop.eup %6618 }
 0xdc1   :  { %v2181_v18 = vmul.f32 %v6619_v19, %v2145_v34  ;;  %v2190_v61 = vpack.c.bf16 %v2183_v2, %v2182_v38 }
 0xdc3   :  { %5984 = vmatprep.subr.bf16.mxu0 %v2190_v61  ;;  %v2189_v55 = vpack.c.bf16 %v2181_v18, %v2180_v48 }
 0xdc4   :  { %5985 = vmatpush3.bf16.msra.mxu0 %v2190_v61 }
 0xdc5   :  { %5986 = vmatprep.subr.bf16.mxu0 %v2189_v55 }
 0xdc8   :  { %5987 = vmatpush3.bf16.msra.mxu0 %v2189_v55 }
 0xdcb   :  { %5989 = vmatmul.mubr.msk.bf16.vlgmr.msra.gmra.mxu0 %vm8832_vm7, %v6411_v9 }
 0xe8b   :  { %v5990_v33 = vpop.f32.mrf.mxu0 }
 0xe8c   :  { %v2266_v7 = vadd.f32 %v5990_v33, %v2201_v26 }
 0xe8d   :  { %v2257_v12 = vpop.f32.mrf.mxu0 }
 0xe8e   :  { %v5289_v58 = vmul.f32 -1.442695, %v2266_v7  ;;  %v2258_v14 = vadd.f32 %v2257_v12, %v2193_v6 }
 0xe8f   :  { %v5991_v60 = vpop.f32.mrf.mxu0 }
 0xe90   :  { %v5287_v34 = vmul.f32 -1.442695, %v2258_v14  ;;  %v2269_v21 = vadd.f32 %v5991_v60, %v2205_v54  ;;  %6620 = vpow2.f32 %v5289_v58  ;;  %v6412_v58 = vld [vmem:[#allocation2 + $0x90] sm:$0xff]   ;;  %v6999_v60 = vmov 13  }
 0xe91   :  { %v2260_v57 = vpop.f32.mrf.mxu0  ;;  %6016 = vmatprep.mubr.msk.bf16.mxu0 %vm8832_vm7, %v6412_v58  ;;  %6344 = vset.pattern.permute.xlu1 %v6999_v60 }
 0xe92   :  { %6622 = vpow2.f32 %v5287_v34  ;;  %v5290_v56 = vmul.f32 -1.442695, %v2269_v21  ;;  %v2261_v16 = vadd.f32 %v2260_v57, %v2197_v29  ;;  %6345 = vset.pattern.permute.xlu0 %v6999_v60  ;;  %2359 = vperm.xlu1 %6344, %v7718_v30  }
 0xe93   :  { %2363 = vperm.xlu0 %6345, %v7724_v3  }
 0xe94   :  { %6624 = vpow2.f32 %v5290_v56  ;;  %v5288_v22 = vmul.f32 -1.442695, %v2261_v16 }
 0xe96   :  { %6626 = vpow2.f32 %v5288_v22  ;;  %2367 = vperm.xlu1 %6344, %v7730_v37  }
 0xe9a   :  { %2371 = vperm.xlu1 %6344, %v7736_v49  }
 0xe9d   :  { %v6621_v50 = vpop.eup %6620 }
 0xe9e   :  { %v2286_v38 = vadd.f32 1.0, %v6621_v50 }
 0xe9f   :  { %v6623_v53 = vpop.eup %6622 }
 0xea0   :  { %v2284_v47 = vadd.f32 1.0, %v6623_v53 }
 0xea1   :  { %v6625_v52 = vpop.eup %6624 }
 0xea2   :  { %v2287_v2 = vadd.f32 1.0, %v6625_v52  ;;  %6628 = vrcp.f32 %v2284_v47 }
 0xea3   :  { %v6627_v19 = vpop.eup %6626 }
 0xea4   :  { %6630 = vrcp.f32 %v2287_v2  ;;  %v2285_v48 = vadd.f32 1.0, %v6627_v19 }
 0xea5   :  { %6632 = vrcp.f32 %v2286_v38 }
 0xea6   :  { %6634 = vrcp.f32 %v2285_v48 }
 0xeaf   :  { %v6629_v18 = vpop.eup %6628 }
 0xeb0   :  { %v2296_v6 = vmul.f32 %v6629_v18, %v2258_v14 }
 0xeb1   :  { %v6631_v61 = vpop.eup %6630 }
 0xeb2   :  { %v6633_v55 = vpop.eup %6632  ;;  %v2299_v29 = vmul.f32 %v6631_v61, %v2269_v21 }
 0xeb3   :  { %v6635_v9 = vpop.eup %6634  ;;  %v2298_v33 = vmul.f32 %v6633_v55, %v2266_v7 }
 0xeb4   :  { %v2297_v26 = vmul.f32 %v6635_v9, %v2261_v16  ;;  %v6413_v16 = vld [vmem:[#allocation2 + $0x98] sm:$0xff]  }
 0xeb5   :  { %v7896_v54 = vpack.c.bf16 %v2299_v29, %v2298_v33 }
 0xeb6   :  { %v7894_v12 = vpack.c.bf16 %v2297_v26, %v2296_v6 }
 0xeb8   :  { %6008 = vmatprep.mubr.bf16.mxu1 %v7894_v12 }
 0xeb9   :  { %6009 = vmatmul.mubr.bf16.vlgmr.msra.gmra.mxu1 %v7896_v54 }
 0xf0d   :  { %v2360_v22 = vpop.permute.xlu1 %2359 }
 0xf0e   :  { %v2364_v48 = vpop.permute.xlu0 %2363 }
 0xf11   :  { %v2368_v50 = vpop.permute.xlu1 %2367 }
 0xf15   :  { %v2372_v38 = vpop.permute.xlu1 %2371 }
 0xf79   :  { %v6010_v7 = vpop.f32.mrf.mxu1 }
 0xf7b   :  { %v2336_v14 = vpop.f32.mrf.mxu1 }
 0xf7d   :  { %v6011_v34 = vpop.f32.mrf.mxu1 }
 0xf7e   :  { %v2357_v21 = vpack.c.bf16 %v6011_v34, %v6010_v7 }
 0xf7f   :  { %v2339_v57 = vpop.f32.mrf.mxu1 }
 0xf80   :  { %v2356_v56 = vpack.c.bf16 %v2339_v57, %v2336_v14  ;;  %6012 = vmatprep.subr.bf16.mxu0 %v2357_v21 }
 0xf81   :  { %6013 = vmatpush3.bf16.msra.mxu0 %v2357_v21 }
 0xf82   :  { %6014 = vmatprep.subr.bf16.mxu0 %v2356_v56 }
 0xf85   :  { %6015 = vmatpush3.bf16.msra.mxu0 %v2356_v56 }
 0xf86   :  { %5316 = vmatprep.subr.msk.bf16.mxu0 %vm7133_vm6, %v6986_v15 }
 0xf88   :  { %6017 = vmatmul.mubr.msk.bf16.vlgmr.msra.gmra.mxu0 %vm8832_vm7, %v6413_v16  ;;  %vm8833_vm7 = vnez %v8750_v39 }
 0xf89   :  { %5318 = vmatpush1.bf16.msk.msra.mxu0 %vm7140_vm9, %v6986_v15  ;;  %2505 = vmatprep.mubr.bf16.mxu0 %v6985_v51 }
 0xf8a   :  { %5320 = vmatprep.subr.msk.bf16.mxu0 %vm7152_vm13, %v6986_v15 }
 0xf8d   :  { %5322 = vmatpush1.bf16.msk.msra.mxu0 %vm7161_vm15, %v6986_v15  ;;  %vm8834_vm15 = vnez %v8752_v40 }
 0xf8e   :  { %5324 = vmatprep.subr.msk.bf16.mxu0 %vm7175_vm3, %v6986_v15 }
 0xf91   :  { %5326 = vmatpush1.bf16.msk.msra.mxu0 %vm7185_vm5, %v6986_v15 }
 0xf92   :  { %5328 = vmatprep.subr.msk.bf16.mxu0 %vm7201_vm12, %v6986_v15  ;;  %vm8835_vm12 = vnez %v8761_v43 }
 0xf95   :  { %5330 = vmatpush1.bf16.msk.msra.mxu0 %vm7213_vm11, %v6986_v15  ;;  %vm8836_vm11 = vnez %v8764_v44 }
 0xf96   :  { %5332 = vmatprep.subr.msk.bf16.mxu0 %vm8833_vm7, %v6986_v15  ;;  %vm8837_vm7 = vnez %v8767_v45 }
 0xf99   :  { %5334 = vmatpush1.bf16.msk.msra.mxu0 %vm8834_vm15, %v6986_v15  ;;  %vm8838_vm15 = vnez %v8770_v46 }
 0xf9a   :  { %5336 = vmatprep.subr.msk.bf16.mxu0 %vm8816_vm14, %v6986_v15 }
 0xf9d   :  { %5338 = vmatpush1.bf16.msk.msra.mxu0 %vm8817_vm10, %v6986_v15 }
 0xf9e   :  { %5340 = vmatprep.subr.msk.bf16.mxu0 %vm8835_vm12, %v6986_v15 }
 0xfa1   :  { %5342 = vmatpush1.bf16.msk.msra.mxu0 %vm8836_vm11, %v6986_v15  ;;  %vm8844_vm11 = vnez %v8801_v5  ;;  %v7016_v5 = vmov 30  }
 0xfa2   :  { %5344 = vmatprep.subr.msk.bf16.mxu0 %vm8837_vm7, %v6986_v15  ;;  %vm8840_vm7 = vcmask 261120  }
 0xfa5   :  { %5346 = vmatpush1.bf16.msk.msra.mxu0 %vm8838_vm15, %v6986_v15  ;;  %vm8839_vm15 = vcmask 785408  }
0x1048   :  { %v6018_v53 = vpop.f32.mrf.mxu0 }
0x1049   :  { %v2433_v47 = vadd.f32 %v6018_v53, %v2368_v50 }
0x104a   :  { %v2424_v52 = vpop.f32.mrf.mxu0 }
0x104b   :  { %v2425_v2 = vadd.f32 %v2424_v52, %v2360_v22  ;;  %v5313_v55 = vmul.f32 -1.442695, %v2433_v47 }
0x104c   :  { %v6019_v19 = vpop.f32.mrf.mxu0 }
0x104d   :  { %v5311_v18 = vmul.f32 -1.442695, %v2425_v2  ;;  %v2436_v61 = vadd.f32 %v6019_v19, %v2372_v38 }
0x104e   :  { %v2427_v9 = vpop.f32.mrf.mxu0 }
0x104f   :  { %6636 = vpow2.f32 %v5311_v18  ;;  %v5314_v29 = vmul.f32 -1.442695, %v2436_v61  ;;  %v2428_v6 = vadd.f32 %v2427_v9, %v2364_v48 }
0x1051   :  { %6638 = vpow2.f32 %v5314_v29  ;;  %v5312_v26 = vmul.f32 -1.442695, %v2428_v6 }
0x1052   :  { %6640 = vpow2.f32 %v5313_v55 }
0x1053   :  { %6642 = vpow2.f32 %v5312_v26 }
0x105c   :  { %v6637_v33 = vpop.eup %6636 }
0x105d   :  { %v2451_v58 = vadd.f32 1.0, %v6637_v33 }
0x105e   :  { %v6639_v60 = vpop.eup %6638 }
0x105f   :  { %v6641_v7 = vpop.eup %6640  ;;  %6644 = vrcp.f32 %v2451_v58  ;;  %v2454_v34 = vadd.f32 1.0, %v6639_v60 }
0x1060   :  { %v6643_v14 = vpop.eup %6642  ;;  %v2453_v57 = vadd.f32 1.0, %v6641_v7 }
0x1061   :  { %v2452_v21 = vadd.f32 1.0, %v6643_v14  ;;  %v7001_v14 = vmov 15  }
0x1063   :  { %6646 = vrcp.f32 %v2452_v21  ;;  %v8010_v21 = vld [vmem:[%s8661_s10 + $0x8] sm:$0xff] }
0x1064   :  { %6648 = vrcp.f32 %v2454_v34  ;;  %v7998_v34 = vld [vmem:[%s8661_s10 + $0x18] sm:$0xff] }
0x1065   :  { %6650 = vrcp.f32 %v2453_v57 }
0x106c   :  { %v6645_v56 = vpop.eup %6644 }
0x106d   :  { %v2463_v16 = vmul.f32 %v6645_v56, %v2425_v2 }
0x106f   :  { %v7956_v52 = vadd.f32 %v2463_v16, %v7790_v62 }
0x1070   :  { %v6647_v22 = vpop.eup %6646 }
0x1071   :  { %v2464_v50 = vmul.f32 %v6647_v22, %v2428_v6  ;;  %v6649_v53 = vpop.eup %6648 }
0x1072   :  { %v6651_v19 = vpop.eup %6650  ;;  %v2466_v48 = vmul.f32 %v6649_v53, %v2436_v61 }
0x1073   :  { %v7959_v38 = vadd.f32 %v2464_v50, %v7793_v63  ;;  %v2465_v55 = vmul.f32 %v6651_v19, %v2433_v47  ;;  %v6414_v63 = vld [vmem:[%s8659_s8 + $0x20] sm:$0xff]   ;;  %v7000_v47 = vmov 14  }
0x1074   :  { %v7965_v2 = vadd.f32 %v2466_v48, %v7799_v0  ;;  %6032 = vmatprep.mubr.msk.bf16.mxu1 %vm8839_vm15, %v6414_v63  ;;  %6347 = vset.pattern.permute.xlu1 %v7000_v47 }
0x1075   :  { %v2471_v18 = vpack.c.bf16 %v7959_v38, %v7956_v52  ;;  %v7968_v9 = vadd.f32 %v2465_v55, %v7802_v10  ;;  %6346 = vset.pattern.permute.xlu0 %v7000_v47  ;;  %2548 = vperm.xlu1 %6347, %v7736_v49  }
0x1076   :  { %2544 = vperm.xlu0 %6346, %v7730_v37  }
0x1077   :  { %2506 = vmatmul.mubr.bf16.vlgmr.msra.gmra.mxu0 %v2471_v18  ;;  %v2472_v62 = vpack.c.bf16 %v7965_v2, %v7968_v9 }
0x1078   :  { %2515 = vmatprep.mubr.bf16.mxu0 %v6985_v51 }
0x1079   :  { %2536 = vperm.xlu1 %6347, %v7718_v30   ;;  %v6415_v30 = vld [vmem:[%s8659_s8 + $0x28] sm:$0xff]  }
0x107a   :  { %2540 = vperm.xlu0 %6346, %v7724_v3   ;;  %v6416_v3 = vld [vmem:[#allocation2 + $0xa0] sm:$0xff]  }
0x107d   :  { %6348 = vset.pattern.permute.xlu1 %v7001_v14 }
0x107e   :  { %6349 = vset.pattern.permute.xlu0 %v7001_v14 }
0x107f   :  { %2516 = vmatmul.mubr.bf16.gmra.mxu0 %v2472_v62  ;;  %2664 = vperm.xlu0 %6349, %v7998_v34  }
0x1080   :  { %6040 = vmatprep.mubr.msk.bf16.mxu0 %vm8840_vm7, %v6416_v3 }
0x10f0   :  { %v2549_v57 = vpop.permute.xlu1 %2548 }
0x10f1   :  { %v2545_v56 = vpop.permute.xlu0 %2544 }
0x10f4   :  { %v2537_v22 = vpop.permute.xlu1 %2536 }
0x10f5   :  { %v2541_v63 = vpop.permute.xlu0 %2540 }
0x1137   :  { %v2507_v0 = vpop.f32.mrf.mxu0 }
0x1139   :  { %v2509_v10 = vpop.f32.mrf.mxu0 }
0x113b   :  { %v2511_v61 = vpop.f32.mrf.mxu0 }
0x113c   :  { %v2526_v37 = vpack.c.bf16 %v2511_v61, %v2507_v0 }
0x113d   :  { %v2513_v29 = vpop.f32.mrf.mxu0 }
0x113e   :  { %v2527_v7 = vpack.c.bf16 %v2513_v29, %v2509_v10 }
0x113f   :  { %v2517_v6 = vpop.f32.mrf.mxu0 }
0x1141   :  { %v2519_v26 = vpop.f32.mrf.mxu0 }
0x1143   :  { %v2521_v33 = vpop.f32.mrf.mxu0 }
0x1144   :  { %v2528_v49 = vpack.c.bf16 %v2521_v33, %v2517_v6 }
0x1145   :  { %v2523_v58 = vpop.f32.mrf.mxu0 }
0x1146   :  { %v2529_v60 = vpack.c.bf16 %v2523_v58, %v2519_v26 }
0x1148   :  { %6020 = vmatprep.subr.bf16.mxu1 %v2529_v60 }
0x1149   :  { %6021 = vmatpush3.bf16.msra.mxu1 %v2529_v60 }
0x114a   :  { %6022 = vmatprep.subr.bf16.mxu1 %v2527_v7 }
0x114d   :  { %6023 = vmatpush3.bf16.msra.mxu1 %v2527_v7 }
0x114e   :  { %6024 = vmatprep.subr.bf16.mxu1 %v2528_v49 }
0x1151   :  { %6025 = vmatpush3.bf16.msra.mxu1 %v2528_v49 }
0x1152   :  { %6026 = vmatprep.subr.bf16.mxu1 %v2526_v37 }
0x1155   :  { %6027 = vmatpush3.bf16.msra.mxu1 %v2526_v37 }
0x1156   :  { %6028 = vmatprep.subr.bf16.mxu1 %v7896_v54 }
0x1159   :  { %6029 = vmatpush3.bf16.msra.mxu1 %v7896_v54  ;;  %v7992_v54 = vld [vmem:[%s8661_s10 + $0x10] sm:$0xff] }
0x115a   :  { %6030 = vmatprep.subr.bf16.mxu1 %v7894_v12  ;;  %2660 = vperm.xlu1 %6348, %v7992_v54  }
0x115d   :  { %6031 = vmatpush3.bf16.msra.mxu1 %v7894_v12  ;;  %v8004_v12 = vld [vmem:[%s8661_s10] sm:$0xff] }
0x115e   :  { %2652 = vperm.xlu1 %6348, %v8004_v12  }
0x1160   :  { %6033 = vmatmul.mubr.msk.bf16.vlgmr.msra.gmra.mxu1 %vm8839_vm15, %v6415_v30  ;;  %vm8841_vm15 = vmmov %vm8840_vm7 }
0x1162   :  { %2656 = vperm.xlu1 %6348, %v8010_v21  }
0x1220   :  { %v6034_v16 = vpop.f32.mrf.mxu1 }
0x1221   :  { %v2610_v50 = vadd.f32 %v6034_v16, %v2545_v56 }
0x1222   :  { %v2601_v53 = vpop.f32.mrf.mxu1 }
0x1223   :  { %v5357_v19 = vmul.f32 -1.442695, %v2610_v50  ;;  %v2602_v48 = vadd.f32 %v2601_v53, %v2537_v22 }
0x1224   :  { %v6035_v18 = vpop.f32.mrf.mxu1 }
0x1225   :  { %6652 = vpow2.f32 %v5357_v19  ;;  %v5355_v55 = vmul.f32 -1.442695, %v2602_v48  ;;  %v2613_v62 = vadd.f32 %v6035_v18, %v2549_v57  ;;  %v6417_v18 = vld [vmem:[#allocation2 + $0xa8] sm:$0xff]  }
0x1226   :  { %v2604_v47 = vpop.f32.mrf.mxu1 }
0x1227   :  { %6654 = vpow2.f32 %v5355_v55  ;;  %v5358_v0 = vmul.f32 -1.442695, %v2613_v62  ;;  %v2605_v10 = vadd.f32 %v2604_v47, %v2541_v63  ;;  %v6418_v55 = vld [vmem:[#allocation2 + $0xb0] sm:$0xff]   ;;  %v7002_v63 = vmov 16  }
0x1228   :  { %6048 = vmatprep.mubr.msk.bf16.mxu1 %vm8841_vm15, %v6418_v55  ;;  %6351 = vset.pattern.permute.xlu1 %v7002_v63  ;;  %vm8842_vm15 = vmmov %vm8840_vm7 }
0x1229   :  { %6656 = vpow2.f32 %v5358_v0  ;;  %v5356_v61 = vmul.f32 -1.442695, %v2605_v10  ;;  %6350 = vset.pattern.permute.xlu0 %v7002_v63  ;;  %2780 = vperm.xlu1 %6351, %v7998_v34  }
0x122a   :  { %2776 = vperm.xlu0 %6350, %v7992_v54  }
0x122b   :  { %6658 = vpow2.f32 %v5356_v61 }
0x122d   :  { %2768 = vperm.xlu1 %6351, %v8004_v12  }
0x122e   :  { %2772 = vperm.xlu0 %6350, %v8010_v21  }
0x1232   :  { %v6653_v29 = vpop.eup %6652 }
0x1233   :  { %v2630_v6 = vadd.f32 1.0, %v6653_v29 }
0x1234   :  { %v6655_v26 = vpop.eup %6654 }
0x1235   :  { %v2628_v33 = vadd.f32 1.0, %v6655_v26  ;;  %6660 = vrcp.f32 %v2630_v6 }
0x1236   :  { %v6657_v58 = vpop.eup %6656 }
0x1237   :  { %v2631_v60 = vadd.f32 1.0, %v6657_v58  ;;  %6662 = vrcp.f32 %v2628_v33 }
0x1238   :  { %v6659_v7 = vpop.eup %6658 }
0x1239   :  { %6664 = vrcp.f32 %v2631_v60  ;;  %v2629_v49 = vadd.f32 1.0, %v6659_v7 }
0x123b   :  { %6666 = vrcp.f32 %v2629_v49 }
0x1242   :  { %v6661_v37 = vpop.eup %6660 }
0x1243   :  { %v2642_v14 = vmul.f32 %v6661_v37, %v2610_v50  ;;  %v2661_v50 = vpop.permute.xlu1 %2660 }
0x1244   :  { %v6663_v30 = vpop.eup %6662 }
0x1245   :  { %v2640_v16 = vmul.f32 %v6663_v30, %v2602_v48 }
0x1246   :  { %v6665_v3 = vpop.eup %6664 }
0x1247   :  { %v2643_v57 = vmul.f32 %v6665_v3, %v2613_v62  ;;  %v2653_v48 = vpop.permute.xlu1 %2652 }
0x1248   :  { %v6667_v56 = vpop.eup %6666 }
0x1249   :  { %v2641_v22 = vmul.f32 %v6667_v56, %v2605_v10  ;;  %v2650_v53 = vpack.c.bf16 %v2643_v57, %v2642_v14  ;;  %v2665_v10 = vpop.permute.xlu0 %2664 }
0x124b   :  { %6036 = vmatprep.subr.bf16.mxu0 %v2650_v53  ;;  %v2649_v19 = vpack.c.bf16 %v2641_v22, %v2640_v16  ;;  %v2657_v58 = vpop.permute.xlu1 %2656 }
0x124c   :  { %6037 = vmatpush3.bf16.msra.mxu0 %v2650_v53 }
0x124d   :  { %6038 = vmatprep.subr.bf16.mxu0 %v2649_v19 }
0x1250   :  { %6039 = vmatpush3.bf16.msra.mxu0 %v2649_v19 }
0x1253   :  { %6041 = vmatmul.mubr.msk.bf16.vlgmr.msra.gmra.mxu0 %vm8840_vm7, %v6417_v18 }
0x1313   :  { %v6042_v62 = vpop.f32.mrf.mxu0 }
0x1314   :  { %v2726_v47 = vadd.f32 %v6042_v62, %v2661_v50 }
0x1315   :  { %v2717_v0 = vpop.f32.mrf.mxu0 }
0x1316   :  { %v5365_v61 = vmul.f32 -1.442695, %v2726_v47  ;;  %v2718_v29 = vadd.f32 %v2717_v0, %v2653_v48 }
0x1317   :  { %v6043_v6 = vpop.f32.mrf.mxu0 }
0x1318   :  { %6668 = vpow2.f32 %v5365_v61  ;;  %v5363_v26 = vmul.f32 -1.442695, %v2718_v29  ;;  %v2729_v33 = vadd.f32 %v6043_v6, %v2665_v10  ;;  %v6419_v6 = vld [vmem:[#allocation2 + $0xb8] sm:$0xff]  }
0x1319   :  { %v2720_v60 = vpop.f32.mrf.mxu0 }
0x131a   :  { %6670 = vpow2.f32 %v5363_v26  ;;  %v5366_v7 = vmul.f32 -1.442695, %v2729_v33  ;;  %v2721_v49 = vadd.f32 %v2720_v60, %v2657_v58  ;;  %v6420_v26 = vld [vmem:[#allocation2 + $0xc0] sm:$0xff]   ;;  %v7003_v58 = vmov 17  }
0x131b   :  { %6056 = vmatprep.mubr.msk.bf16.mxu0 %vm8842_vm15, %v6420_v26  ;;  %6352 = vset.pattern.permute.xlu1 %v7003_v58 }
0x131c   :  { %6672 = vpow2.f32 %v5366_v7  ;;  %v5364_v37 = vmul.f32 -1.442695, %v2721_v49  ;;  %6353 = vset.pattern.permute.xlu0 %v7003_v58  ;;  %2892 = vperm.xlu1 %6352, %v7992_v54  }
0x131d   :  { %2896 = vperm.xlu0 %6353, %v7998_v34  }
0x131e   :  { %6674 = vpow2.f32 %v5364_v37 }
0x1320   :  { %2884 = vperm.xlu1 %6352, %v8004_v12  }
0x1324   :  { %2888 = vperm.xlu1 %6352, %v8010_v21  }
0x1325   :  { %v6669_v30 = vpop.eup %6668 }
0x1326   :  { %v2746_v3 = vadd.f32 1.0, %v6669_v30 }
0x1327   :  { %v6671_v14 = vpop.eup %6670 }
0x1328   :  { %v2744_v57 = vadd.f32 1.0, %v6671_v14  ;;  %6676 = vrcp.f32 %v2746_v3 }
0x1329   :  { %v6673_v56 = vpop.eup %6672 }
0x132a   :  { %v2747_v16 = vadd.f32 1.0, %v6673_v56  ;;  %6678 = vrcp.f32 %v2744_v57 }
0x132b   :  { %v6675_v22 = vpop.eup %6674 }
0x132c   :  { %6680 = vrcp.f32 %v2747_v16  ;;  %v2745_v53 = vadd.f32 1.0, %v6675_v22 }
0x132e   :  { %6682 = vrcp.f32 %v2745_v53 }
0x1335   :  { %v6677_v19 = vpop.eup %6676 }
0x1336   :  { %v2758_v63 = vmul.f32 %v6677_v19, %v2726_v47  ;;  %v2781_v47 = vpop.permute.xlu1 %2780 }
0x1337   :  { %v6679_v18 = vpop.eup %6678 }
0x1338   :  { %v2756_v62 = vmul.f32 %v6679_v18, %v2718_v29  ;;  %v2777_v29 = vpop.permute.xlu0 %2776 }
0x1339   :  { %v6681_v55 = vpop.eup %6680 }
0x133a   :  { %v2759_v50 = vmul.f32 %v6681_v55, %v2729_v33  ;;  %v2769_v60 = vpop.permute.xlu1 %2768 }
0x133b   :  { %v6683_v48 = vpop.eup %6682 }
0x133c   :  { %v2757_v0 = vmul.f32 %v6683_v48, %v2721_v49  ;;  %v2766_v10 = vpack.c.bf16 %v2759_v50, %v2758_v63  ;;  %v2773_v56 = vpop.permute.xlu0 %2772 }
0x133e   :  { %6044 = vmatprep.subr.bf16.mxu1 %v2766_v10  ;;  %v2765_v61 = vpack.c.bf16 %v2757_v0, %v2756_v62 }
0x133f   :  { %6045 = vmatpush3.bf16.msra.mxu1 %v2766_v10 }
0x1340   :  { %6046 = vmatprep.subr.bf16.mxu1 %v2765_v61 }
0x1343   :  { %6047 = vmatpush3.bf16.msra.mxu1 %v2765_v61 }
0x1346   :  { %6049 = vmatmul.mubr.msk.bf16.vlgmr.msra.gmra.mxu1 %vm8840_vm7, %v6419_v6  ;;  %vm8843_vm7 = vnez %v8799_v4  ;;  %v6446_v4 = vld [vmem:[#allocation2 + $0x170] sm:$0xff]  }
0x1406   :  { %v6050_v33 = vpop.f32.mrf.mxu1 }
0x1407   :  { %v2842_v7 = vadd.f32 %v6050_v33, %v2777_v29 }
0x1408   :  { %v2833_v49 = vpop.f32.mrf.mxu1 }
0x1409   :  { %v5373_v37 = vmul.f32 -1.442695, %v2842_v7  ;;  %v2834_v30 = vadd.f32 %v2833_v49, %v2769_v60 }
0x140a   :  { %v6051_v3 = vpop.f32.mrf.mxu1 }
0x140b   :  { %6684 = vpow2.f32 %v5373_v37  ;;  %v5371_v14 = vmul.f32 -1.442695, %v2834_v30  ;;  %v2845_v57 = vadd.f32 %v6051_v3, %v2781_v47  ;;  %v6421_v3 = vld [vmem:[#allocation2 + $0xc8] sm:$0xff]  }
0x140c   :  { %v2836_v16 = vpop.f32.mrf.mxu1 }
0x140d   :  { %6686 = vpow2.f32 %v5371_v14  ;;  %v5374_v22 = vmul.f32 -1.442695, %v2845_v57  ;;  %v2837_v53 = vadd.f32 %v2836_v16, %v2773_v56  ;;  %v2893_v14 = vpop.permute.xlu1 %2892 }
0x140f   :  { %6688 = vpow2.f32 %v5374_v22  ;;  %v5372_v19 = vmul.f32 -1.442695, %v2837_v53 }
0x1411   :  { %6690 = vpow2.f32 %v5372_v19 }
0x1418   :  { %v6685_v18 = vpop.eup %6684 }
0x1419   :  { %v2862_v55 = vadd.f32 1.0, %v6685_v18 }
0x141a   :  { %v6687_v63 = vpop.eup %6686 }
0x141b   :  { %v2860_v50 = vadd.f32 1.0, %v6687_v63  ;;  %6692 = vrcp.f32 %v2862_v55 }
0x141c   :  { %v6689_v48 = vpop.eup %6688 }
0x141d   :  { %v2863_v62 = vadd.f32 1.0, %v6689_v48  ;;  %6694 = vrcp.f32 %v2860_v50 }
0x141e   :  { %v6691_v0 = vpop.eup %6690 }
0x141f   :  { %6696 = vrcp.f32 %v2863_v62  ;;  %v2861_v10 = vadd.f32 1.0, %v6691_v0 }
0x1421   :  { %6698 = vrcp.f32 %v2861_v10 }
0x1428   :  { %v6693_v61 = vpop.eup %6692 }
0x1429   :  { %v2874_v58 = vmul.f32 %v6693_v61, %v2842_v7  ;;  %v6422_v7 = vld [vmem:[#allocation2 + $0xd0] sm:$0xff]  }
0x142a   :  { %v6695_v6 = vpop.eup %6694 }
0x142b   :  { %v2872_v33 = vmul.f32 %v6695_v6, %v2834_v30  ;;  %v7004_v30 = vmov 18  }
0x142c   :  { %v6697_v26 = vpop.eup %6696  ;;  %6355 = vset.pattern.permute.xlu1 %v7004_v30  ;;  %6354 = vset.pattern.permute.xlu0 %v7004_v30 }
0x142d   :  { %v2875_v47 = vmul.f32 %v6697_v26, %v2845_v57  ;;  %3004 = vperm.xlu1 %6355, %v8010_v21   ;;  %3000 = vperm.xlu0 %6354, %v8004_v12   ;;  %v2885_v57 = vpop.permute.xlu1 %2884 }
0x142e   :  { %v6699_v29 = vpop.eup %6698 }
0x142f   :  { %v2873_v60 = vmul.f32 %v6699_v29, %v2837_v53  ;;  %v2882_v49 = vpack.c.bf16 %v2875_v47, %v2874_v58  ;;  %v2897_v53 = vpop.permute.xlu0 %2896 }
0x1431   :  { %6052 = vmatprep.subr.bf16.mxu0 %v2882_v49  ;;  %v2881_v37 = vpack.c.bf16 %v2873_v60, %v2872_v33  ;;  %3008 = vperm.xlu1 %6355, %v7992_v54   ;;  %v2889_v48 = vpop.permute.xlu1 %2888 }
0x1432   :  { %6053 = vmatpush3.bf16.msra.mxu0 %v2882_v49  ;;  %3012 = vperm.xlu0 %6354, %v7998_v34  }
0x1433   :  { %6054 = vmatprep.subr.bf16.mxu0 %v2881_v37 }
0x1436   :  { %6055 = vmatpush3.bf16.msra.mxu0 %v2881_v37 }
0x1437   :  { %6068 = vmatprep.subr.msk.bf16.mxu0 %vm8843_vm7, %v6986_v15 }
0x1439   :  { %6057 = vmatmul.mubr.msk.bf16.vlgmr.msra.gmra.mxu0 %vm8842_vm15, %v6421_v3  ;;  %vm8845_vm15 = vnez %v8807_v13 }
0x143a   :  { %6069 = vmatpush3.bf16.msk.msra.mxu0 %vm8843_vm7, %v6986_v15 }
0x143b   :  { %6070 = vmatprep.subr.msk.bf16.mxu0 %vm8844_vm11, %v6986_v15 }
0x143e   :  { %6071 = vmatpush3.bf16.msk.msra.mxu0 %vm8844_vm11, %v6986_v15 }
0x143f   :  { %6072 = vmatprep.subr.msk.bf16.mxu0 %vm8828_vm8, %v6986_v15 }
0x1442   :  { %6073 = vmatpush3.bf16.msk.msra.mxu0 %vm8828_vm8, %v6986_v15 }
0x1443   :  { %6074 = vmatprep.subr.msk.bf16.mxu0 %vm8829_vm0, %v6986_v15 }
0x1446   :  { %6075 = vmatpush3.bf16.msk.msra.mxu0 %vm8829_vm0, %v6986_v15 }
0x1447   :  { %6076 = vmatprep.subr.msk.bf16.mxu0 %vm8845_vm15, %v6986_v15 }
0x144a   :  { %6077 = vmatpush3.bf16.msk.msra.mxu0 %vm8845_vm15, %v6986_v15  ;;  %vm8846_vm15 = vcmask 261120  }
0x144b   :  { %6078 = vmatprep.subr.msk.bf16.mxu0 %vm8831_vm2, %v6986_v15  ;;  %6064 = vmatprep.mubr.msk.bf16.mxu1 %vm8846_vm15, %v6422_v7 }
0x144e   :  { %6079 = vmatpush3.bf16.msk.msra.mxu0 %vm8831_vm2, %v6986_v15 }
0x144f   :  { %6080 = vmatprep.subr.msk.bf16.mxu0 %vm7683_vm1, %v6986_v15 }
0x1452   :  { %6081 = vmatpush3.bf16.msk.msra.mxu0 %vm7683_vm1, %v6986_v15 }
0x1453   :  { %6082 = vmatprep.subr.msk.bf16.mxu0 %vm7695_vm4, %v6986_v15 }
0x1456   :  { %6083 = vmatpush3.bf16.msk.msra.mxu0 %vm7695_vm4, %v6986_v15  ;;  %vm8847_vm4 = vnez %v8740_v28 }
0x14f9   :  { %v6058_v56 = vpop.f32.mrf.mxu0 }
0x14fa   :  { %v2958_v16 = vadd.f32 %v6058_v56, %v2893_v14 }
0x14fb   :  { %v2949_v22 = vpop.f32.mrf.mxu0 }
0x14fc   :  { %v5381_v19 = vmul.f32 -1.442695, %v2958_v16  ;;  %v2950_v18 = vadd.f32 %v2949_v22, %v2885_v57 }
0x14fd   :  { %v6059_v55 = vpop.f32.mrf.mxu0 }
0x14fe   :  { %6700 = vpow2.f32 %v5381_v19  ;;  %v5379_v63 = vmul.f32 -1.442695, %v2950_v18  ;;  %v2961_v50 = vadd.f32 %v6059_v55, %v2897_v53  ;;  %v6423_v55 = vld [vmem:[#allocation2 + $0xd8] sm:$0xff]  }
0x14ff   :  { %v2952_v62 = vpop.f32.mrf.mxu0 }
0x1500   :  { %6702 = vpow2.f32 %v5379_v63  ;;  %v5382_v0 = vmul.f32 -1.442695, %v2961_v50  ;;  %v2953_v10 = vadd.f32 %v2952_v62, %v2889_v48  ;;  %v3005_v63 = vpop.permute.xlu1 %3004  ;;  %v3001_v48 = vpop.permute.xlu0 %3000 }
0x1502   :  { %6704 = vpow2.f32 %v5382_v0  ;;  %v5380_v61 = vmul.f32 -1.442695, %v2953_v10 }
0x1504   :  { %6706 = vpow2.f32 %v5380_v61  ;;  %v3009_v62 = vpop.permute.xlu1 %3008 }
0x150b   :  { %v6701_v6 = vpop.eup %6700 }
0x150c   :  { %v2978_v26 = vadd.f32 1.0, %v6701_v6 }
0x150d   :  { %v6703_v58 = vpop.eup %6702 }
0x150e   :  { %v2976_v47 = vadd.f32 1.0, %v6703_v58  ;;  %6708 = vrcp.f32 %v2978_v26 }
0x150f   :  { %v6705_v29 = vpop.eup %6704 }
0x1510   :  { %v2979_v33 = vadd.f32 1.0, %v6705_v29  ;;  %6710 = vrcp.f32 %v2976_v47 }
0x1511   :  { %v6707_v60 = vpop.eup %6706 }
0x1512   :  { %6712 = vrcp.f32 %v2979_v33  ;;  %v2977_v49 = vadd.f32 1.0, %v6707_v60 }
0x1514   :  { %6714 = vrcp.f32 %v2977_v49 }
0x151b   :  { %v6709_v37 = vpop.eup %6708 }
0x151c   :  { %v2990_v30 = vmul.f32 %v6709_v37, %v2958_v16  ;;  %v3013_v16 = vpop.permute.xlu0 %3012 }
0x151d   :  { %v6711_v3 = vpop.eup %6710 }
0x151e   :  { %v2988_v56 = vmul.f32 %v6711_v3, %v2950_v18 }
0x151f   :  { %v6713_v7 = vpop.eup %6712 }
0x1520   :  { %v2991_v14 = vmul.f32 %v6713_v7, %v2961_v50 }
0x1521   :  { %v6715_v57 = vpop.eup %6714 }
0x1522   :  { %v2989_v22 = vmul.f32 %v6715_v57, %v2953_v10  ;;  %v2998_v53 = vpack.c.bf16 %v2991_v14, %v2990_v30 }
0x1524   :  { %6060 = vmatprep.subr.bf16.mxu1 %v2998_v53  ;;  %v2997_v19 = vpack.c.bf16 %v2989_v22, %v2988_v56 }
0x1525   :  { %6061 = vmatpush3.bf16.msra.mxu1 %v2998_v53 }
0x1526   :  { %6062 = vmatprep.subr.bf16.mxu1 %v2997_v19 }
0x1529   :  { %6063 = vmatpush3.bf16.msra.mxu1 %v2997_v19 }
0x152c   :  { %6065 = vmatmul.mubr.msk.bf16.vlgmr.msra.gmra.mxu1 %vm8846_vm15, %v6423_v55 }
0x15ec   :  { %v6066_v0 = vpop.f32.mrf.mxu1 }
0x15ed   :  { %v3074_v61 = vadd.f32 %v6066_v0, %v3009_v62 }
0x15ee   :  { %v3065_v6 = vpop.f32.mrf.mxu1 }
0x15ef   :  { %v5389_v50 = vmul.f32 -1.442695, %v3074_v61  ;;  %v3066_v26 = vadd.f32 %v3065_v6, %v3001_v48 }
0x15f0   :  { %v6067_v18 = vpop.f32.mrf.mxu1 }
0x15f1   :  { %v5387_v10 = vmul.f32 -1.442695, %v3066_v26  ;;  %v3077_v58 = vadd.f32 %v6067_v18, %v3013_v16  ;;  %6716 = vpow2.f32 %v5389_v50  ;;  %v6424_v50 = vld [vmem:[#allocation2 + $0xe0] sm:$0xff]   ;;  %v7005_v18 = vmov 19  }
0x15f2   :  { %v3068_v47 = vpop.f32.mrf.mxu1  ;;  %6092 = vmatprep.mubr.msk.bf16.mxu1 %vm8846_vm15, %v6424_v50  ;;  %6356 = vset.pattern.permute.xlu1 %v7005_v18 }
0x15f3   :  { %6718 = vpow2.f32 %v5387_v10  ;;  %v5390_v29 = vmul.f32 -1.442695, %v3077_v58  ;;  %v3069_v33 = vadd.f32 %v3068_v47, %v3005_v63  ;;  %6357 = vset.pattern.permute.xlu0 %v7005_v18  ;;  %3167 = vperm.xlu1 %6356, %v8004_v12  }
0x15f4   :  { %3171 = vperm.xlu0 %6357, %v8010_v21  }
0x15f5   :  { %6720 = vpow2.f32 %v5390_v29  ;;  %v5388_v60 = vmul.f32 -1.442695, %v3069_v33 }
0x15f7   :  { %6722 = vpow2.f32 %v5388_v60  ;;  %3175 = vperm.xlu1 %6356, %v7992_v54  }
0x15fb   :  { %3179 = vperm.xlu1 %6356, %v7998_v34  }
0x15fe   :  { %v6717_v49 = vpop.eup %6716 }
0x15ff   :  { %v3094_v30 = vadd.f32 1.0, %v6717_v49 }
0x1600   :  { %v6719_v37 = vpop.eup %6718 }
0x1601   :  { %v3092_v3 = vadd.f32 1.0, %v6719_v37 }
0x1602   :  { %v6721_v7 = vpop.eup %6720 }
0x1603   :  { %v3095_v14 = vadd.f32 1.0, %v6721_v7  ;;  %6724 = vrcp.f32 %v3092_v3 }
0x1604   :  { %v6723_v57 = vpop.eup %6722 }
0x1605   :  { %6726 = vrcp.f32 %v3095_v14  ;;  %v3093_v56 = vadd.f32 1.0, %v6723_v57 }
0x1606   :  { %6728 = vrcp.f32 %v3094_v30 }
0x1607   :  { %6730 = vrcp.f32 %v3093_v56 }
0x1610   :  { %v6725_v22 = vpop.eup %6724 }
0x1611   :  { %v3104_v48 = vmul.f32 %v6725_v22, %v3066_v26 }
0x1612   :  { %v6727_v53 = vpop.eup %6726 }
0x1613   :  { %v6729_v19 = vpop.eup %6728  ;;  %v3107_v63 = vmul.f32 %v6727_v53, %v3077_v58 }
0x1614   :  { %v6731_v55 = vpop.eup %6730  ;;  %v3106_v0 = vmul.f32 %v6729_v19, %v3074_v61 }
0x1615   :  { %v3105_v62 = vmul.f32 %v6731_v55, %v3069_v33  ;;  %v6425_v33 = vld [vmem:[#allocation2 + $0xe8] sm:$0xff]  }
0x1616   :  { %v8082_v16 = vpack.c.bf16 %v3107_v63, %v3106_v0 }
0x1617   :  { %v8080_v6 = vpack.c.bf16 %v3105_v62, %v3104_v48 }
0x1619   :  { %6084 = vmatprep.mubr.bf16.mxu0 %v8080_v6 }
0x161a   :  { %6085 = vmatmul.mubr.bf16.vlgmr.msra.gmra.mxu0 %v8082_v16 }
0x166e   :  { %v3168_v60 = vpop.permute.xlu1 %3167 }
0x166f   :  { %v3172_v56 = vpop.permute.xlu0 %3171 }
0x1672   :  { %v3176_v49 = vpop.permute.xlu1 %3175 }
0x1676   :  { %v3180_v30 = vpop.permute.xlu1 %3179 }
0x16da   :  { %v6086_v61 = vpop.f32.mrf.mxu0 }
0x16dc   :  { %v3144_v26 = vpop.f32.mrf.mxu0 }
0x16de   :  { %v6087_v10 = vpop.f32.mrf.mxu0 }
0x16df   :  { %v3165_v58 = vpack.c.bf16 %v6087_v10, %v6086_v61 }
0x16e0   :  { %v3147_v47 = vpop.f32.mrf.mxu0 }
0x16e1   :  { %v3164_v29 = vpack.c.bf16 %v3147_v47, %v3144_v26  ;;  %6088 = vmatprep.subr.bf16.mxu1 %v3165_v58 }
0x16e2   :  { %6089 = vmatpush3.bf16.msra.mxu1 %v3165_v58 }
0x16e3   :  { %6090 = vmatprep.subr.bf16.mxu1 %v3164_v29 }
0x16e6   :  { %6091 = vmatpush3.bf16.msra.mxu1 %v3164_v29 }
0x16e7   :  { %5416 = vmatprep.subr.msk.bf16.mxu1 %vm7133_vm6, %v6986_v15 }
0x16e9   :  { %6093 = vmatmul.mubr.msk.bf16.vlgmr.msra.gmra.mxu1 %vm8846_vm15, %v6425_v33  ;;  %vm8848_vm15 = vnez %v8746_v35 }
0x16ea   :  { %5418 = vmatpush1.bf16.msk.msra.mxu1 %vm7140_vm9, %v6986_v15  ;;  %3313 = vmatprep.mubr.bf16.mxu1 %v6985_v51  ;;  %vm8849_vm9 = vnez %v8748_v36 }
0x16eb   :  { %5420 = vmatprep.subr.msk.bf16.mxu1 %vm7152_vm13, %v6986_v15  ;;  %vm8850_vm13 = vnez %v8750_v39 }
0x16ee   :  { %5422 = vmatpush1.bf16.msk.msra.mxu1 %vm8847_vm4, %v6986_v15  ;;  %vm8851_vm4 = vnez %v8752_v40 }
0x16ef   :  { %5424 = vmatprep.subr.msk.bf16.mxu1 %vm7175_vm3, %v6986_v15 }
0x16f2   :  { %5426 = vmatpush1.bf16.msk.msra.mxu1 %vm7185_vm5, %v6986_v15 }
0x16f3   :  { %5428 = vmatprep.subr.msk.bf16.mxu1 %vm8848_vm15, %v6986_v15 }
0x16f6   :  { %5430 = vmatpush1.bf16.msk.msra.mxu1 %vm8849_vm9, %v6986_v15  ;;  %vm8852_vm9 = vnez %v8764_v44 }
0x16f7   :  { %5432 = vmatprep.subr.msk.bf16.mxu1 %vm8850_vm13, %v6986_v15  ;;  %vm8853_vm13 = vnez %v8767_v45 }
0x16fa   :  { %5434 = vmatpush1.bf16.msk.msra.mxu1 %vm8851_vm4, %v6986_v15  ;;  %vm8854_vm4 = vnez %v8770_v46 }
0x16fb   :  { %5436 = vmatprep.subr.msk.bf16.mxu1 %vm8816_vm14, %v6986_v15 }
0x16fe   :  { %5438 = vmatpush1.bf16.msk.msra.mxu1 %vm8817_vm10, %v6986_v15 }
0x16ff   :  { %5440 = vmatprep.subr.msk.bf16.mxu1 %vm8835_vm12, %v6986_v15 }
0x1702   :  { %5442 = vmatpush1.bf16.msk.msra.mxu1 %vm8852_vm9, %v6986_v15 }
0x1703   :  { %5444 = vmatprep.subr.msk.bf16.mxu1 %vm8853_vm13, %v6986_v15  ;;  %vm8856_vm13 = vcmask 261120  }
0x1706   :  { %5446 = vmatpush1.bf16.msk.msra.mxu1 %vm8854_vm4, %v6986_v15  ;;  %vm8855_vm4 = vcmask 785408  }
0x17a9   :  { %v6094_v37 = vpop.f32.mrf.mxu1 }
0x17aa   :  { %v3241_v3 = vadd.f32 %v6094_v37, %v3176_v49 }
0x17ab   :  { %v3232_v7 = vpop.f32.mrf.mxu1 }
0x17ac   :  { %v3233_v14 = vadd.f32 %v3232_v7, %v3168_v60  ;;  %v5413_v19 = vmul.f32 -1.442695, %v3241_v3 }
0x17ad   :  { %v6095_v57 = vpop.f32.mrf.mxu1 }
0x17ae   :  { %v5411_v22 = vmul.f32 -1.442695, %v3233_v14  ;;  %v3244_v53 = vadd.f32 %v6095_v57, %v3180_v30 }
0x17af   :  { %v3235_v55 = vpop.f32.mrf.mxu1 }
0x17b0   :  { %6732 = vpow2.f32 %v5411_v22  ;;  %v5414_v63 = vmul.f32 -1.442695, %v3244_v53  ;;  %v3236_v48 = vadd.f32 %v3235_v55, %v3172_v56 }
0x17b2   :  { %6734 = vpow2.f32 %v5414_v63  ;;  %v5412_v62 = vmul.f32 -1.442695, %v3236_v48 }
0x17b3   :  { %6736 = vpow2.f32 %v5413_v19 }
0x17b4   :  { %6738 = vpow2.f32 %v5412_v62 }
0x17bd   :  { %v6733_v0 = vpop.eup %6732 }
0x17be   :  { %v3259_v50 = vadd.f32 1.0, %v6733_v0 }
0x17bf   :  { %v6735_v18 = vpop.eup %6734 }
0x17c0   :  { %v6737_v61 = vpop.eup %6736  ;;  %6740 = vrcp.f32 %v3259_v50  ;;  %v3262_v10 = vadd.f32 1.0, %v6735_v18 }
0x17c1   :  { %v6739_v26 = vpop.eup %6738  ;;  %v3261_v47 = vadd.f32 1.0, %v6737_v61 }
0x17c2   :  { %v3260_v58 = vadd.f32 1.0, %v6739_v26 }
0x17c4   :  { %6742 = vrcp.f32 %v3260_v58  ;;  %v6427_v58 = vld [vmem:[%s8659_s8 + $0x38] sm:$0xff]  }
0x17c5   :  { %6744 = vrcp.f32 %v3262_v10 }
0x17c6   :  { %6746 = vrcp.f32 %v3261_v47  ;;  %v6428_v47 = vld [vmem:[#allocation2 + $0xf0] sm:$0xff]  }
0x17cd   :  { %v6741_v29 = vpop.eup %6740 }
0x17ce   :  { %v3271_v33 = vmul.f32 %v6741_v29, %v3233_v14  ;;  %v7007_v29 = vmov 21  }
0x17d0   :  { %v8142_v7 = vadd.f32 %v3271_v33, %v7956_v52 }
0x17d1   :  { %v6743_v60 = vpop.eup %6742 }
0x17d2   :  { %v3272_v49 = vmul.f32 %v6743_v60, %v3236_v48  ;;  %v6745_v37 = vpop.eup %6744 }
0x17d3   :  { %v6747_v57 = vpop.eup %6746  ;;  %v3274_v56 = vmul.f32 %v6745_v37, %v3244_v53 }
0x17d4   :  { %v8145_v30 = vadd.f32 %v3272_v49, %v7959_v38  ;;  %v3273_v19 = vmul.f32 %v6747_v57, %v3241_v3  ;;  %v6426_v38 = vld [vmem:[%s8659_s8 + $0x30] sm:$0xff]   ;;  %v7006_v3 = vmov 20  }
0x17d5   :  { %v8151_v14 = vadd.f32 %v3274_v56, %v7965_v2  ;;  %6108 = vmatprep.mubr.msk.bf16.mxu0 %vm8855_vm4, %v6426_v38  ;;  %6359 = vset.pattern.permute.xlu1 %v7006_v3 }
0x17d6   :  { %v3279_v22 = vpack.c.bf16 %v8145_v30, %v8142_v7  ;;  %v8154_v55 = vadd.f32 %v3273_v19, %v7968_v9  ;;  %6358 = vset.pattern.permute.xlu0 %v7006_v3  ;;  %3356 = vperm.xlu1 %6359, %v7998_v34  }
0x17d7   :  { %3352 = vperm.xlu0 %6358, %v7992_v54  }
0x17d8   :  { %3314 = vmatmul.mubr.bf16.vlgmr.msra.gmra.mxu1 %v3279_v22  ;;  %v3280_v52 = vpack.c.bf16 %v8151_v14, %v8154_v55 }
0x17d9   :  { %3323 = vmatprep.mubr.bf16.mxu1 %v6985_v51 }
0x17da   :  { %3344 = vperm.xlu1 %6359, %v8004_v12  }
0x17db   :  { %3348 = vperm.xlu0 %6358, %v8010_v21  }
0x17de   :  { %6360 = vset.pattern.permute.xlu1 %v7007_v29 }
0x17df   :  { %6361 = vset.pattern.permute.xlu0 %v7007_v29  ;;  %3468 = vperm.xlu1 %6360, %v7992_v54  }
0x17e0   :  { %3324 = vmatmul.mubr.bf16.gmra.mxu1 %v3280_v52  ;;  %3472 = vperm.xlu0 %6361, %v7998_v34  }
0x17e1   :  { %6116 = vmatprep.mubr.msk.bf16.mxu1 %vm8856_vm13, %v6428_v47 }
0x17e3   :  { %3460 = vperm.xlu1 %6360, %v8004_v12  }
0x17e7   :  { %3464 = vperm.xlu1 %6360, %v8010_v21  }
0x1852   :  { %v3353_v33 = vpop.permute.xlu0 %3352 }
0x1856   :  { %v3349_v38 = vpop.permute.xlu0 %3348 }
0x1898   :  { %v3315_v2 = vpop.f32.mrf.mxu1 }
0x189a   :  { %v3317_v9 = vpop.f32.mrf.mxu1 }
0x189c   :  { %v3319_v53 = vpop.f32.mrf.mxu1 }
0x189d   :  { %v3334_v10 = vpack.c.bf16 %v3319_v53, %v3315_v2 }
0x189e   :  { %v3321_v63 = vpop.f32.mrf.mxu1 }
0x189f   :  { %v3335_v61 = vpack.c.bf16 %v3321_v63, %v3317_v9 }
0x18a0   :  { %v3325_v48 = vpop.f32.mrf.mxu1 }
0x18a2   :  { %v3327_v62 = vpop.f32.mrf.mxu1 }
0x18a4   :  { %v3329_v0 = vpop.f32.mrf.mxu1 }
0x18a5   :  { %v3336_v26 = vpack.c.bf16 %v3329_v0, %v3325_v48 }
0x18a6   :  { %v3331_v50 = vpop.f32.mrf.mxu1 }
0x18a7   :  { %v3337_v18 = vpack.c.bf16 %v3331_v50, %v3327_v62 }
0x18a9   :  { %6096 = vmatprep.subr.bf16.mxu0 %v3337_v18 }
0x18aa   :  { %6097 = vmatpush3.bf16.msra.mxu0 %v3337_v18 }
0x18ab   :  { %6098 = vmatprep.subr.bf16.mxu0 %v3335_v61 }
0x18ae   :  { %6099 = vmatpush3.bf16.msra.mxu0 %v3335_v61 }
0x18af   :  { %6100 = vmatprep.subr.bf16.mxu0 %v3336_v26 }
0x18b2   :  { %6101 = vmatpush3.bf16.msra.mxu0 %v3336_v26 }
0x18b3   :  { %6102 = vmatprep.subr.bf16.mxu0 %v3334_v10 }
0x18b6   :  { %6103 = vmatpush3.bf16.msra.mxu0 %v3334_v10 }
0x18b7   :  { %6104 = vmatprep.subr.bf16.mxu0 %v8082_v16 }
0x18ba   :  { %6105 = vmatpush3.bf16.msra.mxu0 %v8082_v16  ;;  %v3357_v16 = vpop.permute.xlu1 %3356 }
0x18bb   :  { %6106 = vmatprep.subr.bf16.mxu0 %v8080_v6 }
0x18be   :  { %6107 = vmatpush3.bf16.msra.mxu0 %v8080_v6  ;;  %v3345_v6 = vpop.permute.xlu1 %3344 }
0x18c1   :  { %6109 = vmatmul.mubr.msk.bf16.vlgmr.msra.gmra.mxu0 %vm8855_vm4, %v6427_v58  ;;  %vm8857_vm4 = vmmov %vm8856_vm13 }
0x1981   :  { %v6110_v60 = vpop.f32.mrf.mxu0 }
0x1982   :  { %v3418_v49 = vadd.f32 %v6110_v60, %v3353_v33 }
0x1983   :  { %v3409_v37 = vpop.f32.mrf.mxu0 }
0x1984   :  { %v5457_v57 = vmul.f32 -1.442695, %v3418_v49  ;;  %v3410_v56 = vadd.f32 %v3409_v37, %v3345_v6 }
0x1985   :  { %v6111_v22 = vpop.f32.mrf.mxu0 }
0x1986   :  { %6748 = vpow2.f32 %v5457_v57  ;;  %v5455_v19 = vmul.f32 -1.442695, %v3410_v56  ;;  %v3421_v52 = vadd.f32 %v6111_v22, %v3357_v16  ;;  %v6429_v22 = vld [vmem:[#allocation2 + $0xf8] sm:$0xff]  }
0x1987   :  { %v3412_v3 = vpop.f32.mrf.mxu0 }
0x1988   :  { %6750 = vpow2.f32 %v5455_v19  ;;  %v5458_v2 = vmul.f32 -1.442695, %v3421_v52  ;;  %v3413_v9 = vadd.f32 %v3412_v3, %v3349_v38  ;;  %v6430_v19 = vld [vmem:[#allocation2 + $0x100] sm:$0xff]   ;;  %v7008_v38 = vmov 22  }
0x1989   :  { %6124 = vmatprep.mubr.msk.bf16.mxu0 %vm8857_vm4, %v6430_v19  ;;  %6363 = vset.pattern.permute.xlu1 %v7008_v38 }
0x198a   :  { %6752 = vpow2.f32 %v5458_v2  ;;  %v5456_v53 = vmul.f32 -1.442695, %v3413_v9  ;;  %6362 = vset.pattern.permute.xlu0 %v7008_v38  ;;  %3588 = vperm.xlu1 %6363, %v7998_v34  }
0x198b   :  { %3584 = vperm.xlu0 %6362, %v7992_v54  }
0x198c   :  { %6754 = vpow2.f32 %v5456_v53 }
0x198e   :  { %3576 = vperm.xlu1 %6363, %v8004_v12  }
0x198f   :  { %3580 = vperm.xlu0 %6362, %v8010_v21  }
0x1993   :  { %v6749_v63 = vpop.eup %6748 }
0x1994   :  { %v3438_v48 = vadd.f32 1.0, %v6749_v63 }
0x1995   :  { %v6751_v62 = vpop.eup %6750 }
0x1996   :  { %v3436_v0 = vadd.f32 1.0, %v6751_v62  ;;  %6756 = vrcp.f32 %v3438_v48 }
0x1997   :  { %v6753_v50 = vpop.eup %6752 }
0x1998   :  { %v3439_v18 = vadd.f32 1.0, %v6753_v50  ;;  %6758 = vrcp.f32 %v3436_v0 }
0x1999   :  { %v6755_v61 = vpop.eup %6754 }
0x199a   :  { %6760 = vrcp.f32 %v3439_v18  ;;  %v3437_v26 = vadd.f32 1.0, %v6755_v61 }
0x199c   :  { %6762 = vrcp.f32 %v3437_v26 }
0x19a3   :  { %v6757_v10 = vpop.eup %6756 }
0x19a4   :  { %v3450_v29 = vmul.f32 %v6757_v10, %v3418_v49  ;;  %v3469_v49 = vpop.permute.xlu1 %3468 }
0x19a5   :  { %v6759_v58 = vpop.eup %6758 }
0x19a6   :  { %v3448_v60 = vmul.f32 %v6759_v58, %v3410_v56 }
0x19a7   :  { %v6761_v47 = vpop.eup %6760 }
0x19a8   :  { %v3451_v16 = vmul.f32 %v6761_v47, %v3421_v52  ;;  %v3461_v56 = vpop.permute.xlu1 %3460 }
0x19a9   :  { %v6763_v33 = vpop.eup %6762 }
0x19aa   :  { %v3449_v6 = vmul.f32 %v6763_v33, %v3413_v9  ;;  %v3458_v37 = vpack.c.bf16 %v3451_v16, %v3450_v29  ;;  %v3473_v9 = vpop.permute.xlu0 %3472 }
0x19ac   :  { %6112 = vmatprep.subr.bf16.mxu1 %v3458_v37  ;;  %v3457_v57 = vpack.c.bf16 %v3449_v6, %v3448_v60  ;;  %v3465_v50 = vpop.permute.xlu1 %3464 }
0x19ad   :  { %6113 = vmatpush3.bf16.msra.mxu1 %v3458_v37 }
0x19ae   :  { %6114 = vmatprep.subr.bf16.mxu1 %v3457_v57 }
0x19b1   :  { %6115 = vmatpush3.bf16.msra.mxu1 %v3457_v57 }
0x19b4   :  { %6117 = vmatmul.mubr.msk.bf16.vlgmr.msra.gmra.mxu1 %vm8856_vm13, %v6429_v22  ;;  %vm8858_vm13 = vmmov %vm8857_vm4 }
0x1a74   :  { %v6118_v52 = vpop.f32.mrf.mxu1 }
0x1a75   :  { %v3534_v3 = vadd.f32 %v6118_v52, %v3469_v49  ;;  %v6431_v52 = vld [vmem:[#allocation2 + $0x108] sm:$0xff]  }
0x1a76   :  { %v3525_v2 = vpop.f32.mrf.mxu1 }
0x1a77   :  { %v5465_v53 = vmul.f32 -1.442695, %v3534_v3  ;;  %v3526_v63 = vadd.f32 %v3525_v2, %v3461_v56  ;;  %v6432_v2 = vld [vmem:[#allocation2 + $0x110] sm:$0xff]  }
0x1a78   :  { %v6119_v48 = vpop.f32.mrf.mxu1  ;;  %6132 = vmatprep.mubr.msk.bf16.mxu1 %vm8857_vm4, %v6432_v2 }
0x1a79   :  { %6764 = vpow2.f32 %v5465_v53  ;;  %v5463_v62 = vmul.f32 -1.442695, %v3526_v63  ;;  %v3537_v0 = vadd.f32 %v6119_v48, %v3473_v9  ;;  %v7009_v9 = vmov 23   ;;  %v8196_v53 = vld [vmem:[%s8661_s10 + $0x18] sm:$0xff]  ;;  %v8208_v48 = vld [vmem:[%s8661_s10 + $0x8] sm:$0xff] }
0x1a7a   :  { %v3528_v34 = vpop.f32.mrf.mxu1  ;;  %6364 = vset.pattern.permute.xlu1 %v7009_v9  ;;  %6365 = vset.pattern.permute.xlu0 %v7009_v9 }
0x1a7b   :  { %6766 = vpow2.f32 %v5463_v62  ;;  %v5466_v54 = vmul.f32 -1.442695, %v3537_v0  ;;  %v3529_v18 = vadd.f32 %v3528_v34, %v3465_v50  ;;  %3704 = vperm.xlu0 %6365, %v8196_v53   ;;  %v3589_v62 = vpop.permute.xlu1 %3588 }
0x1a7d   :  { %6768 = vpow2.f32 %v5466_v54  ;;  %v5464_v12 = vmul.f32 -1.442695, %v3529_v18 }
0x1a7f   :  { %6770 = vpow2.f32 %v5464_v12  ;;  %v3577_v34 = vpop.permute.xlu1 %3576 }
0x1a86   :  { %v6765_v21 = vpop.eup %6764 }
0x1a87   :  { %v3554_v61 = vadd.f32 1.0, %v6765_v21 }
0x1a88   :  { %v6767_v26 = vpop.eup %6766 }
0x1a89   :  { %v3552_v10 = vadd.f32 1.0, %v6767_v26  ;;  %6772 = vrcp.f32 %v3554_v61 }
0x1a8a   :  { %v6769_v58 = vpop.eup %6768 }
0x1a8b   :  { %v3555_v47 = vadd.f32 1.0, %v6769_v58  ;;  %6774 = vrcp.f32 %v3552_v10 }
0x1a8c   :  { %v6771_v29 = vpop.eup %6770 }
0x1a8d   :  { %6776 = vrcp.f32 %v3555_v47  ;;  %v3553_v16 = vadd.f32 1.0, %v6771_v29 }
0x1a8f   :  { %6778 = vrcp.f32 %v3553_v16 }
0x1a96   :  { %v6773_v33 = vpop.eup %6772 }
0x1a97   :  { %v3566_v37 = vmul.f32 %v6773_v33, %v3534_v3  ;;  %v8190_v3 = vld [vmem:[%s8661_s10 + $0x10] sm:$0xff] }
0x1a98   :  { %v6775_v60 = vpop.eup %6774  ;;  %3700 = vperm.xlu1 %6364, %v8190_v3  }
0x1a99   :  { %v3564_v19 = vmul.f32 %v6775_v60, %v3526_v63  ;;  %v8202_v63 = vld [vmem:[%s8661_s10] sm:$0xff] }
0x1a9a   :  { %v6777_v6 = vpop.eup %6776 }
0x1a9b   :  { %v3567_v57 = vmul.f32 %v6777_v6, %v3537_v0  ;;  %v3585_v0 = vpop.permute.xlu0 %3584 }
0x1a9c   :  { %v6779_v22 = vpop.eup %6778  ;;  %3692 = vperm.xlu1 %6364, %v8202_v63  }
0x1a9d   :  { %v3565_v38 = vmul.f32 %v6779_v22, %v3529_v18  ;;  %v3574_v49 = vpack.c.bf16 %v3567_v57, %v3566_v37 }
0x1a9f   :  { %6120 = vmatprep.subr.bf16.mxu0 %v3574_v49  ;;  %v3573_v56 = vpack.c.bf16 %v3565_v38, %v3564_v19  ;;  %v3581_v58 = vpop.permute.xlu0 %3580 }
0x1aa0   :  { %6121 = vmatpush3.bf16.msra.mxu0 %v3574_v49  ;;  %3696 = vperm.xlu1 %6364, %v8208_v48  }
0x1aa1   :  { %6122 = vmatprep.subr.bf16.mxu0 %v3573_v56 }
0x1aa4   :  { %6123 = vmatpush3.bf16.msra.mxu0 %v3573_v56 }
0x1aa7   :  { %6125 = vmatmul.mubr.msk.bf16.vlgmr.msra.gmra.mxu0 %vm8858_vm13, %v6431_v52  ;;  %vm8859_vm13 = vmmov %vm8857_vm4  ;;  %vm8860_vm4 = vnez %v8807_v13 }
0x1b67   :  { %v6126_v50 = vpop.f32.mrf.mxu0 }
0x1b68   :  { %v3650_v54 = vadd.f32 %v6126_v50, %v3585_v0 }
0x1b69   :  { %v3641_v18 = vpop.f32.mrf.mxu0 }
0x1b6a   :  { %v5473_v12 = vmul.f32 -1.442695, %v3650_v54  ;;  %v3642_v21 = vadd.f32 %v3641_v18, %v3577_v34 }
0x1b6b   :  { %v6127_v61 = vpop.f32.mrf.mxu0 }
0x1b6c   :  { %6780 = vpow2.f32 %v5473_v12  ;;  %v5471_v26 = vmul.f32 -1.442695, %v3642_v21  ;;  %v3653_v10 = vadd.f32 %v6127_v61, %v3589_v62  ;;  %v6433_v61 = vld [vmem:[#allocation2 + $0x118] sm:$0xff]  }
0x1b6d   :  { %v3644_v47 = vpop.f32.mrf.mxu0 }
0x1b6e   :  { %6782 = vpow2.f32 %v5471_v26  ;;  %v5474_v29 = vmul.f32 -1.442695, %v3653_v10  ;;  %v3645_v16 = vadd.f32 %v3644_v47, %v3581_v58  ;;  %v3701_v26 = vpop.permute.xlu1 %3700 }
0x1b70   :  { %6784 = vpow2.f32 %v5474_v29  ;;  %v5472_v33 = vmul.f32 -1.442695, %v3645_v16 }
0x1b72   :  { %6786 = vpow2.f32 %v5472_v33 }
0x1b79   :  { %v6781_v60 = vpop.eup %6780 }
0x1b7a   :  { %v3670_v6 = vadd.f32 1.0, %v6781_v60 }
0x1b7b   :  { %v6783_v37 = vpop.eup %6782 }
0x1b7c   :  { %v3668_v57 = vadd.f32 1.0, %v6783_v37  ;;  %6788 = vrcp.f32 %v3670_v6 }
0x1b7d   :  { %v6785_v22 = vpop.eup %6784 }
0x1b7e   :  { %v3671_v19 = vadd.f32 1.0, %v6785_v22  ;;  %6790 = vrcp.f32 %v3668_v57 }
0x1b7f   :  { %v6787_v38 = vpop.eup %6786 }
0x1b80   :  { %6792 = vrcp.f32 %v3671_v19  ;;  %v3669_v49 = vadd.f32 1.0, %v6787_v38 }
0x1b82   :  { %6794 = vrcp.f32 %v3669_v49 }
0x1b89   :  { %v6789_v56 = vpop.eup %6788 }
0x1b8a   :  { %v3682_v9 = vmul.f32 %v6789_v56, %v3650_v54  ;;  %v6434_v54 = vld [vmem:[#allocation2 + $0x120] sm:$0xff]  }
0x1b8b   :  { %v6791_v52 = vpop.eup %6790 }
0x1b8c   :  { %v3680_v50 = vmul.f32 %v6791_v52, %v3642_v21  ;;  %v7010_v21 = vmov 24  }
0x1b8d   :  { %v6793_v2 = vpop.eup %6792  ;;  %6367 = vset.pattern.permute.xlu1 %v7010_v21  ;;  %6366 = vset.pattern.permute.xlu0 %v7010_v21 }
0x1b8e   :  { %v3683_v62 = vmul.f32 %v6793_v2, %v3653_v10  ;;  %3812 = vperm.xlu1 %6367, %v8208_v48   ;;  %3808 = vperm.xlu0 %6366, %v8202_v63   ;;  %v3693_v10 = vpop.permute.xlu1 %3692 }
0x1b8f   :  { %v6795_v0 = vpop.eup %6794 }
0x1b90   :  { %v3681_v34 = vmul.f32 %v6795_v0, %v3645_v16  ;;  %v3690_v18 = vpack.c.bf16 %v3683_v62, %v3682_v9  ;;  %v3705_v16 = vpop.permute.xlu0 %3704 }
0x1b92   :  { %6128 = vmatprep.subr.bf16.mxu1 %v3690_v18  ;;  %v3689_v12 = vpack.c.bf16 %v3681_v34, %v3680_v50  ;;  %3816 = vperm.xlu1 %6367, %v8190_v3   ;;  %v3697_v22 = vpop.permute.xlu1 %3696 }
0x1b93   :  { %6129 = vmatpush3.bf16.msra.mxu1 %v3690_v18  ;;  %3820 = vperm.xlu0 %6366, %v8196_v53  }
0x1b94   :  { %6130 = vmatprep.subr.bf16.mxu1 %v3689_v12 }
0x1b97   :  { %6131 = vmatpush3.bf16.msra.mxu1 %v3689_v12 }
0x1b98   :  { %6144 = vmatprep.subr.msk.bf16.mxu1 %vm8843_vm7, %v6986_v15 }
0x1b9a   :  { %6133 = vmatmul.mubr.msk.bf16.vlgmr.msra.gmra.mxu1 %vm8859_vm13, %v6433_v61  ;;  %vm8861_vm13 = vnez %v8813_v25 }
0x1b9b   :  { %6145 = vmatpush3.bf16.msk.msra.mxu1 %vm8843_vm7, %v6986_v15 }
0x1b9c   :  { %6146 = vmatprep.subr.msk.bf16.mxu1 %vm8844_vm11, %v6986_v15 }
0x1b9f   :  { %6147 = vmatpush3.bf16.msk.msra.mxu1 %vm8844_vm11, %v6986_v15 }
0x1ba0   :  { %6148 = vmatprep.subr.msk.bf16.mxu1 %vm8828_vm8, %v6986_v15 }
0x1ba3   :  { %6149 = vmatpush3.bf16.msk.msra.mxu1 %vm8828_vm8, %v6986_v15 }
0x1ba4   :  { %6150 = vmatprep.subr.msk.bf16.mxu1 %vm8829_vm0, %v6986_v15 }
0x1ba7   :  { %6151 = vmatpush3.bf16.msk.msra.mxu1 %vm8829_vm0, %v6986_v15 }
0x1ba8   :  { %6152 = vmatprep.subr.msk.bf16.mxu1 %vm8860_vm4, %v6986_v15 }
0x1bab   :  { %6153 = vmatpush3.bf16.msk.msra.mxu1 %vm8860_vm4, %v6986_v15  ;;  %vm8862_vm4 = vcmask 261120  }
0x1bac   :  { %6154 = vmatprep.subr.msk.bf16.mxu1 %vm8831_vm2, %v6986_v15  ;;  %6140 = vmatprep.mubr.msk.bf16.mxu0 %vm8862_vm4, %v6434_v54 }
0x1baf   :  { %6155 = vmatpush3.bf16.msk.msra.mxu1 %vm8831_vm2, %v6986_v15  ;;  %vm8865_vm2 = vnez %v8740_v28 }
0x1bb0   :  { %6156 = vmatprep.subr.msk.bf16.mxu1 %vm7683_vm1, %v6986_v15 }
0x1bb3   :  { %6157 = vmatpush3.bf16.msk.msra.mxu1 %vm7683_vm1, %v6986_v15  ;;  %vm8864_vm1 = vnez %v8738_v27 }
0x1bb4   :  { %6158 = vmatprep.subr.msk.bf16.mxu1 %vm8861_vm13, %v6986_v15 }
0x1bb7   :  { %6159 = vmatpush3.bf16.msk.msra.mxu1 %vm8861_vm13, %v6986_v15  ;;  %vm8863_vm13 = vnez %v8736_v24 }
0x1c5a   :  { %v6134_v58 = vpop.f32.mrf.mxu1 }
0x1c5b   :  { %v3766_v47 = vadd.f32 %v6134_v58, %v3701_v26 }
0x1c5c   :  { %v3757_v29 = vpop.f32.mrf.mxu1 }
0x1c5d   :  { %v5481_v33 = vmul.f32 -1.442695, %v3766_v47  ;;  %v3758_v60 = vadd.f32 %v3757_v29, %v3693_v10 }
0x1c5e   :  { %v6135_v6 = vpop.f32.mrf.mxu1 }
0x1c5f   :  { %6796 = vpow2.f32 %v5481_v33  ;;  %v5479_v37 = vmul.f32 -1.442695, %v3758_v60  ;;  %v3769_v57 = vadd.f32 %v6135_v6, %v3705_v16  ;;  %v6435_v6 = vld [vmem:[#allocation2 + $0x128] sm:$0xff]  }
0x1c60   :  { %v3760_v19 = vpop.f32.mrf.mxu1 }
0x1c61   :  { %6798 = vpow2.f32 %v5479_v37  ;;  %v5482_v38 = vmul.f32 -1.442695, %v3769_v57  ;;  %v3761_v49 = vadd.f32 %v3760_v19, %v3697_v22  ;;  %v3813_v37 = vpop.permute.xlu1 %3812  ;;  %v3809_v22 = vpop.permute.xlu0 %3808 }
0x1c63   :  { %6800 = vpow2.f32 %v5482_v38  ;;  %v5480_v56 = vmul.f32 -1.442695, %v3761_v49 }
0x1c65   :  { %6802 = vpow2.f32 %v5480_v56  ;;  %v3817_v19 = vpop.permute.xlu1 %3816 }
0x1c6c   :  { %v6797_v52 = vpop.eup %6796 }
0x1c6d   :  { %v3786_v2 = vadd.f32 1.0, %v6797_v52 }
0x1c6e   :  { %v6799_v9 = vpop.eup %6798 }
0x1c6f   :  { %v3784_v62 = vadd.f32 1.0, %v6799_v9  ;;  %6804 = vrcp.f32 %v3786_v2 }
0x1c70   :  { %v6801_v0 = vpop.eup %6800 }
0x1c71   :  { %v3787_v50 = vadd.f32 1.0, %v6801_v0  ;;  %6806 = vrcp.f32 %v3784_v62 }
0x1c72   :  { %v6803_v34 = vpop.eup %6802 }
0x1c73   :  { %6808 = vrcp.f32 %v3787_v50  ;;  %v3785_v18 = vadd.f32 1.0, %v6803_v34 }
0x1c75   :  { %6810 = vrcp.f32 %v3785_v18 }
0x1c7c   :  { %v6805_v12 = vpop.eup %6804 }
0x1c7d   :  { %v3798_v21 = vmul.f32 %v6805_v12, %v3766_v47  ;;  %v3821_v47 = vpop.permute.xlu0 %3820 }
0x1c7e   :  { %v6807_v61 = vpop.eup %6806 }
0x1c7f   :  { %v3796_v58 = vmul.f32 %v6807_v61, %v3758_v60 }
0x1c80   :  { %v6809_v54 = vpop.eup %6808 }
0x1c81   :  { %v3799_v26 = vmul.f32 %v6809_v54, %v3769_v57 }
0x1c82   :  { %v6811_v10 = vpop.eup %6810 }
0x1c83   :  { %v3797_v29 = vmul.f32 %v6811_v10, %v3761_v49  ;;  %v3806_v16 = vpack.c.bf16 %v3799_v26, %v3798_v21 }
0x1c85   :  { %6136 = vmatprep.subr.bf16.mxu0 %v3806_v16  ;;  %v3805_v33 = vpack.c.bf16 %v3797_v29, %v3796_v58 }
0x1c86   :  { %6137 = vmatpush3.bf16.msra.mxu0 %v3806_v16 }
0x1c87   :  { %6138 = vmatprep.subr.bf16.mxu0 %v3805_v33 }
0x1c8a   :  { %6139 = vmatpush3.bf16.msra.mxu0 %v3805_v33 }
0x1c8d   :  { %6141 = vmatmul.mubr.msk.bf16.vlgmr.msra.gmra.mxu0 %vm8862_vm4, %v6435_v6 }
0x1d4d   :  { %v6142_v38 = vpop.f32.mrf.mxu0 }
0x1d4e   :  { %v3882_v56 = vadd.f32 %v6142_v38, %v3817_v19 }
0x1d4f   :  { %v3873_v52 = vpop.f32.mrf.mxu0 }
0x1d50   :  { %v5489_v57 = vmul.f32 -1.442695, %v3882_v56  ;;  %v3874_v2 = vadd.f32 %v3873_v52, %v3809_v22 }
0x1d51   :  { %v6143_v60 = vpop.f32.mrf.mxu0 }
0x1d52   :  { %v5487_v49 = vmul.f32 -1.442695, %v3874_v2  ;;  %v3885_v9 = vadd.f32 %v6143_v60, %v3821_v47  ;;  %6812 = vpow2.f32 %v5489_v57  ;;  %v6436_v57 = vld [vmem:[#allocation2 + $0x130] sm:$0xff]   ;;  %v7011_v60 = vmov 25  }
0x1d53   :  { %v3876_v62 = vpop.f32.mrf.mxu0  ;;  %6168 = vmatprep.mubr.msk.bf16.mxu0 %vm8862_vm4, %v6436_v57  ;;  %6368 = vset.pattern.permute.xlu1 %v7011_v60 }
0x1d54   :  { %6814 = vpow2.f32 %v5487_v49  ;;  %v5490_v0 = vmul.f32 -1.442695, %v3885_v9  ;;  %v3877_v50 = vadd.f32 %v3876_v62, %v3813_v37  ;;  %6369 = vset.pattern.permute.xlu0 %v7011_v60  ;;  %3975 = vperm.xlu1 %6368, %v8202_v63  }
0x1d55   :  { %3979 = vperm.xlu0 %6369, %v8208_v48  }
0x1d56   :  { %6816 = vpow2.f32 %v5490_v0  ;;  %v5488_v34 = vmul.f32 -1.442695, %v3877_v50 }
0x1d58   :  { %6818 = vpow2.f32 %v5488_v34  ;;  %3983 = vperm.xlu1 %6368, %v8190_v3  }
0x1d5c   :  { %3987 = vperm.xlu1 %6368, %v8196_v53  }
0x1d5f   :  { %v6813_v18 = vpop.eup %6812 }
0x1d60   :  { %v3902_v21 = vadd.f32 1.0, %v6813_v18 }
0x1d61   :  { %v6815_v12 = vpop.eup %6814 }
0x1d62   :  { %v3900_v61 = vadd.f32 1.0, %v6815_v12 }
0x1d63   :  { %v6817_v54 = vpop.eup %6816 }
0x1d64   :  { %v3903_v26 = vadd.f32 1.0, %v6817_v54  ;;  %6820 = vrcp.f32 %v3900_v61 }
0x1d65   :  { %v6819_v10 = vpop.eup %6818 }
0x1d66   :  { %6822 = vrcp.f32 %v3903_v26  ;;  %v3901_v58 = vadd.f32 1.0, %v6819_v10 }
0x1d67   :  { %6824 = vrcp.f32 %v3902_v21 }
0x1d68   :  { %6826 = vrcp.f32 %v3901_v58 }
0x1d71   :  { %v6821_v29 = vpop.eup %6820 }
0x1d72   :  { %v3912_v22 = vmul.f32 %v6821_v29, %v3874_v2 }
0x1d73   :  { %v6823_v16 = vpop.eup %6822 }
0x1d74   :  { %v6825_v33 = vpop.eup %6824  ;;  %v3915_v37 = vmul.f32 %v6823_v16, %v3885_v9 }
0x1d75   :  { %v6827_v6 = vpop.eup %6826  ;;  %v3914_v38 = vmul.f32 %v6825_v33, %v3882_v56 }
0x1d76   :  { %v3913_v19 = vmul.f32 %v6827_v6, %v3877_v50  ;;  %v6437_v50 = vld [vmem:[#allocation2 + $0x138] sm:$0xff]  }
0x1d77   :  { %v8268_v47 = vpack.c.bf16 %v3915_v37, %v3914_v38 }
0x1d78   :  { %v8266_v52 = vpack.c.bf16 %v3913_v19, %v3912_v22 }
0x1d7a   :  { %6160 = vmatprep.mubr.bf16.mxu1 %v8266_v52 }
0x1d7b   :  { %6161 = vmatmul.mubr.bf16.vlgmr.msra.gmra.mxu1 %v8268_v47 }
0x1dcf   :  { %v3976_v23 = vpop.permute.xlu1 %3975 }
0x1dd3   :  { %v3984_v24 = vpop.permute.xlu1 %3983 }
0x1dd7   :  { %v3988_v32 = vpop.permute.xlu1 %3987 }
0x1e3b   :  { %v6162_v56 = vpop.f32.mrf.mxu1 }
0x1e3d   :  { %v3952_v2 = vpop.f32.mrf.mxu1 }
0x1e3f   :  { %v6163_v49 = vpop.f32.mrf.mxu1 }
0x1e40   :  { %v3973_v9 = vpack.c.bf16 %v6163_v49, %v6162_v56  ;;  %v7012_v49 = vmov 26  }
0x1e41   :  { %v3955_v62 = vpop.f32.mrf.mxu1  ;;  %6371 = vset.pattern.permute.xlu1 %v7012_v49  ;;  %6370 = vset.pattern.permute.xlu0 %v7012_v49 }
0x1e42   :  { %v3972_v0 = vpack.c.bf16 %v3955_v62, %v3952_v2  ;;  %6164 = vmatprep.subr.bf16.mxu0 %v3973_v9  ;;  %4164 = vperm.xlu1 %6371, %v8196_v53  }
0x1e43   :  { %6165 = vmatpush3.bf16.msra.mxu0 %v3973_v9  ;;  %4160 = vperm.xlu0 %6370, %v8190_v3  }
0x1e44   :  { %6166 = vmatprep.subr.bf16.mxu0 %v3972_v0 }
0x1e46   :  { %4152 = vperm.xlu1 %6371, %v8202_v63  }
0x1e47   :  { %6167 = vmatpush3.bf16.msra.mxu0 %v3972_v0  ;;  %4156 = vperm.xlu0 %6370, %v8208_v48  }
0x1e48   :  { %5516 = vmatprep.subr.msk.bf16.mxu0 %vm7133_vm6, %v6986_v15  ;;  %vm8866_vm6 = vnez %v8748_v36 }
0x1e4a   :  { %6169 = vmatmul.mubr.msk.bf16.vlgmr.msra.gmra.mxu0 %vm8862_vm4, %v6437_v50 }
0x1e4b   :  { %5518 = vmatpush1.bf16.msk.msra.mxu0 %vm8863_vm13, %v6986_v15  ;;  %4121 = vmatprep.mubr.bf16.mxu0 %v6985_v51  ;;  %vm8876_vm13 = vmmov %vm8862_vm4 }
0x1e4c   :  { %5520 = vmatprep.subr.msk.bf16.mxu0 %vm8864_vm1, %v6986_v15  ;;  %vm8867_vm1 = vnez %v8750_v39  ;;  %v3980_v39 = vpop.permute.xlu0 %3979 }
0x1e4f   :  { %5522 = vmatpush1.bf16.msk.msra.mxu0 %vm8865_vm2, %v6986_v15  ;;  %vm8868_vm2 = vnez %v8752_v40 }
0x1e50   :  { %5524 = vmatprep.subr.msk.bf16.mxu0 %vm7175_vm3, %v6986_v15  ;;  %vm8869_vm3 = vnez %v8767_v45 }
0x1e53   :  { %5526 = vmatpush1.bf16.msk.msra.mxu0 %vm7185_vm5, %v6986_v15  ;;  %vm8870_vm5 = vnez %v8770_v46 }
0x1e54   :  { %5528 = vmatprep.subr.msk.bf16.mxu0 %vm8848_vm15, %v6986_v15  ;;  %vm8875_vm15 = vmmov %vm8862_vm4 }
0x1e57   :  { %5530 = vmatpush1.bf16.msk.msra.mxu0 %vm8866_vm6, %v6986_v15  ;;  %vm8877_vm6 = vmmov %vm8862_vm4 }
0x1e58   :  { %5532 = vmatprep.subr.msk.bf16.mxu0 %vm8867_vm1, %v6986_v15  ;;  %vm8882_vm1 = vmmov %vm8862_vm4 }
0x1e5b   :  { %5534 = vmatpush1.bf16.msk.msra.mxu0 %vm8868_vm2, %v6986_v15  ;;  %vm8883_vm2 = vmmov %vm8882_vm1 }
0x1e5c   :  { %5536 = vmatprep.subr.msk.bf16.mxu0 %vm8816_vm14, %v6986_v15  ;;  %vm8873_vm14 = vmmov %vm8862_vm4 }
0x1e5f   :  { %5538 = vmatpush1.bf16.msk.msra.mxu0 %vm8817_vm10, %v6986_v15  ;;  %vm8874_vm10 = vmmov %vm8862_vm4 }
0x1e60   :  { %5540 = vmatprep.subr.msk.bf16.mxu0 %vm8835_vm12, %v6986_v15 }
0x1e63   :  { %5542 = vmatpush1.bf16.msk.msra.mxu0 %vm8852_vm9, %v6986_v15  ;;  %vm8871_vm9 = vcmask 785408  }
0x1e64   :  { %5544 = vmatprep.subr.msk.bf16.mxu0 %vm8869_vm3, %v6986_v15  ;;  %vm8872_vm12 = vmmov %vm8871_vm9 }
0x1e65   :  { %vm8884_vm3 = vmmov %vm8882_vm1 }
0x1e67   :  { %5546 = vmatpush1.bf16.msk.msra.mxu0 %vm8870_vm5, %v6986_v15  ;;  %vm8885_vm5 = vmmov %vm8882_vm1 }
0x1f0a   :  { %v6170_v27 = vpop.f32.mrf.mxu0 }
0x1f0b   :  { %v4049_v28 = vadd.f32 %v6170_v27, %v3984_v24 }
0x1f0c   :  { %v4040_v31 = vpop.f32.mrf.mxu0 }
0x1f0d   :  { %v4041_v35 = vadd.f32 %v4040_v31, %v3976_v23  ;;  %v5513_v42 = vmul.f32 -1.442695, %v4049_v28 }
0x1f0e   :  { %v6171_v36 = vpop.f32.mrf.mxu0 }
0x1f0f   :  { %v5511_v40 = vmul.f32 -1.442695, %v4041_v35  ;;  %v4052_v41 = vadd.f32 %v6171_v36, %v3988_v32  ;;  %v6440_v36 = vld [vmem:[#allocation2 + $0x140] sm:$0xff]  }
0x1f10   :  { %v4043_v43 = vpop.f32.mrf.mxu0 }
0x1f11   :  { %6828 = vpow2.f32 %v5511_v40  ;;  %v5514_v44 = vmul.f32 -1.442695, %v4052_v41  ;;  %v4044_v45 = vadd.f32 %v4043_v43, %v3980_v39  ;;  %v7013_v39 = vmov 27   ;;  %v4161_v40 = vpop.permute.xlu0 %4160 }
0x1f12   :  { %6372 = vset.pattern.permute.xlu1 %v7013_v39  ;;  %6373 = vset.pattern.permute.xlu0 %v7013_v39 }
0x1f13   :  { %6830 = vpow2.f32 %v5514_v44  ;;  %v5512_v34 = vmul.f32 -1.442695, %v4044_v45  ;;  %4276 = vperm.xlu1 %6372, %v8190_v3   ;;  %4280 = vperm.xlu0 %6373, %v8196_v53  }
0x1f14   :  { %6832 = vpow2.f32 %v5513_v42 }
0x1f15   :  { %6834 = vpow2.f32 %v5512_v34 }
0x1f17   :  { %4268 = vperm.xlu1 %6372, %v8202_v63  }
0x1f1b   :  { %4272 = vperm.xlu1 %6372, %v8208_v48  }
0x1f1e   :  { %v6829_v46 = vpop.eup %6828 }
0x1f1f   :  { %v4067_v18 = vadd.f32 1.0, %v6829_v46 }
0x1f20   :  { %v6831_v12 = vpop.eup %6830 }
0x1f21   :  { %v6833_v61 = vpop.eup %6832  ;;  %6836 = vrcp.f32 %v4067_v18  ;;  %v4070_v21 = vadd.f32 1.0, %v6831_v12  ;;  %v4157_v12 = vpop.permute.xlu0 %4156 }
0x1f22   :  { %v6835_v54 = vpop.eup %6834  ;;  %v4069_v10 = vadd.f32 1.0, %v6833_v61 }
0x1f23   :  { %v4068_v26 = vadd.f32 1.0, %v6835_v54 }
0x1f25   :  { %6838 = vrcp.f32 %v4068_v26 }
0x1f26   :  { %6840 = vrcp.f32 %v4070_v21 }
0x1f27   :  { %6842 = vrcp.f32 %v4069_v10 }
0x1f2e   :  { %v6837_v58 = vpop.eup %6836 }
0x1f2f   :  { %v4079_v29 = vmul.f32 %v6837_v58, %v4041_v35  ;;  %v6439_v35 = vld [vmem:[%s8659_s8 + $0x48] sm:$0xff]  }
0x1f31   :  { %v8328_v37 = vadd.f32 %v4079_v29, %v8142_v7 }
0x1f32   :  { %v6839_v16 = vpop.eup %6838 }
0x1f33   :  { %v4080_v33 = vmul.f32 %v6839_v16, %v4044_v45  ;;  %v6841_v6 = vpop.eup %6840 }
0x1f34   :  { %v6843_v19 = vpop.eup %6842  ;;  %v4082_v38 = vmul.f32 %v6841_v6, %v4052_v41 }
0x1f35   :  { %v8331_v22 = vadd.f32 %v4080_v33, %v8145_v30  ;;  %v4081_v60 = vmul.f32 %v6843_v19, %v4049_v28  ;;  %v6438_v30 = vld [vmem:[%s8659_s8 + $0x40] sm:$0xff]  }
0x1f36   :  { %v8337_v56 = vadd.f32 %v4082_v38, %v8151_v14  ;;  %6184 = vmatprep.mubr.msk.bf16.mxu1 %vm8871_vm9, %v6438_v30 }
0x1f37   :  { %v4087_v57 = vpack.c.bf16 %v8331_v22, %v8328_v37  ;;  %v8340_v2 = vadd.f32 %v4081_v60, %v8154_v55 }
0x1f39   :  { %4122 = vmatmul.mubr.bf16.vlgmr.msra.gmra.mxu0 %v4087_v57  ;;  %v4088_v7 = vpack.c.bf16 %v8337_v56, %v8340_v2 }
0x1f3a   :  { %4131 = vmatprep.mubr.bf16.mxu0 %v6985_v51 }
0x1f41   :  { %4132 = vmatmul.mubr.bf16.gmra.mxu0 %v4088_v7 }
0x1f42   :  { %6192 = vmatprep.mubr.msk.bf16.mxu0 %vm8873_vm14, %v6440_v36 }
0x1f8e   :  { %v4281_v36 = vpop.permute.xlu0 %4280 }
0x1ff9   :  { %v4123_v14 = vpop.f32.mrf.mxu0 }
0x1ffb   :  { %v4125_v55 = vpop.f32.mrf.mxu0 }
0x1ffd   :  { %v4127_v9 = vpop.f32.mrf.mxu0 }
0x1ffe   :  { %v4142_v32 = vpack.c.bf16 %v4127_v9, %v4123_v14 }
0x1fff   :  { %v4129_v62 = vpop.f32.mrf.mxu0 }
0x2000   :  { %v4143_v28 = vpack.c.bf16 %v4129_v62, %v4125_v55 }
0x2001   :  { %v4133_v0 = vpop.f32.mrf.mxu0 }
0x2003   :  { %v4135_v50 = vpop.f32.mrf.mxu0 }
0x2005   :  { %v4137_v23 = vpop.f32.mrf.mxu0 }
0x2006   :  { %v4144_v31 = vpack.c.bf16 %v4137_v23, %v4133_v0  ;;  %v6442_v23 = vld [vmem:[#allocation2 + $0x150] sm:$0xff]  }
0x2007   :  { %v4139_v24 = vpop.f32.mrf.mxu0 }
0x2008   :  { %v4145_v27 = vpack.c.bf16 %v4139_v24, %v4135_v50  ;;  %v6441_v50 = vld [vmem:[#allocation2 + $0x148] sm:$0xff]   ;;  %v7014_v24 = vmov 28  }
0x2009   :  { %6375 = vset.pattern.permute.xlu1 %v7014_v24  ;;  %6374 = vset.pattern.permute.xlu0 %v7014_v24 }
0x200a   :  { %6172 = vmatprep.subr.bf16.mxu1 %v4145_v27  ;;  %4396 = vperm.xlu1 %6375, %v8196_v53  }
0x200b   :  { %6173 = vmatpush3.bf16.msra.mxu1 %v4145_v27  ;;  %4392 = vperm.xlu0 %6374, %v8190_v3  }
0x200c   :  { %6174 = vmatprep.subr.bf16.mxu1 %v4143_v28 }
0x200e   :  { %4384 = vperm.xlu1 %6375, %v8202_v63  }
0x200f   :  { %6175 = vmatpush3.bf16.msra.mxu1 %v4143_v28  ;;  %4388 = vperm.xlu0 %6374, %v8208_v48  }
0x2010   :  { %6176 = vmatprep.subr.bf16.mxu1 %v4144_v31 }
0x2013   :  { %6177 = vmatpush3.bf16.msra.mxu1 %v4144_v31 }
0x2014   :  { %6178 = vmatprep.subr.bf16.mxu1 %v4142_v32 }
0x2017   :  { %6179 = vmatpush3.bf16.msra.mxu1 %v4142_v32 }
0x2018   :  { %6180 = vmatprep.subr.bf16.mxu1 %v8268_v47 }
0x201b   :  { %6181 = vmatpush3.bf16.msra.mxu1 %v8268_v47  ;;  %v4165_v47 = vpop.permute.xlu1 %4164 }
0x201c   :  { %6182 = vmatprep.subr.bf16.mxu1 %v8266_v52 }
0x201f   :  { %6183 = vmatpush3.bf16.msra.mxu1 %v8266_v52  ;;  %v4153_v52 = vpop.permute.xlu1 %4152 }
0x2022   :  { %6185 = vmatmul.mubr.msk.bf16.vlgmr.msra.gmra.mxu1 %vm8872_vm12, %v6439_v35 }
0x2023   :  { %6200 = vmatprep.mubr.msk.bf16.mxu1 %vm8875_vm15, %v6442_v23  ;;  %v4277_v27 = vpop.permute.xlu1 %4276 }
0x2027   :  { %v4269_v31 = vpop.permute.xlu1 %4268 }
0x20e2   :  { %v6186_v41 = vpop.f32.mrf.mxu1 }
0x20e3   :  { %v4226_v42 = vadd.f32 %v6186_v41, %v4161_v40 }
0x20e4   :  { %v4217_v43 = vpop.f32.mrf.mxu1 }
0x20e5   :  { %v5557_v44 = vmul.f32 -1.442695, %v4226_v42  ;;  %v4218_v45 = vadd.f32 %v4217_v43, %v4153_v52 }
0x20e6   :  { %v6187_v34 = vpop.f32.mrf.mxu1 }
0x20e7   :  { %6844 = vpow2.f32 %v5557_v44  ;;  %v5555_v46 = vmul.f32 -1.442695, %v4218_v45  ;;  %v4229_v18 = vadd.f32 %v6187_v34, %v4165_v47 }
0x20e8   :  { %v4220_v61 = vpop.f32.mrf.mxu1 }
0x20e9   :  { %6846 = vpow2.f32 %v5555_v46  ;;  %v5558_v54 = vmul.f32 -1.442695, %v4229_v18  ;;  %v4221_v21 = vadd.f32 %v4220_v61, %v4157_v12 }
0x20eb   :  { %6848 = vpow2.f32 %v5558_v54  ;;  %v5556_v26 = vmul.f32 -1.442695, %v4221_v21 }
0x20ed   :  { %6850 = vpow2.f32 %v5556_v26 }
0x20f4   :  { %v6845_v10 = vpop.eup %6844 }
0x20f5   :  { %v4246_v58 = vadd.f32 1.0, %v6845_v10 }
0x20f6   :  { %v6847_v29 = vpop.eup %6846 }
0x20f7   :  { %v4244_v16 = vadd.f32 1.0, %v6847_v29  ;;  %6852 = vrcp.f32 %v4246_v58 }
0x20f8   :  { %v6849_v33 = vpop.eup %6848 }
0x20f9   :  { %v4247_v6 = vadd.f32 1.0, %v6849_v33  ;;  %6854 = vrcp.f32 %v4244_v16 }
0x20fa   :  { %v6851_v19 = vpop.eup %6850 }
0x20fb   :  { %6856 = vrcp.f32 %v4247_v6  ;;  %v4245_v38 = vadd.f32 1.0, %v6851_v19 }
0x20fd   :  { %6858 = vrcp.f32 %v4245_v38 }
0x2104   :  { %v6853_v57 = vpop.eup %6852 }
0x2105   :  { %v4258_v30 = vmul.f32 %v6853_v57, %v4226_v42  ;;  %v4273_v42 = vpop.permute.xlu1 %4272 }
0x2106   :  { %v6855_v60 = vpop.eup %6854 }
0x2107   :  { %v4256_v55 = vmul.f32 %v6855_v60, %v4218_v45 }
0x2108   :  { %v6857_v7 = vpop.eup %6856 }
0x2109   :  { %v4259_v49 = vmul.f32 %v6857_v7, %v4229_v18 }
0x210a   :  { %v6859_v14 = vpop.eup %6858 }
0x210b   :  { %v4257_v9 = vmul.f32 %v6859_v14, %v4221_v21  ;;  %v4266_v62 = vpack.c.bf16 %v4259_v49, %v4258_v30  ;;  %v6443_v30 = vld [vmem:[#allocation2 + $0x158] sm:$0xff]   ;;  %v6444_v49 = vld [vmem:[#allocation2 + $0x160] sm:$0xff]   ;;  %v7015_v14 = vmov 29  }
0x210c   :  { %6376 = vset.pattern.permute.xlu1 %v7015_v14  ;;  %6377 = vset.pattern.permute.xlu0 %v7015_v14 }
0x210d   :  { %6188 = vmatprep.subr.bf16.mxu0 %v4266_v62  ;;  %v4265_v0 = vpack.c.bf16 %v4257_v9, %v4256_v55  ;;  %4508 = vperm.xlu1 %6376, %v8190_v3   ;;  %v4397_v55 = vpop.permute.xlu1 %4396  ;;  %v4393_v9 = vpop.permute.xlu0 %4392 }
0x210e   :  { %6189 = vmatpush3.bf16.msra.mxu0 %v4266_v62  ;;  %4512 = vperm.xlu0 %6377, %v8196_v53  }
0x210f   :  { %6190 = vmatprep.subr.bf16.mxu0 %v4265_v0 }
0x2111   :  { %4500 = vperm.xlu1 %6376, %v8202_v63  }
0x2112   :  { %6191 = vmatpush3.bf16.msra.mxu0 %v4265_v0  ;;  %v4385_v0 = vpop.permute.xlu1 %4384  ;;  %6378 = vset.pattern.permute.xlu0 %v7016_v5 }
0x2113   :  { %4616 = vperm.xlu0 %6378, %v8202_v63  }
0x2115   :  { %6193 = vmatmul.mubr.msk.bf16.vlgmr.msra.gmra.mxu0 %vm8874_vm10, %v6441_v50  ;;  %4504 = vperm.xlu1 %6376, %v8208_v48  }
0x2116   :  { %6208 = vmatprep.mubr.msk.bf16.mxu0 %vm8862_vm4, %v6444_v49 }
0x2117   :  { %4628 = vperm.xlu0 %6378, %v8196_v53  }
0x2119   :  { %6379 = vset.pattern.permute.xlu1 %v7016_v5 }
0x211a   :  { %4620 = vperm.xlu1 %6379, %v8208_v48  }
0x211e   :  { %4624 = vperm.xlu1 %6379, %v8190_v3  }
0x2188   :  { %v4509_v8 = vpop.permute.xlu1 %4508 }
0x21d5   :  { %v6194_v28 = vpop.f32.mrf.mxu0 }
0x21d6   :  { %v4342_v32 = vadd.f32 %v6194_v28, %v4277_v27 }
0x21d7   :  { %v4333_v35 = vpop.f32.mrf.mxu0 }
0x21d8   :  { %v5565_v39 = vmul.f32 -1.442695, %v4342_v32  ;;  %v4334_v47 = vadd.f32 %v4333_v35, %v4269_v31 }
0x21d9   :  { %v6195_v40 = vpop.f32.mrf.mxu0 }
0x21da   :  { %6860 = vpow2.f32 %v5565_v39  ;;  %v5563_v41 = vmul.f32 -1.442695, %v4334_v47  ;;  %v4345_v52 = vadd.f32 %v6195_v40, %v4281_v36  ;;  %v4389_v36 = vpop.permute.xlu0 %4388 }
0x21db   :  { %v4336_v43 = vpop.f32.mrf.mxu0 }
0x21dc   :  { %6862 = vpow2.f32 %v5563_v41  ;;  %v5566_v44 = vmul.f32 -1.442695, %v4345_v52  ;;  %v4337_v45 = vadd.f32 %v4336_v43, %v4273_v42 }
0x21de   :  { %6864 = vpow2.f32 %v5566_v44  ;;  %v5564_v34 = vmul.f32 -1.442695, %v4337_v45 }
0x21e0   :  { %6866 = vpow2.f32 %v5564_v34 }
0x21e7   :  { %v6861_v46 = vpop.eup %6860 }
0x21e8   :  { %v4362_v18 = vadd.f32 1.0, %v6861_v46 }
0x21e9   :  { %v6863_v12 = vpop.eup %6862 }
0x21ea   :  { %v4360_v61 = vadd.f32 1.0, %v6863_v12  ;;  %6868 = vrcp.f32 %v4362_v18 }
0x21eb   :  { %v6865_v54 = vpop.eup %6864 }
0x21ec   :  { %v4363_v21 = vadd.f32 1.0, %v6865_v54  ;;  %6870 = vrcp.f32 %v4360_v61 }
0x21ed   :  { %v6867_v26 = vpop.eup %6866 }
0x21ee   :  { %6872 = vrcp.f32 %v4363_v21  ;;  %v4361_v10 = vadd.f32 1.0, %v6867_v26 }
0x21f0   :  { %6874 = vrcp.f32 %v4361_v10 }
0x21f7   :  { %v6869_v58 = vpop.eup %6868 }
0x21f8   :  { %v4374_v33 = vmul.f32 %v6869_v58, %v4342_v32 }
0x21f9   :  { %v6871_v29 = vpop.eup %6870 }
0x21fa   :  { %v4372_v38 = vmul.f32 %v6871_v29, %v4334_v47 }
0x21fb   :  { %v6873_v16 = vpop.eup %6872 }
0x21fc   :  { %v4375_v6 = vmul.f32 %v6873_v16, %v4345_v52 }
0x21fd   :  { %v6875_v19 = vpop.eup %6874 }
0x21fe   :  { %v4373_v57 = vmul.f32 %v6875_v19, %v4337_v45  ;;  %v4382_v60 = vpack.c.bf16 %v4375_v6, %v4374_v33  ;;  %v6445_v33 = vld [vmem:[#allocation2 + $0x168] sm:$0xff]  }
0x2200   :  { %6196 = vmatprep.subr.bf16.mxu1 %v4382_v60  ;;  %v4381_v7 = vpack.c.bf16 %v4373_v57, %v4372_v38 }
0x2201   :  { %6197 = vmatpush3.bf16.msra.mxu1 %v4382_v60 }
0x2202   :  { %6198 = vmatprep.subr.bf16.mxu1 %v4381_v7 }
0x2205   :  { %6199 = vmatpush3.bf16.msra.mxu1 %v4381_v7 }
0x2208   :  { %6201 = vmatmul.mubr.msk.bf16.vlgmr.msra.gmra.mxu1 %vm8876_vm13, %v6443_v30 }
0x2209   :  { %6216 = vmatprep.mubr.msk.bf16.mxu1 %vm8882_vm1, %v6446_v4 }
0x22c8   :  { %v6202_v62 = vpop.f32.mrf.mxu1 }
0x22c9   :  { %v4458_v50 = vadd.f32 %v6202_v62, %v4393_v9 }
0x22ca   :  { %v4449_v23 = vpop.f32.mrf.mxu1 }
0x22cb   :  { %v5573_v24 = vmul.f32 -1.442695, %v4458_v50  ;;  %v4450_v27 = vadd.f32 %v4449_v23, %v4385_v0 }
0x22cc   :  { %v6203_v28 = vpop.f32.mrf.mxu1 }
0x22cd   :  { %6876 = vpow2.f32 %v5573_v24  ;;  %v5571_v31 = vmul.f32 -1.442695, %v4450_v27  ;;  %v4461_v32 = vadd.f32 %v6203_v28, %v4397_v55 }
0x22ce   :  { %v4452_v35 = vpop.f32.mrf.mxu1 }
0x22cf   :  { %6878 = vpow2.f32 %v5571_v31  ;;  %v5574_v39 = vmul.f32 -1.442695, %v4461_v32  ;;  %v4453_v47 = vadd.f32 %v4452_v35, %v4389_v36 }
0x22d1   :  { %6880 = vpow2.f32 %v5574_v39  ;;  %v5572_v40 = vmul.f32 -1.442695, %v4453_v47 }
0x22d3   :  { %6882 = vpow2.f32 %v5572_v40  ;;  %v6447_v40 = vld [vmem:[#allocation2 + $0x178] sm:$0xff]  }
0x22da   :  { %v6877_v41 = vpop.eup %6876 }
0x22db   :  { %v4478_v52 = vadd.f32 1.0, %v6877_v41 }
0x22dc   :  { %v6879_v42 = vpop.eup %6878 }
0x22dd   :  { %v4476_v43 = vadd.f32 1.0, %v6879_v42  ;;  %6884 = vrcp.f32 %v4478_v52 }
0x22de   :  { %v6881_v44 = vpop.eup %6880 }
0x22df   :  { %v4479_v45 = vadd.f32 1.0, %v6881_v44  ;;  %6886 = vrcp.f32 %v4476_v43 }
0x22e0   :  { %v6883_v34 = vpop.eup %6882 }
0x22e1   :  { %6888 = vrcp.f32 %v4479_v45  ;;  %v4477_v46 = vadd.f32 1.0, %v6883_v34 }
0x22e3   :  { %6890 = vrcp.f32 %v4477_v46 }
0x22ea   :  { %v6885_v18 = vpop.eup %6884 }
0x22eb   :  { %v4490_v54 = vmul.f32 %v6885_v18, %v4458_v50 }
0x22ec   :  { %v6887_v12 = vpop.eup %6886 }
0x22ed   :  { %v4488_v10 = vmul.f32 %v6887_v12, %v4450_v27 }
0x22ee   :  { %v6889_v61 = vpop.eup %6888 }
0x22ef   :  { %v4491_v21 = vmul.f32 %v6889_v61, %v4461_v32 }
0x22f0   :  { %v6891_v26 = vpop.eup %6890 }
0x22f1   :  { %v4489_v58 = vmul.f32 %v6891_v26, %v4453_v47  ;;  %v4498_v29 = vpack.c.bf16 %v4491_v21, %v4490_v54 }
0x22f3   :  { %6204 = vmatprep.subr.bf16.mxu0 %v4498_v29  ;;  %v4497_v16 = vpack.c.bf16 %v4489_v58, %v4488_v10 }
0x22f4   :  { %6205 = vmatpush3.bf16.msra.mxu0 %v4498_v29 }
0x22f5   :  { %6206 = vmatprep.subr.bf16.mxu0 %v4497_v16 }
0x22f8   :  { %6207 = vmatpush3.bf16.msra.mxu0 %v4497_v16 }
0x22f9   :  { %6220 = vmatprep.subr.msk.bf16.mxu0 %vm8843_vm7, %v6986_v15 }
0x22fb   :  { %6209 = vmatmul.mubr.msk.bf16.vlgmr.msra.gmra.mxu0 %vm8877_vm6, %v6445_v33 }
0x22fc   :  { %6221 = vmatpush3.bf16.msk.msra.mxu0 %vm8843_vm7, %v6986_v15  ;;  %vm8878_vm7 = vnez %v8807_v13  ;;  %v4501_v13 = vpop.permute.xlu1 %4500 }
0x22fd   :  { %6222 = vmatprep.subr.msk.bf16.mxu0 %vm8844_vm11, %v6986_v15 }
0x2300   :  { %6223 = vmatpush3.bf16.msk.msra.mxu0 %vm8844_vm11, %v6986_v15  ;;  %vm8879_vm11 = vnez %v8809_v17  ;;  %v4505_v7 = vpop.permute.xlu1 %4504 }
0x2301   :  { %6224 = vmatprep.subr.msk.bf16.mxu0 %vm8828_vm8, %v6986_v15 }
0x2304   :  { %6225 = vmatpush3.bf16.msk.msra.mxu0 %vm8828_vm8, %v6986_v15  ;;  %vm8880_vm8 = vnez %v8811_v20  ;;  %v4621_v41 = vpop.permute.xlu1 %4620 }
0x2305   :  { %6226 = vmatprep.subr.msk.bf16.mxu0 %vm8829_vm0, %v6986_v15 }
0x2308   :  { %6227 = vmatpush3.bf16.msk.msra.mxu0 %vm8829_vm0, %v6986_v15  ;;  %vm8881_vm0 = vnez %v8813_v25  ;;  %v4513_v25 = vpop.permute.xlu0 %4512  ;;  %v4625_v42 = vpop.permute.xlu1 %4624 }
0x2309   :  { %6228 = vmatprep.subr.msk.bf16.mxu0 %vm8878_vm7, %v6986_v15 }
0x230c   :  { %6229 = vmatpush3.bf16.msk.msra.mxu0 %vm8878_vm7, %v6986_v15  ;;  %v4617_v52 = vpop.permute.xlu0 %4616 }
0x230d   :  { %6230 = vmatprep.subr.msk.bf16.mxu0 %vm8879_vm11, %v6986_v15 }
0x2310   :  { %6231 = vmatpush3.bf16.msk.msra.mxu0 %vm8879_vm11, %v6986_v15  ;;  %v4629_v34 = vpop.permute.xlu0 %4628 }
0x2311   :  { %6232 = vmatprep.subr.msk.bf16.mxu0 %vm8880_vm8, %v6986_v15 }
0x2314   :  { %6233 = vmatpush3.bf16.msk.msra.mxu0 %vm8880_vm8, %v6986_v15 }
0x2315   :  { %6234 = vmatprep.subr.msk.bf16.mxu0 %vm8881_vm0, %v6986_v15 }
0x2318   :  { %6235 = vmatpush3.bf16.msk.msra.mxu0 %vm8881_vm0, %v6986_v15 }
0x2319   :  { %6268 = vmatprep.subr.bf16.mxu0 %v6983_v1 }
0x23bb   :  { %v6210_v11 = vpop.f32.mrf.mxu0 }
0x23bc   :  { %v4574_v17 = vadd.f32 %v6210_v11, %v4509_v8 }
0x23bd   :  { %v4565_v20 = vpop.f32.mrf.mxu0 }
0x23be   :  { %v5581_v6 = vmul.f32 -1.442695, %v4574_v17  ;;  %v4566_v19 = vadd.f32 %v4565_v20, %v4501_v13 }
0x23bf   :  { %v6211_v38 = vpop.f32.mrf.mxu0 }
0x23c0   :  { %6892 = vpow2.f32 %v5581_v6  ;;  %v5579_v57 = vmul.f32 -1.442695, %v4566_v19  ;;  %v4577_v60 = vadd.f32 %v6211_v38, %v4513_v25 }
0x23c1   :  { %v4568_v48 = vpop.f32.mrf.mxu0 }
0x23c2   :  { %6894 = vpow2.f32 %v5579_v57  ;;  %v5582_v63 = vmul.f32 -1.442695, %v4577_v60  ;;  %v4569_v30 = vadd.f32 %v4568_v48, %v4505_v7 }
0x23c4   :  { %6896 = vpow2.f32 %v5582_v63  ;;  %v5580_v3 = vmul.f32 -1.442695, %v4569_v30  ;;  %v6448_v63 = vld [vmem:[#allocation2 + $0x180] sm:$0xff]  }
0x23c6   :  { %6898 = vpow2.f32 %v5580_v3  ;;  %v6954_v3 = vld [vmem:[%s8661_s10] sm:$0xff] }
0x23cd   :  { %v6893_v53 = vpop.eup %6892 }
0x23ce   :  { %v4594_v49 = vadd.f32 1.0, %v6893_v53  ;;  %v6955_v53 = vld [vmem:[%s8661_s10 + $0x8] sm:$0xff] }
0x23cf   :  { %v6895_v14 = vpop.eup %6894 }
0x23d0   :  { %v4592_v55 = vadd.f32 1.0, %v6895_v14  ;;  %6900 = vrcp.f32 %v4594_v49  ;;  %v337_v49 = vld [vmem:[%s8655_s4 + $0x70] sm:$0xff] }
0x23d1   :  { %v6897_v9 = vpop.eup %6896  ;;  %v6956_v14 = vld [vmem:[%s8661_s10 + $0x10] sm:$0xff] }
0x23d2   :  { %v4595_v62 = vadd.f32 1.0, %v6897_v9  ;;  %6902 = vrcp.f32 %v4592_v55  ;;  %v336_v55 = vld [vmem:[%s8655_s4 + $0x68] sm:$0xff]  ;;  %v6957_v9 = vld [vmem:[%s8661_s10 + $0x18] sm:$0xff] }
0x23d3   :  { %v6899_v0 = vpop.eup %6898 }
0x23d4   :  { %6904 = vrcp.f32 %v4595_v62  ;;  %v4593_v50 = vadd.f32 1.0, %v6899_v0  ;;  %v338_v62 = vld [vmem:[%s8655_s4 + $0x78] sm:$0xff] }
0x23d5   :  { %v334_v0 = vld [vmem:[%s8655_s4 + $0x58] sm:$0xff] }
0x23d6   :  { %6906 = vrcp.f32 %v4593_v50  ;;  %v335_v50 = vld [vmem:[%s8655_s4 + $0x60] sm:$0xff] }
0x23dd   :  { %v6901_v23 = vpop.eup %6900 }
0x23de   :  { %v4606_v28 = vmul.f32 %v6901_v23, %v4574_v17  ;;  %v332_v23 = vld [vmem:[%s8655_s4 + $0x48] sm:$0xff] }
0x23df   :  { %v6903_v24 = vpop.eup %6902 }
0x23e0   :  { %v4604_v35 = vmul.f32 %v6903_v24, %v4566_v19  ;;  %v333_v24 = vld [vmem:[%s8655_s4 + $0x50] sm:$0xff] }
0x23e1   :  { %v6905_v27 = vpop.eup %6904 }
0x23e2   :  { %v4607_v31 = vmul.f32 %v6905_v27, %v4577_v60  ;;  %v331_v27 = vld [vmem:[%s8655_s4 + $0x40] sm:$0xff] }
0x23e3   :  { %v6907_v32 = vpop.eup %6906 }
0x23e4   :  { %v4605_v36 = vmul.f32 %v6907_v32, %v4569_v30  ;;  %v4614_v39 = vpack.c.bf16 %v4607_v31, %v4606_v28  ;;  %v7017_v30 = vmov 31   ;;  %v328_v28 = vld [vmem:[%s8655_s4 + $0x28] sm:$0xff]  ;;  %v329_v31 = vld [vmem:[%s8655_s4 + $0x30] sm:$0xff]  ;;  %v326_v32 = vld [vmem:[%s8655_s4 + $0x18] sm:$0xff] }
0x23e5   :  { %6380 = vset.pattern.permute.xlu1 %v7017_v30  ;;  %6381 = vset.pattern.permute.xlu0 %v7017_v30 }
0x23e6   :  { %6212 = vmatprep.subr.bf16.mxu1 %v4614_v39  ;;  %v4613_v47 = vpack.c.bf16 %v4605_v36, %v4604_v35  ;;  %4783 = vperm.xlu1 %6380, %v6954_v3   ;;  %v327_v35 = vld [vmem:[%s8655_s4 + $0x20] sm:$0xff]  ;;  %v324_v36 = vld [vmem:[%s8655_s4 + $0x8] sm:$0xff] }
0x23e7   :  { %6213 = vmatpush3.bf16.msra.mxu1 %v4614_v39  ;;  %4787 = vperm.xlu0 %6381, %v6955_v53   ;;  %v325_v39 = vld [vmem:[%s8655_s4 + $0x10] sm:$0xff] }
0x23e8   :  { %6214 = vmatprep.subr.bf16.mxu1 %v4613_v47 }
0x23ea   :  { %4791 = vperm.xlu1 %6380, %v6956_v14  }
0x23eb   :  { %6215 = vmatpush3.bf16.msra.mxu1 %v4613_v47  ;;  %6382 = vset.pattern.permute.xlu0 %v6985_v51  ;;  %v323_v47 = vld [vmem:[%s8655_s4] sm:$0xff] }
0x23ec   :  { %382 = vperm.xlu0 %6382, %v337_v49  }
0x23ee   :  { %6217 = vmatmul.mubr.msk.bf16.vlgmr.msra.gmra.mxu1 %vm8883_vm2, %v6447_v40  ;;  %4795 = vperm.xlu1 %6380, %v6957_v9   ;;  %v4953_v40 = vld [vmem:[%s8663_s12] sm:$0xff] }
0x23ef   :  { %6244 = vmatprep.mubr.msk.bf16.mxu1 %vm8884_vm3, %v6448_v63 }
0x23f0   :  { %379 = vperm.xlu0 %6382, %v336_v55  }
0x23f2   :  { %6383 = vset.pattern.permute.xlu1 %v6985_v51  ;;  %v330_v51 = vld [vmem:[%s8655_s4 + $0x38] sm:$0xff] }
0x23f3   :  { %385 = vperm.xlu1 %6383, %v338_v62  }
0x23f4   :  { %373 = vperm.xlu0 %6382, %v334_v0  }
0x23f7   :  { %376 = vperm.xlu1 %6383, %v335_v50  }
0x23f8   :  { %367 = vperm.xlu0 %6382, %v332_v23  }
0x23fb   :  { %370 = vperm.xlu1 %6383, %v333_v24  }
0x23fc   :  { %361 = vperm.xlu0 %6382, %v330_v51  }
0x23ff   :  { %364 = vperm.xlu1 %6383, %v331_v27  }
0x2400   :  { %355 = vperm.xlu0 %6382, %v328_v28  }
0x2403   :  { %358 = vperm.xlu1 %6383, %v329_v31  }
0x2404   :  { %349 = vperm.xlu0 %6382, %v326_v32  }
0x2407   :  { %352 = vperm.xlu1 %6383, %v327_v35  }
0x2408   :  { %343 = vperm.xlu0 %6382, %v324_v36  }
0x240b   :  { %346 = vperm.xlu1 %6383, %v325_v39  }
0x240f   :  { %340 = vperm.xlu1 %6383, %v323_v47  }
0x2413   :  { %4956 = vperm.xlu1 %6383, %v4953_v40  }
0x24ae   :  { %v6218_v43 = vpop.f32.mrf.mxu1 }
0x24af   :  { %v4690_v44 = vadd.f32 %v6218_v43, %v4625_v42 }
0x24b0   :  { %v4681_v45 = vpop.f32.mrf.mxu1 }
0x24b1   :  { %v5589_v46 = vmul.f32 -1.442695, %v4690_v44  ;;  %v4682_v18 = vadd.f32 %v4681_v45, %v4617_v52 }
0x24b2   :  { %v6219_v12 = vpop.f32.mrf.mxu1 }
0x24b3   :  { %v5587_v61 = vmul.f32 -1.442695, %v4682_v18  ;;  %v4693_v54 = vadd.f32 %v6219_v12, %v4629_v34  ;;  %6908 = vpow2.f32 %v5589_v46  ;;  %v6449_v34 = vld [vmem:[#allocation2 + $0x188] sm:$0xff]   ;;  %v8499_v46 = vpop.permute.xlu1 %4783 }
0x24b4   :  { %v4684_v21 = vpop.f32.mrf.mxu1 }
0x24b5   :  { %6910 = vpow2.f32 %v5587_v61  ;;  %v5590_v26 = vmul.f32 -1.442695, %v4693_v54  ;;  %v4685_v10 = vadd.f32 %v4684_v21, %v4621_v41 }
0x24b7   :  { %6912 = vpow2.f32 %v5590_v26  ;;  %v5588_v58 = vmul.f32 -1.442695, %v4685_v10  ;;  %v8504_v12 = vpop.permute.xlu1 %4791 }
0x24b9   :  { %6914 = vpow2.f32 %v5588_v58 }
0x24c0   :  { %v6909_v29 = vpop.eup %6908 }
0x24c1   :  { %v4710_v5 = vadd.f32 1.0, %v6909_v29 }
0x24c2   :  { %v6911_v16 = vpop.eup %6910 }
0x24c3   :  { %v4708_v33 = vadd.f32 1.0, %v6911_v16 }
0x24c4   :  { %v6913_v4 = vpop.eup %6912 }
0x24c5   :  { %v4711_v8 = vadd.f32 1.0, %v6913_v4  ;;  %6916 = vrcp.f32 %v4708_v33 }
0x24c6   :  { %v6915_v11 = vpop.eup %6914 }
0x24c7   :  { %6918 = vrcp.f32 %v4711_v8  ;;  %v4709_v13 = vadd.f32 1.0, %v6915_v11 }
0x24c8   :  { %6920 = vrcp.f32 %v4710_v5 }
0x24c9   :  { %6922 = vrcp.f32 %v4709_v13 }
0x24d2   :  { %v6917_v17 = vpop.eup %6916 }
0x24d3   :  { %v4720_v38 = vmul.f32 %v6917_v17, %v4682_v18  ;;  %v8501_v18 = vpop.permute.xlu0 %4787 }
0x24d4   :  { %v6919_v20 = vpop.eup %6918 }
0x24d5   :  { %v6921_v25 = vpop.eup %6920  ;;  %v4723_v19 = vmul.f32 %v6919_v20, %v4693_v54  ;;  %v8508_v54 = vpop.permute.xlu1 %4795 }
0x24d6   :  { %v6923_v6 = vpop.eup %6922  ;;  %v4722_v60 = vmul.f32 %v6921_v25, %v4690_v44 }
0x24d7   :  { %v4721_v57 = vmul.f32 %v6923_v6, %v4685_v10  ;;  %v8506_v61 = vpop.permute.xlu0 %382 }
0x24d8   :  { %v4725_v48 = vpack.c.bf16 %v4723_v19, %v4722_v60  ;;  %vm8732_vm9 = vcmp.eq.s32.totalorder %v8506_v61, %v7605_v59 }
0x24d9   :  { %v4724_v7 = vpack.c.bf16 %v4721_v57, %v4720_v38  ;;  %v8514_v26 = vpop.permute.xlu1 %385 }
0x24da   :  { %vm8731_vm12 = vcmp.eq.s32.totalorder %v8514_v26, %v7605_v59 }
0x24db   :  { %6236 = vmatprep.mubr.bf16.mxu0 %v4724_v7  ;;  %v8510_v21 = vpop.permute.xlu0 %379  ;;  %vm5615_vm14 = vmpackc.low %vm8731_vm12, %vm8732_vm9 }
0x24dc   :  { %6237 = vmatmul.mubr.bf16.vlgmr.msra.gmra.mxu0 %v4725_v48  ;;  %vm400_vm10 = vcmp.eq.s32.totalorder %v8510_v21, %v7605_v59 }
0x24dd   :  { %v8529_v58 = vpop.permute.xlu1 %376  ;;  %v5069_v31 = vsel %vm400_vm10, 1.0, %v6983_v1 }
0x24de   :  { %vm399_vm15 = vcmp.eq.s32.totalorder %v8529_v58, %v7605_v59 }
0x24df   :  { %v8516_v10 = vpop.permute.xlu0 %373  ;;  %vm5617_vm13 = vmpackc.low %vm400_vm10, %vm399_vm15  ;;  %v5068_v27 = vsel %vm399_vm15, 1.0, %v6983_v1  ;;  %vm7018_vm10 = vmmov 0   ;;  %vm8888_vm15 = vcmask 261120  }
0x24e0   :  { %vm398_vm4 = vcmp.eq.s32.totalorder %v8516_v10, %v7605_v59  ;;  %6272 = vmatprep.mubr.msk.bf16.mxu0 %vm7018_vm10, %v6983_v1 }
0x24e1   :  { %v371_v16 = vpop.permute.xlu1 %370  ;;  %v5067_v24 = vsel %vm398_vm4, 1.0, %v6983_v1 }
0x24e2   :  { %vm397_vm6 = vcmp.eq.s32.totalorder %v371_v16, %v7605_v59 }
0x24e3   :  { %v8531_v29 = vpop.permute.xlu0 %367  ;;  %vm5619_vm7 = vmpackc.low %vm398_vm4, %vm397_vm6  ;;  %v5066_v50 = vsel %vm397_vm6, 1.0, %v6983_v1 }
0x24e4   :  { %vm396_vm11 = vcmp.eq.s32.totalorder %v8531_v29, %v7605_v59 }
0x24e5   :  { %v365_v4 = vpop.permute.xlu1 %364  ;;  %v5065_v62 = vsel %vm396_vm11, 1.0, %v6983_v1 }
0x24e6   :  { %vm395_vm8 = vcmp.eq.s32.totalorder %v365_v4, %v7605_v59 }
0x24e7   :  { %v362_v33 = vpop.permute.xlu0 %361  ;;  %vm5621_vm0 = vmpackc.low %vm396_vm11, %vm395_vm8  ;;  %v5064_v55 = vsel %vm395_vm8, 1.0, %v6983_v1 }
0x24e8   :  { %vm394_vm2 = vcmp.eq.s32.totalorder %v362_v33, %v7605_v59 }
0x24e9   :  { %v359_v8 = vpop.permute.xlu1 %358 }
0x24ea   :  { %vm393_vm1 = vcmp.eq.s32.totalorder %v359_v8, %v7605_v59 }
0x24eb   :  { %v356_v5 = vpop.permute.xlu0 %355  ;;  %vm5623_vm3 = vmpackc.low %vm394_vm2, %vm393_vm1  ;;  %v5062_v53 = vsel %vm393_vm1, 1.0, %v6983_v1 }
0x24ed   :  { %v353_v13 = vpop.permute.xlu1 %352 }
0x24ef   :  { %v350_v11 = vpop.permute.xlu0 %349 }
0x24f1   :  { %v347_v20 = vpop.permute.xlu1 %346 }
0x24f3   :  { %v344_v17 = vpop.permute.xlu0 %343 }
0x24f5   :  { %v341_v25 = vpop.permute.xlu1 %340 }
0x24f6   :  { %vm387_vm9 = vcmp.eq.s32.totalorder %v341_v25, %v7605_v59 }
0x24f7   :  { %v5056_v38 = vsel %vm387_vm9, 1.0, %v6983_v1 }
0x259c   :  { %v6238_v41 = vpop.f32.mrf.mxu0 }
0x259e   :  { %v4760_v52 = vpop.f32.mrf.mxu0 }
0x25a0   :  { %v6239_v42 = vpop.f32.mrf.mxu0 }
0x25a1   :  { %v4781_v43 = vpack.c.bf16 %v6239_v42, %v6238_v41 }
0x25a2   :  { %v4763_v44 = vpop.f32.mrf.mxu0 }
0x25a3   :  { %v4780_v45 = vpack.c.bf16 %v4763_v44, %v4760_v52  ;;  %6240 = vmatprep.subr.bf16.mxu1 %v4781_v43 }
0x25a4   :  { %6241 = vmatpush3.bf16.msra.mxu1 %v4781_v43 }
0x25a5   :  { %6242 = vmatprep.subr.bf16.mxu1 %v4780_v45 }
0x25a8   :  { %6243 = vmatpush3.bf16.msra.mxu1 %v4780_v45 }
0x25a9   :  { %6248 = vmatprep.subr.msk.bf16.mxu1 %vm5615_vm14, %v6986_v15 }
0x25ab   :  { %6245 = vmatmul.mubr.msk.bf16.vlgmr.msra.gmra.mxu1 %vm8885_vm5, %v6449_v34  ;;  %vm391_vm5 = vcmp.eq.s32.totalorder %v353_v13, %v7605_v59 }
0x25ac   :  { %6249 = vmatpush3.bf16.msk.msra.mxu1 %vm5615_vm14, %v6986_v15  ;;  %vm392_vm14 = vcmp.eq.s32.totalorder %v356_v5, %v7605_v59  ;;  %v5060_v48 = vsel %vm391_vm5, 1.0, %v6983_v1 }
0x25ad   :  { %6250 = vmatprep.subr.msk.bf16.mxu1 %vm5617_vm13, %v6986_v15  ;;  %v5061_v30 = vsel %vm392_vm14, 1.0, %v6983_v1 }
0x25b0   :  { %6251 = vmatpush3.bf16.msk.msra.mxu1 %vm5617_vm13, %v6986_v15  ;;  %vm5625_vm13 = vmpackc.low %vm392_vm14, %vm391_vm5 }
0x25b1   :  { %6252 = vmatprep.subr.msk.bf16.mxu1 %vm5619_vm7, %v6986_v15 }
0x25b4   :  { %6253 = vmatpush3.bf16.msk.msra.mxu1 %vm5619_vm7, %v6986_v15  ;;  %vm389_vm7 = vcmp.eq.s32.totalorder %v347_v20, %v7605_v59 }
0x25b5   :  { %6254 = vmatprep.subr.msk.bf16.mxu1 %vm5621_vm0, %v6986_v15  ;;  %v5058_v19 = vsel %vm389_vm7, 1.0, %v6983_v1 }
0x25b8   :  { %6255 = vmatpush3.bf16.msk.msra.mxu1 %vm5621_vm0, %v6986_v15  ;;  %vm390_vm0 = vcmp.eq.s32.totalorder %v350_v11, %v7605_v59 }
0x25b9   :  { %6256 = vmatprep.subr.msk.bf16.mxu1 %vm5623_vm3, %v6986_v15  ;;  %vm5627_vm12 = vmpackc.low %vm390_vm0, %vm389_vm7  ;;  %v5059_v60 = vsel %vm390_vm0, 1.0, %v6983_v1 }
0x25bc   :  { %6257 = vmatpush3.bf16.msk.msra.mxu1 %vm5623_vm3, %v6986_v15  ;;  %vm388_vm3 = vcmp.eq.s32.totalorder %v344_v17, %v7605_v59 }
0x25bd   :  { %6258 = vmatprep.subr.msk.bf16.mxu1 %vm5625_vm13, %v6986_v15  ;;  %v5057_v6 = vsel %vm388_vm3, 1.0, %v6983_v1 }
0x25be   :  { %v435_v57 = vadd.f32 %v5057_v6, %v5056_v38 }
0x25c0   :  { %6259 = vmatpush3.bf16.msk.msra.mxu1 %vm5625_vm13, %v6986_v15  ;;  %vm5629_vm13 = vmpackc.low %vm388_vm3, %vm387_vm9  ;;  %v436_v7 = vadd.f32 %v5058_v19, %v435_v57  ;;  %vm8886_vm9 = vcmp.eq.s32.totalorder %v8506_v61, %v7605_v59 }
0x25c1   :  { %6260 = vmatprep.subr.msk.bf16.mxu1 %vm5627_vm12, %v6986_v15  ;;  %v5070_v35 = vsel %vm8886_vm9, 1.0, %v6983_v1 }
0x25c2   :  { %v437_v63 = vadd.f32 %v5059_v60, %v436_v7 }
0x25c4   :  { %6261 = vmatpush3.bf16.msk.msra.mxu1 %vm5627_vm12, %v6986_v15  ;;  %v438_v3 = vadd.f32 %v5060_v48, %v437_v63  ;;  %vm8887_vm12 = vcmp.eq.s32.totalorder %v8514_v26, %v7605_v59 }
0x25c5   :  { %6262 = vmatprep.subr.msk.bf16.mxu1 %vm5629_vm13, %v6986_v15  ;;  %v5071_v39 = vsel %vm8887_vm12, 1.0, %v6983_v1 }
0x25c6   :  { %v439_v49 = vadd.f32 %v5061_v30, %v438_v3 }
0x25c8   :  { %6263 = vmatpush3.bf16.msk.msra.mxu1 %vm5629_vm13, %v6986_v15  ;;  %v5063_v15 = vsel %vm394_vm2, 1.0, %v6983_v1  ;;  %v440_v14 = vadd.f32 %v5062_v53, %v439_v49 }
0x25ca   :  { %v441_v9 = vadd.f32 %v5063_v15, %v440_v14 }
0x25cc   :  { %v442_v0 = vadd.f32 %v5064_v55, %v441_v9 }
0x25ce   :  { %v443_v23 = vadd.f32 %v5065_v62, %v442_v0 }
0x25d0   :  { %v444_v51 = vadd.f32 %v5066_v50, %v443_v23 }
0x25d2   :  { %v445_v28 = vadd.f32 %v5067_v24, %v444_v51  ;;  %v4950_v24 = vld [vmem:[%s8662_s11] sm:$0xf]  ;;  %v4957_v51 = vpop.permute.xlu1 %4956 }
0x25d4   :  { %v446_v32 = vadd.f32 %v5068_v27, %v445_v28 }
0x25d6   :  { %v447_v36 = vadd.f32 %v5069_v31, %v446_v32 }
0x25d8   :  { %v448_v47 = vadd.f32 %v5070_v35, %v447_v36 }
0x25da   :  { %v449_v40 = vadd.f32 %v5071_v39, %v448_v47 }
0x25dc   :  { %v450_v48 = vrot.slane %v449_v40, 4 }
0x25de   :  { %v451_v63 = vadd.f32 %v450_v48, %v449_v40 }
0x25e0   :  { %v452_v30 = vrot.slane %v451_v63, 2 }
0x25e2   :  { %v453_v3 = vadd.f32 %v452_v30, %v451_v63 }
0x25e4   :  { %v454_v53 = vrot.slane %v453_v3, 1 }
0x25e6   :  { %v455_v49 = vadd.f32 %v454_v53, %v453_v3 }
0x266b   :  { %v6246_v41 = vpop.f32.mrf.mxu1 }
0x266c   :  { %v4857_v52 = vadd.f32 %v6246_v41, %v8504_v12 }
0x266d   :  { %v4848_v42 = vpop.f32.mrf.mxu1 }
0x266e   :  { %v5613_v43 = vmul.f32 -1.442695, %v4857_v52  ;;  %v4849_v44 = vadd.f32 %v4848_v42, %v8499_v46 }
0x266f   :  { %v6247_v45 = vpop.f32.mrf.mxu1 }
0x2670   :  { %6924 = vpow2.f32 %v5613_v43  ;;  %v5611_v34 = vmul.f32 -1.442695, %v4849_v44  ;;  %v4860_v61 = vadd.f32 %v6247_v45, %v8508_v54 }
0x2671   :  { %v4851_v21 = vpop.f32.mrf.mxu1 }
0x2672   :  { %6926 = vpow2.f32 %v5611_v34  ;;  %v5614_v10 = vmul.f32 -1.442695, %v4860_v61  ;;  %v4852_v59 = vadd.f32 %v4851_v21, %v8501_v18 }
0x2674   :  { %6928 = vpow2.f32 %v5614_v10  ;;  %v5612_v26 = vmul.f32 -1.442695, %v4852_v59 }
0x2676   :  { %6930 = vpow2.f32 %v5612_v26 }
0x267d   :  { %v6925_v58 = vpop.eup %6924 }
0x267e   :  { %v4877_v12 = vadd.f32 1.0, %v6925_v58 }
0x267f   :  { %v6927_v29 = vpop.eup %6926 }
0x2680   :  { %v4875_v16 = vadd.f32 1.0, %v6927_v29 }
0x2681   :  { %v6929_v33 = vpop.eup %6928 }
0x2682   :  { %6932 = vrcp.f32 %v4875_v16  ;;  %v4878_v46 = vadd.f32 1.0, %v6929_v33 }
0x2683   :  { %v6931_v4 = vpop.eup %6930  ;;  %6934 = vrcp.f32 %v4877_v12 }
0x2684   :  { %6936 = vrcp.f32 %v4878_v46  ;;  %v4876_v5 = vadd.f32 1.0, %v6931_v4 }
0x2686   :  { %6938 = vrcp.f32 %v4876_v5 }
0x268f   :  { %v6933_v54 = vpop.eup %6932 }
0x2690   :  { %v6935_v8 = vpop.eup %6934  ;;  %v4887_v13 = vmul.f32 %v6933_v54, %v4849_v44 }
0x2691   :  { %v6937_v11 = vpop.eup %6936  ;;  %v4889_v20 = vmul.f32 %v6935_v8, %v4857_v52 }
0x2692   :  { %v4890_v18 = vmul.f32 %v6937_v11, %v4860_v61  ;;  %v4891_v19 = vadd.f32 %v4887_v13, %v8328_v37 }
0x2693   :  { %v6939_v17 = vpop.eup %6938  ;;  %v4893_v57 = vadd.f32 %v4889_v20, %v8340_v2 }
0x2694   :  { %v4888_v25 = vmul.f32 %v6939_v17, %v4852_v59  ;;  %v4894_v6 = vadd.f32 %v4890_v18, %v8337_v56  ;;  %v456_v56 = vmax.f32 %v455_v49, 1.0 }
0x2696   :  { %v4892_v38 = vadd.f32 %v4888_v25, %v8331_v22  ;;  %v4896_v7 = vpack.c.bf16 %v4894_v6, %v4893_v57  ;;  %6940 = vrcp.f32 %v456_v56 }
0x2698   :  { %v4895_v60 = vpack.c.bf16 %v4892_v38, %v4891_v19 }
0x269a   :  { %6264 = vmatprep.mubr.bf16.mxu1 %v4895_v60 }
0x269b   :  { %6265 = vmatmul.mubr.bf16.vlgmr.msra.gmra.mxu1 %v4896_v7 }
0x26a3   :  { %v6941_v22 = vpop.eup %6940 }
0x275b   :  { %v6266_v37 = vpop.f32.mrf.mxu1 }
0x275c   :  { %v4948_v2 = vmul.f32 %v6941_v22, %v6266_v37 }
0x275d   :  { %v4931_v15 = vpop.f32.mrf.mxu1 }
0x275e   :  { %v4946_v50 = vmul.f32 %v6941_v22, %v4931_v15 }
0x275f   :  { %v6267_v14 = vpop.f32.mrf.mxu1 }
0x2760   :  { %v4949_v55 = vmul.f32 %v6941_v22, %v6267_v14 }
0x2761   :  { %v4934_v9 = vpop.f32.mrf.mxu1 }
0x2762   :  { %v4952_v62 = vpack.c.bf16 %v4949_v55, %v4948_v2  ;;  %v4947_v0 = vmul.f32 %v6941_v22, %v4934_v9 }
0x2764   :  { %6269 = vmatpush3.bf16.msra.mxu0 %v4952_v62  ;;  %v4951_v23 = vpack.c.bf16 %v4947_v0, %v4946_v50 }
0x2765   :  { %6270 = vmatprep.subr.bf16.mxu0 %v6983_v1 }
0x2768   :  { %6271 = vmatpush3.bf16.msra.mxu0 %v4951_v23 }
0x276b   :  { %6273 = vmatmul.mubr.msk.bf16.vlgmr.msra.gmra.mxu0 %vm8888_vm15, %v4950_v24 }
0x282b   :  { %v4996_v27 = vpop.f32.mrf.mxu0 }
0x282c   :  { %v4997_v28 = vadd.f32 %v4996_v27, %v4957_v51 }
0x282d   :  { %v6274_v31 = vpop.f32.mrf.mxu0 }
0x282e   :  { %5002 = vst [vmem:[%s8664_s13] sm:$0xff] %v4997_v28 }
0x282f   :  { %v4999_v32 = vpop.f32.mrf.mxu0 }
0x2831   :  { %v6275_v35 = vpop.f32.mrf.mxu0 }
0x2832   :  { %5007 = vsyncpa [#allocation3], 1 }

</bundles_post_ra>
